<compile_context>
chip_gen: v5e
topology: v5e:2x2
jax: 0.10.0
libtpu: 0.0.40
codegen_flags: <defaults>
</compile_context>

<pallas_src>
import jax
import jax.numpy as jnp
from jax.experimental import pallas as pl
from jax.experimental.pallas import tpu as pltpu


_VMEM_LIMIT_BYTES = 48 * 1024 * 1024  # explicit budget: fine on v5e/v6e, <=48MiB on v7x


def _round_up(x, m):
    return (x + m - 1) // m * m


def _ceil_div(a, b):
    return (a + b - 1) // b


# --------------------------------------------------------------------------
# Pallas kernels
# --------------------------------------------------------------------------
def _matmul_bias_relu_kernel(p_ref, w_ref, b_ref, o_ref):
    # Whole-K path (every InceptionB layer): no accumulator scratch, no RMW.
    # p_ref: (tm, K) bf16 patches; w_ref: (K, Cp) bf16 BN-scaled weights;
    # b_ref: (1, Cp) fp32 folded BN bias; o_ref: (tm, Cp).
    y = jnp.dot(p_ref[...], w_ref[...], preferred_element_type=jnp.float32)
    o_ref[...] = jnp.maximum(y + b_ref[...], 0.0).astype(o_ref.dtype)


def _matmul_bias_relu_acc_kernel(p_ref, w_ref, b_ref, o_ref, acc_ref):
    # Multi-K path (not hit by InceptionB shapes, kept for generality).
    k = pl.program_id(1)
    part = jnp.dot(p_ref[...], w_ref[...], preferred_element_type=jnp.float32)

    @pl.when(k == 0)
    def _():
        acc_ref[...] = part            # first step: plain store (no zero-init + add)

    @pl.when(k > 0)
    def _():
        acc_ref[...] += part

    @pl.when(k == pl.num_programs(1) - 1)
    def _():
        o_ref[...] = jnp.maximum(acc_ref[...] + b_ref[...], 0.0).astype(o_ref.dtype)


def _maxpool_kernel(p00_ref, p01_ref, p10_ref, p11_ref, o_ref):
    # Phase arrays p{ph}{pw} hold x[:, ph::2, pw::2, :]; tap (kh, kw) of the 3x3/s2
    # window is phase (kh%2, kw%2) at unit offset (kh//2, kw//2) -> static slices only.
    OH = o_ref.shape[1]
    OW = o_ref.shape[2]
    m = p00_ref[0, 0:OH, 0:OW, :]
    m = jnp.maximum(m, p00_ref[0, 0:OH, 1:OW + 1, :])
    m = jnp.maximum(m, p00_ref[0, 1:OH + 1, 0:OW, :])
    m = jnp.maximum(m, p00_ref[0, 1:OH + 1, 1:OW + 1, :])
    m = jnp.maximum(m, p01_ref[0, 0:OH, 0:OW, :])
    m = jnp.maximum(m, p01_ref[0, 1:OH + 1, 0:OW, :])
    m = jnp.maximum(m, p10_ref[0, 0:OH, 0:OW, :])
    m = jnp.maximum(m, p10_ref[0, 0:OH, 1:OW + 1, :])
    m = jnp.maximum(m, p11_ref[0, 0:OH, 0:OW, :])
    o_ref[0] = m


# --------------------------------------------------------------------------
# Pallas wrappers
# --------------------------------------------------------------------------
def _matmul_bias_relu(patches, w_mat, bias, out_dtype):
    """relu(patches @ w_mat + bias); M tiled ("parallel"), whole K resident if it fits."""
    M, Kdim = patches.shape
    Cout = w_mat.shape[1]

    # Lane-dense Cout (unmasked vst, full MXU N). Padded columns are zero -> sliced off.
    Cp = _round_up(Cout, 128)
    if Cp != Cout:
        w_mat = jnp.pad(w_mat, ((0, 0), (0, Cp - Cout)))
        bias = jnp.pad(bias, ((0, Cp - Cout),))

    # M tiling: minimize pad waste; force >=2 (even) tiles when there is enough work
    # so the parallel axis feeds both v7x TensorCores.
    TM_MAX = 768
    num_m = _ceil_div(M, TM_MAX)
    if num_m == 1 and M > 32:
        num_m = 2
    if num_m > 1 and num_m % 2:
        num_m += 1
    tm = _round_up(_ceil_div(M, num_m), 16)      # 16: bf16 sublane packing
    Mp = _round_up(M, tm)
    if Mp != M:
        patches = jnp.pad(patches, ((0, Mp - M), (0, 0)))
    num_m = Mp // tm

    # K tiling: keep K whole (weights DMA'd once, VMEM-resident) — covers every
    # InceptionB layer; fall back to 1024-wide K steps with an fp32 accumulator.
    MAX_WHOLE_K = 3072
    if Kdim <= MAX_WHOLE_K:
        tk, Kp = Kdim, Kdim
    else:
        tk = 1024
        Kp = _round_up(Kdim, tk)
        patches = jnp.pad(patches, ((0, 0), (0, Kp - Kdim)))
        w_mat = jnp.pad(w_mat, ((0, Kp - Kdim), (0, 0)))
    num_k = Kp // tk

    patches = patches.astype(jnp.bfloat16)
    w_mat = w_mat.astype(jnp.bfloat16)
    bias2 = bias.reshape(1, Cp).astype(jnp.float32)

    if num_k == 1:
        out = pl.pallas_call(
            _matmul_bias_relu_kernel,
            out_shape=jax.ShapeDtypeStruct((Mp, Cp), out_dtype),
            grid_spec=pltpu.PrefetchScalarGridSpec(
                num_scalar_prefetch=0,
                grid=(num_m,),
                in_specs=[
                    pl.BlockSpec((tm, Kp), lambda i: (i, 0)),
                    # Grid-invariant block index -> weight fetched once, VMEM-resident.
                    # TODO(synk): pipeline_mode=pl.Buffered(1) would reclaim its
                    # second buffer on v7x.
                    pl.BlockSpec((Kp, Cp), lambda i: (0, 0)),
                    pl.BlockSpec((1, Cp), lambda i: (0, 0)),
                ],
                out_specs=pl.BlockSpec((tm, Cp), lambda i: (i, 0)),
            ),
            compiler_params=pltpu.CompilerParams(
                dimension_semantics=("parallel",),
                vmem_limit_bytes=_VMEM_LIMIT_BYTES),
        )(patches, w_mat, bias2)
    else:
        out = pl.pallas_call(
            _matmul_bias_relu_acc_kernel,
            out_shape=jax.ShapeDtypeStruct((Mp, Cp), out_dtype),
            grid_spec=pltpu.PrefetchScalarGridSpec(
                num_scalar_prefetch=0,
                grid=(num_m, num_k),
                in_specs=[
                    pl.BlockSpec((tm, tk), lambda i, k: (i, k)),
                    pl.BlockSpec((tk, Cp), lambda i, k: (k, 0)),
                    pl.BlockSpec((1, Cp), lambda i, k: (0, 0)),
                ],
                out_specs=pl.BlockSpec((tm, Cp), lambda i, k: (i, 0)),
                scratch_shapes=[pltpu.VMEM((tm, Cp), jnp.float32)],
            ),
            compiler_params=pltpu.CompilerParams(
                dimension_semantics=("parallel", "arbitrary"),
                vmem_limit_bytes=_VMEM_LIMIT_BYTES),
        )(patches, w_mat, bias2)
    return out[:M, :Cout]


def _extract_patches(x_nhwc, K, stride, padding):
    """im2col in bf16 (glue: slicing/reshape only). Returns (N*OH*OW, K*K*Cin), OH, OW.

    1x1 convolutions are a pure reshape (no duplication).
    TODO(synk): fuse 3x3 patch extraction into the matmul kernel (in-kernel DMA of the
    raw NHWC stripe) to remove the KxK-duplicated HBM write+read.
    """
    N, H, W, C = x_nhwc.shape
    x_nhwc = x_nhwc.astype(jnp.bfloat16)
    if padding:
        x_nhwc = jnp.pad(
            x_nhwc, ((0, 0), (padding, padding), (padding, padding), (0, 0)))
    Hp, Wp = H + 2 * padding, W + 2 * padding
    OH = (Hp - K) // stride + 1
    OW = (Wp - K) // stride + 1
    if K == 1 and stride == 1:
        return x_nhwc.reshape(N * OH * OW, C), OH, OW
    cols = []
    for kh in range(K):
        for kw in range(K):
            cols.append(
                x_nhwc[:, kh: kh + stride * (OH - 1) + 1: stride,
                          kw: kw + stride * (OW - 1) + 1: stride, :])
    patches = jnp.stack(cols, axis=3)          # (N, OH, OW, K*K, C): (kh,kw) major
    return patches.reshape(N * OH * OW, K * K * C), OH, OW


def conv_bn_relu(x_nhwc, params, *, stride, padding, out_dtype=jnp.float32):
    """BasicConv2d forward (inference-mode BN folded into the weights / bias)."""
    w = params["w"]                            # (Cout, Cin, K, K) -- PyTorch layout
    Cout, Cin, K, _ = w.shape
    N = x_nhwc.shape[0]
    patches, OH, OW = _extract_patches(x_nhwc, K, stride, padding)
    scale = params["gamma"] / jnp.sqrt(params["var"] + 1e-3)
    bias = params["beta"] - params["mean"] * scale
    # Fold BN scale into the weight columns (fp32, before the bf16 cast) so the kernel
    # epilogue is just + bias, relu. (kh,kw,cin)-major rows match the patch ordering.
    w_mat = jnp.transpose(w, (2, 3, 1, 0)).reshape(K * K * Cin, Cout) * scale[None, :]
    y = _matmul_bias_relu(patches, w_mat, bias, out_dtype=out_dtype)
    return y.reshape(N, OH, OW, Cout)


def maxpool_3x3_s2(x_nhwc):
    """max_pool2d(3, stride=2): phase-split input (~1x bytes) + single 9-tap kernel."""
    N, H, W, C = x_nhwc.shape
    OH = (H - 3) // 2 + 1
    OW = (W - 3) // 2 + 1

    def phase(ph, pw):
        a = x_nhwc[:, ph::2, pw::2, :]
        a = a[:, :OH + 1, :OW + 1, :]
        pr, pc = OH + 1 - a.shape[1], OW + 1 - a.shape[2]
        if pr or pc:
            # Padded cells are never read by the kernel (only offset-0 windows touch
            # odd phases), value is irrelevant.
            a = jnp.pad(a, ((0, 0), (0, pr), (0, pc), (0, 0)))
        return a

    phases = [phase(0, 0), phase(0, 1), phase(1, 0), phase(1, 1)]

    in_spec = pl.BlockSpec((1, OH + 1, OW + 1, C), lambda n: (n, 0, 0, 0))
    out = pl.pallas_call(
        _maxpool_kernel,
        out_shape=jax.ShapeDtypeStruct((N, OH, OW, C), x_nhwc.dtype),
        grid=(N,),
        in_specs=[in_spec] * 4,
        out_specs=pl.BlockSpec((1, OH, OW, C), lambda n: (n, 0, 0, 0)),
        compiler_params=pltpu.CompilerParams(
            dimension_semantics=("parallel",),
            vmem_limit_bytes=_VMEM_LIMIT_BYTES),
    )(*phases)
    return out


# --------------------------------------------------------------------------
# InceptionB forward
# --------------------------------------------------------------------------
def inception_b_forward(x_nchw, params):
    x = jnp.transpose(x_nchw, (0, 2, 3, 1))            # NCHW -> NHWC

    branch3x3 = conv_bn_relu(x, params["branch3x3"], stride=2, padding=0,
                             out_dtype=jnp.float32)

    # Intermediate layers emit bf16 (their consumer immediately casts to bf16 anyway);
    # the tensors feeding the final concat stay fp32.
    d = conv_bn_relu(x, params["branch3x3dbl_1"], stride=1, padding=0,
                     out_dtype=jnp.bfloat16)
    d = conv_bn_relu(d, params["branch3x3dbl_2"], stride=1, padding=1,
                     out_dtype=jnp.bfloat16)
    d = conv_bn_relu(d, params["branch3x3dbl_3"], stride=2, padding=0,
                     out_dtype=jnp.float32)

    branch_pool = maxpool_3x3_s2(x)

    out = jnp.concatenate([branch3x3, d, branch_pool], axis=-1)   # channel concat
    return jnp.transpose(out, (0, 3, 1, 2))             # NHWC -> NCHW


# --------------------------------------------------------------------------
# Deterministic parameter init (shapes from the module __init__)
# --------------------------------------------------------------------------
def _init_basic_conv(key, cin, cout, k):
    kw_, kg, kb, km, kv = jax.random.split(key, 5)
    return {
        "w": jax.random.normal(kw_, (cout, cin, k, k), jnp.float32) * 0.05,
        "gamma": 0.5 + jax.random.uniform(kg, (cout,), jnp.float32),
        "beta": jax.random.normal(kb, (cout,), jnp.float32) * 0.1,
        "mean": jax.random.normal(km, (cout,), jnp.float32) * 0.1,
        "var": 0.5 + jax.random.uniform(kv, (cout,), jnp.float32),
    }


def make_params(in_channels, key):
    k1, k2, k3, k4 = jax.random.split(key, 4)
    return {
        "branch3x3": _init_basic_conv(k1, in_channels, 384, 3),
        "branch3x3dbl_1": _init_basic_conv(k2, in_channels, 64, 1),
        "branch3x3dbl_2": _init_basic_conv(k3, 64, 96, 3),
        "branch3x3dbl_3": _init_basic_conv(k4, 96, 96, 3),
    }


if __name__ == "__main__":
    key = jax.random.PRNGKey(0)
    kx, kp = jax.random.split(key)

    N, C, H, W = 2, 4, 16, 16  # small NCHW input, like PyTorch
    x = jax.random.normal(kx, (N, C, H, W), jnp.float32)
    params = make_params(C, kp)

    out = jax.jit(inception_b_forward)(x, params)
    out = jax.block_until_ready(out)

    # output channels = 384 + 96 + C, spatial (H-3)//2 + 1
    expected = (N, 384 + 96 + C, (H - 3) // 2 + 1, (W - 3) // 2 + 1)
    assert out.shape == expected, (out.shape, expected)
    assert bool(jnp.all(jnp.isfinite(out)))

    print("KERNEL_OK")
</pallas_src>

<mosaic_0001>
module attributes {stable_mosaic.version = 11 : i64} {
  func.func @_maxpool_kernel(%arg0: i32, %arg1: memref<1x8x8x4xf32, #tpu.memory_space<vmem>>, %arg2: memref<1x8x8x4xf32, #tpu.memory_space<vmem>>, %arg3: memref<1x8x8x4xf32, #tpu.memory_space<vmem>>, %arg4: memref<1x8x8x4xf32, #tpu.memory_space<vmem>>, %arg5: memref<1x7x7x4xf32, #tpu.memory_space<vmem>>) attributes {dimension_semantics = [#tpu.dimension_semantics<parallel>], iteration_bounds = array<i64: 2>, scalar_prefetch = 0 : i64, scratch_operands = 0 : i64, tpu.core_type = #tpu.core_type<tc>, window_params = [{transform_indices = @transform_0, window_bounds = array<i64: 1, 8, 8, 4>}, {transform_indices = @transform_1, window_bounds = array<i64: 1, 8, 8, 4>}, {transform_indices = @transform_2, window_bounds = array<i64: 1, 8, 8, 4>}, {transform_indices = @transform_3, window_bounds = array<i64: 1, 8, 8, 4>}, {transform_indices = @transform_4, window_bounds = array<i64: 1, 7, 7, 4>}]} {
    %c0 = arith.constant 0 : index
    %c0_0 = arith.constant 0 : index
    %c0_1 = arith.constant 0 : index
    %c0_2 = arith.constant 0 : index
    %0 = vector.load %arg1[%c0, %c0_0, %c0_1, %c0_2] : memref<1x8x8x4xf32, #tpu.memory_space<vmem>>, vector<1x7x7x4xf32>
    %1 = vector.shape_cast %0 : vector<1x7x7x4xf32> to vector<7x7x4xf32>
    %c0_3 = arith.constant 0 : index
    %c0_4 = arith.constant 0 : index
    %c1 = arith.constant 1 : index
    %c0_5 = arith.constant 0 : index
    %2 = vector.load %arg1[%c0_3, %c0_4, %c1, %c0_5] : memref<1x8x8x4xf32, #tpu.memory_space<vmem>>, vector<1x7x7x4xf32>
    %3 = vector.shape_cast %2 : vector<1x7x7x4xf32> to vector<7x7x4xf32>
    %4 = arith.maximumf %1, %3 : vector<7x7x4xf32>
    %c0_6 = arith.constant 0 : index
    %c1_7 = arith.constant 1 : index
    %c0_8 = arith.constant 0 : index
    %c0_9 = arith.constant 0 : index
    %5 = vector.load %arg1[%c0_6, %c1_7, %c0_8, %c0_9] : memref<1x8x8x4xf32, #tpu.memory_space<vmem>>, vector<1x7x7x4xf32>
    %6 = vector.shape_cast %5 : vector<1x7x7x4xf32> to vector<7x7x4xf32>
    %7 = arith.maximumf %4, %6 : vector<7x7x4xf32>
    %c0_10 = arith.constant 0 : index
    %c1_11 = arith.constant 1 : index
    %c1_12 = arith.constant 1 : index
    %c0_13 = arith.constant 0 : index
    %8 = vector.load %arg1[%c0_10, %c1_11, %c1_12, %c0_13] : memref<1x8x8x4xf32, #tpu.memory_space<vmem>>, vector<1x7x7x4xf32>
    %9 = vector.shape_cast %8 : vector<1x7x7x4xf32> to vector<7x7x4xf32>
    %10 = arith.maximumf %7, %9 : vector<7x7x4xf32>
    %c0_14 = arith.constant 0 : index
    %c0_15 = arith.constant 0 : index
    %c0_16 = arith.constant 0 : index
    %c0_17 = arith.constant 0 : index
    %11 = vector.load %arg2[%c0_14, %c0_15, %c0_16, %c0_17] : memref<1x8x8x4xf32, #tpu.memory_space<vmem>>, vector<1x7x7x4xf32>
    %12 = vector.shape_cast %11 : vector<1x7x7x4xf32> to vector<7x7x4xf32>
    %13 = arith.maximumf %10, %12 : vector<7x7x4xf32>
    %c0_18 = arith.constant 0 : index
    %c1_19 = arith.constant 1 : index
    %c0_20 = arith.constant 0 : index
    %c0_21 = arith.constant 0 : index
    %14 = vector.load %arg2[%c0_18, %c1_19, %c0_20, %c0_21] : memref<1x8x8x4xf32, #tpu.memory_space<vmem>>, vector<1x7x7x4xf32>
    %15 = vector.shape_cast %14 : vector<1x7x7x4xf32> to vector<7x7x4xf32>
    %16 = arith.maximumf %13, %15 : vector<7x7x4xf32>
    %c0_22 = arith.constant 0 : index
    %c0_23 = arith.constant 0 : index
    %c0_24 = arith.constant 0 : index
    %c0_25 = arith.constant 0 : index
    %17 = vector.load %arg3[%c0_22, %c0_23, %c0_24, %c0_25] : memref<1x8x8x4xf32, #tpu.memory_space<vmem>>, vector<1x7x7x4xf32>
    %18 = vector.shape_cast %17 : vector<1x7x7x4xf32> to vector<7x7x4xf32>
    %19 = arith.maximumf %16, %18 : vector<7x7x4xf32>
    %c0_26 = arith.constant 0 : index
    %c0_27 = arith.constant 0 : index
    %c1_28 = arith.constant 1 : index
    %c0_29 = arith.constant 0 : index
    %20 = vector.load %arg3[%c0_26, %c0_27, %c1_28, %c0_29] : memref<1x8x8x4xf32, #tpu.memory_space<vmem>>, vector<1x7x7x4xf32>
    %21 = vector.shape_cast %20 : vector<1x7x7x4xf32> to vector<7x7x4xf32>
    %22 = arith.maximumf %19, %21 : vector<7x7x4xf32>
    %c0_30 = arith.constant 0 : index
    %c0_31 = arith.constant 0 : index
    %c0_32 = arith.constant 0 : index
    %c0_33 = arith.constant 0 : index
    %23 = vector.load %arg4[%c0_30, %c0_31, %c0_32, %c0_33] : memref<1x8x8x4xf32, #tpu.memory_space<vmem>>, vector<1x7x7x4xf32>
    %24 = vector.shape_cast %23 : vector<1x7x7x4xf32> to vector<7x7x4xf32>
    %25 = arith.maximumf %22, %24 : vector<7x7x4xf32>
    %c0_34 = arith.constant 0 : index
    %c0_35 = arith.constant 0 : index
    %c0_36 = arith.constant 0 : index
    %c0_37 = arith.constant 0 : index
    %26 = vector.load %arg5[%c0_34, %c0_35, %c0_36, %c0_37] : memref<1x7x7x4xf32, #tpu.memory_space<vmem>>, vector<1x7x7x4xf32>
    %27 = vector.shape_cast %26 : vector<1x7x7x4xf32> to vector<7x7x4xf32>
    %28 = vector.shape_cast %25 : vector<7x7x4xf32> to vector<1x7x7x4xf32>
    tpu.vector_store %arg5[%c0_34, %c0_35, %c0_36, %c0_37], %28 {strides = array<i32>} : memref<1x7x7x4xf32, #tpu.memory_space<vmem>>, vector<1x7x7x4xf32>,
    return
  }
  func.func @transform_0(%arg0: i32) -> (i32, i32, i32, i32) {
    %c0_i32 = arith.constant 0 : i32
    %c0_i32_0 = arith.constant 0 : i32
    %c0_i32_1 = arith.constant 0 : i32
    %c0_i32_2 = arith.constant 0 : i32
    return %arg0, %c0_i32, %c0_i32_0, %c0_i32_1 : i32, i32, i32, i32
  }
  func.func @transform_1(%arg0: i32) -> (i32, i32, i32, i32) {
    %c0_i32 = arith.constant 0 : i32
    %c0_i32_0 = arith.constant 0 : i32
    %c0_i32_1 = arith.constant 0 : i32
    %c0_i32_2 = arith.constant 0 : i32
    return %arg0, %c0_i32, %c0_i32_0, %c0_i32_1 : i32, i32, i32, i32
  }
  func.func @transform_2(%arg0: i32) -> (i32, i32, i32, i32) {
    %c0_i32 = arith.constant 0 : i32
    %c0_i32_0 = arith.constant 0 : i32
    %c0_i32_1 = arith.constant 0 : i32
    %c0_i32_2 = arith.constant 0 : i32
    return %arg0, %c0_i32, %c0_i32_0, %c0_i32_1 : i32, i32, i32, i32
  }
  func.func @transform_3(%arg0: i32) -> (i32, i32, i32, i32) {
    %c0_i32 = arith.constant 0 : i32
    %c0_i32_0 = arith.constant 0 : i32
    %c0_i32_1 = arith.constant 0 : i32
    %c0_i32_2 = arith.constant 0 : i32
    return %arg0, %c0_i32, %c0_i32_0, %c0_i32_1 : i32, i32, i32, i32
  }
  func.func @transform_4(%arg0: i32) -> (i32, i32, i32, i32) {
    %c0_i32 = arith.constant 0 : i32
    %c0_i32_0 = arith.constant 0 : i32
    %c0_i32_1 = arith.constant 0 : i32
    %c0_i32_2 = arith.constant 0 : i32
    return %arg0, %c0_i32, %c0_i32_0, %c0_i32_1 : i32, i32, i32, i32
  }
}

module attributes {stable_mosaic.version = 11 : i64} {
  func.func @_matmul_bias_relu_kernel(%arg0: i32, %arg1: memref<256x4xbf16, #tpu.memory_space<vmem>>, %arg2: memref<4x128xbf16, #tpu.memory_space<vmem>>, %arg3: memref<1x128xf32, #tpu.memory_space<vmem>>, %arg4: memref<256x128xbf16, #tpu.memory_space<vmem>>) attributes {dimension_semantics = [#tpu.dimension_semantics<parallel>], iteration_bounds = array<i64: 2>, scalar_prefetch = 0 : i64, scratch_operands = 0 : i64, tpu.core_type = #tpu.core_type<tc>, window_params = [{transform_indices = @transform_0, window_bounds = array<i64: 256, 4>}, {pipeline_mode = #tpu.pipeline_mode<synchronous>, transform_indices = @transform_1, window_bounds = array<i64: 4, 128>}, {pipeline_mode = #tpu.pipeline_mode<synchronous>, transform_indices = @transform_2, window_bounds = array<i64: 1, 128>}, {transform_indices = @transform_3, window_bounds = array<i64: 256, 128>}]} {
    %c0 = arith.constant 0 : index
    %c0_0 = arith.constant 0 : index
    %0 = vector.load %arg1[%c0, %c0_0] : memref<256x4xbf16, #tpu.memory_space<vmem>>, vector<256x4xbf16>
    %c0_1 = arith.constant 0 : index
    %c0_2 = arith.constant 0 : index
    %1 = vector.load %arg2[%c0_1, %c0_2] : memref<4x128xbf16, #tpu.memory_space<vmem>>, vector<4x128xbf16>
    %cst = arith.constant dense<0.000000e+00> : vector<256x128xf32>
    %2 = tpu.matmul %0, %1, %cst {dimension_numbers = #tpu.dot_dimension_numbers<[1], [0], [0], [1], [0, 0, 1, 1], [], []>} : vector<256x4xbf16>, vector<4x128xbf16>, vector<256x128xf32> -> vector<256x128xf32>
    %c0_3 = arith.constant 0 : index
    %c0_4 = arith.constant 0 : index
    %3 = vector.load %arg3[%c0_3, %c0_4] : memref<1x128xf32, #tpu.memory_space<vmem>>, vector<1x128xf32>
    %4 = vector.broadcast %3 : vector<1x128xf32> to vector<256x128xf32>
    %5 = arith.addf %2, %4 : vector<256x128xf32>
    %cst_5 = arith.constant 0.000000e+00 : f32
    %6 = vector.broadcast %cst_5 : f32 to vector<256x128xf32>
    %7 = arith.maximumf %5, %6 : vector<256x128xf32>
    %8 = arith.truncf %7 : vector<256x128xf32> to vector<256x128xbf16>
    %c0_6 = arith.constant 0 : index
    %c0_7 = arith.constant 0 : index
    %9 = vector.load %arg4[%c0_6, %c0_7] : memref<256x128xbf16, #tpu.memory_space<vmem>>, vector<256x128xbf16>
    tpu.vector_store %arg4[%c0_6, %c0_7], %8 {strides = array<i32>} : memref<256x128xbf16, #tpu.memory_space<vmem>>, vector<256x128xbf16>,
    return
  }
  func.func @transform_0(%arg0: i32) -> (i32, i32) {
    %c0_i32 = arith.constant 0 : i32
    %c0_i32_0 = arith.constant 0 : i32
    return %arg0, %c0_i32 : i32, i32
  }
  func.func @transform_1(%arg0: i32) -> (i32, i32) {
    %c0_i32 = arith.constant 0 : i32
    %c0_i32_0 = arith.constant 0 : i32
    %c0_i32_1 = arith.constant 0 : i32
    return %c0_i32, %c0_i32_0 : i32, i32
  }
  func.func @transform_2(%arg0: i32) -> (i32, i32) {
    %c0_i32 = arith.constant 0 : i32
    %c0_i32_0 = arith.constant 0 : i32
    %c0_i32_1 = arith.constant 0 : i32
    return %c0_i32, %c0_i32_0 : i32, i32
  }
  func.func @transform_3(%arg0: i32) -> (i32, i32) {
    %c0_i32 = arith.constant 0 : i32
    %c0_i32_0 = arith.constant 0 : i32
    return %arg0, %c0_i32 : i32, i32
  }
}

module attributes {stable_mosaic.version = 11 : i64} {
  func.func @_matmul_bias_relu_kernel(%arg0: i32, %arg1: memref<256x576xbf16, #tpu.memory_space<vmem>>, %arg2: memref<576x128xbf16, #tpu.memory_space<vmem>>, %arg3: memref<1x128xf32, #tpu.memory_space<vmem>>, %arg4: memref<256x128xbf16, #tpu.memory_space<vmem>>) attributes {dimension_semantics = [#tpu.dimension_semantics<parallel>], iteration_bounds = array<i64: 2>, scalar_prefetch = 0 : i64, scratch_operands = 0 : i64, tpu.core_type = #tpu.core_type<tc>, window_params = [{transform_indices = @transform_0, window_bounds = array<i64: 256, 576>}, {pipeline_mode = #tpu.pipeline_mode<synchronous>, transform_indices = @transform_1, window_bounds = array<i64: 576, 128>}, {pipeline_mode = #tpu.pipeline_mode<synchronous>, transform_indices = @transform_2, window_bounds = array<i64: 1, 128>}, {transform_indices = @transform_3, window_bounds = array<i64: 256, 128>}]} {
    %c0 = arith.constant 0 : index
    %c0_0 = arith.constant 0 : index
    %0 = vector.load %arg1[%c0, %c0_0] : memref<256x576xbf16, #tpu.memory_space<vmem>>, vector<256x576xbf16>
    %c0_1 = arith.constant 0 : index
    %c0_2 = arith.constant 0 : index
    %1 = vector.load %arg2[%c0_1, %c0_2] : memref<576x128xbf16, #tpu.memory_space<vmem>>, vector<576x128xbf16>
    %cst = arith.constant dense<0.000000e+00> : vector<256x128xf32>
    %2 = tpu.matmul %0, %1, %cst {dimension_numbers = #tpu.dot_dimension_numbers<[1], [0], [0], [1], [0, 0, 1, 1], [], []>} : vector<256x576xbf16>, vector<576x128xbf16>, vector<256x128xf32> -> vector<256x128xf32>
    %c0_3 = arith.constant 0 : index
    %c0_4 = arith.constant 0 : index
    %3 = vector.load %arg3[%c0_3, %c0_4] : memref<1x128xf32, #tpu.memory_space<vmem>>, vector<1x128xf32>
    %4 = vector.broadcast %3 : vector<1x128xf32> to vector<256x128xf32>
    %5 = arith.addf %2, %4 : vector<256x128xf32>
    %cst_5 = arith.constant 0.000000e+00 : f32
    %6 = vector.broadcast %cst_5 : f32 to vector<256x128xf32>
    %7 = arith.maximumf %5, %6 : vector<256x128xf32>
    %8 = arith.truncf %7 : vector<256x128xf32> to vector<256x128xbf16>
    %c0_6 = arith.constant 0 : index
    %c0_7 = arith.constant 0 : index
    %9 = vector.load %arg4[%c0_6, %c0_7] : memref<256x128xbf16, #tpu.memory_space<vmem>>, vector<256x128xbf16>
    tpu.vector_store %arg4[%c0_6, %c0_7], %8 {strides = array<i32>} : memref<256x128xbf16, #tpu.memory_space<vmem>>, vector<256x128xbf16>,
    return
  }
  func.func @transform_0(%arg0: i32) -> (i32, i32) {
    %c0_i32 = arith.constant 0 : i32
    %c0_i32_0 = arith.constant 0 : i32
    return %arg0, %c0_i32 : i32, i32
  }
  func.func @transform_1(%arg0: i32) -> (i32, i32) {
    %c0_i32 = arith.constant 0 : i32
    %c0_i32_0 = arith.constant 0 : i32
    %c0_i32_1 = arith.constant 0 : i32
    return %c0_i32, %c0_i32_0 : i32, i32
  }
  func.func @transform_2(%arg0: i32) -> (i32, i32) {
    %c0_i32 = arith.constant 0 : i32
    %c0_i32_0 = arith.constant 0 : i32
    %c0_i32_1 = arith.constant 0 : i32
    return %c0_i32, %c0_i32_0 : i32, i32
  }
  func.func @transform_3(%arg0: i32) -> (i32, i32) {
    %c0_i32 = arith.constant 0 : i32
    %c0_i32_0 = arith.constant 0 : i32
    return %arg0, %c0_i32 : i32, i32
  }
}

module attributes {stable_mosaic.version = 11 : i64} {
  func.func @_matmul_bias_relu_kernel(%arg0: i32, %arg1: memref<64x864xbf16, #tpu.memory_space<vmem>>, %arg2: memref<864x128xbf16, #tpu.memory_space<vmem>>, %arg3: memref<1x128xf32, #tpu.memory_space<vmem>>, %arg4: memref<64x128xf32, #tpu.memory_space<vmem>>) attributes {dimension_semantics = [#tpu.dimension_semantics<parallel>], iteration_bounds = array<i64: 2>, scalar_prefetch = 0 : i64, scratch_operands = 0 : i64, tpu.core_type = #tpu.core_type<tc>, window_params = [{transform_indices = @transform_0, window_bounds = array<i64: 64, 864>}, {pipeline_mode = #tpu.pipeline_mode<synchronous>, transform_indices = @transform_1, window_bounds = array<i64: 864, 128>}, {pipeline_mode = #tpu.pipeline_mode<synchronous>, transform_indices = @transform_2, window_bounds = array<i64: 1, 128>}, {transform_indices = @transform_3, window_bounds = array<i64: 64, 128>}]} {
    %c0 = arith.constant 0 : index
    %c0_0 = arith.constant 0 : index
    %0 = vector.load %arg1[%c0, %c0_0] : memref<64x864xbf16, #tpu.memory_space<vmem>>, vector<64x864xbf16>
    %c0_1 = arith.constant 0 : index
    %c0_2 = arith.constant 0 : index
    %1 = vector.load %arg2[%c0_1, %c0_2] : memref<864x128xbf16, #tpu.memory_space<vmem>>, vector<864x128xbf16>
    %cst = arith.constant dense<0.000000e+00> : vector<64x128xf32>
    %2 = tpu.matmul %0, %1, %cst {dimension_numbers = #tpu.dot_dimension_numbers<[1], [0], [0], [1], [0, 0, 1, 1], [], []>} : vector<64x864xbf16>, vector<864x128xbf16>, vector<64x128xf32> -> vector<64x128xf32>
    %c0_3 = arith.constant 0 : index
    %c0_4 = arith.constant 0 : index
    %3 = vector.load %arg3[%c0_3, %c0_4] : memref<1x128xf32, #tpu.memory_space<vmem>>, vector<1x128xf32>
    %4 = vector.broadcast %3 : vector<1x128xf32> to vector<64x128xf32>
    %5 = arith.addf %2, %4 : vector<64x128xf32>
    %cst_5 = arith.constant 0.000000e+00 : f32
    %6 = vector.broadcast %cst_5 : f32 to vector<64x128xf32>
    %7 = arith.maximumf %5, %6 : vector<64x128xf32>
    %c0_6 = arith.constant 0 : index
    %c0_7 = arith.constant 0 : index
    %8 = vector.load %arg4[%c0_6, %c0_7] : memref<64x128xf32, #tpu.memory_space<vmem>>, vector<64x128xf32>
    tpu.vector_store %arg4[%c0_6, %c0_7], %7 {strides = array<i32>} : memref<64x128xf32, #tpu.memory_space<vmem>>, vector<64x128xf32>,
    return
  }
  func.func @transform_0(%arg0: i32) -> (i32, i32) {
    %c0_i32 = arith.constant 0 : i32
    %c0_i32_0 = arith.constant 0 : i32
    return %arg0, %c0_i32 : i32, i32
  }
  func.func @transform_1(%arg0: i32) -> (i32, i32) {
    %c0_i32 = arith.constant 0 : i32
    %c0_i32_0 = arith.constant 0 : i32
    %c0_i32_1 = arith.constant 0 : i32
    return %c0_i32, %c0_i32_0 : i32, i32
  }
  func.func @transform_2(%arg0: i32) -> (i32, i32) {
    %c0_i32 = arith.constant 0 : i32
    %c0_i32_0 = arith.constant 0 : i32
    %c0_i32_1 = arith.constant 0 : i32
    return %c0_i32, %c0_i32_0 : i32, i32
  }
  func.func @transform_3(%arg0: i32) -> (i32, i32) {
    %c0_i32 = arith.constant 0 : i32
    %c0_i32_0 = arith.constant 0 : i32
    return %arg0, %c0_i32 : i32, i32
  }
}

module attributes {stable_mosaic.version = 11 : i64} {
  func.func @_matmul_bias_relu_kernel(%arg0: i32, %arg1: memref<64x36xbf16, #tpu.memory_space<vmem>>, %arg2: memref<36x384xbf16, #tpu.memory_space<vmem>>, %arg3: memref<1x384xf32, #tpu.memory_space<vmem>>, %arg4: memref<64x384xf32, #tpu.memory_space<vmem>>) attributes {dimension_semantics = [#tpu.dimension_semantics<parallel>], iteration_bounds = array<i64: 2>, scalar_prefetch = 0 : i64, scratch_operands = 0 : i64, tpu.core_type = #tpu.core_type<tc>, window_params = [{transform_indices = @transform_0, window_bounds = array<i64: 64, 36>}, {pipeline_mode = #tpu.pipeline_mode<synchronous>, transform_indices = @transform_1, window_bounds = array<i64: 36, 384>}, {pipeline_mode = #tpu.pipeline_mode<synchronous>, transform_indices = @transform_2, window_bounds = array<i64: 1, 384>}, {transform_indices = @transform_3, window_bounds = array<i64: 64, 384>}]} {
    %c0 = arith.constant 0 : index
    %c0_0 = arith.constant 0 : index
    %0 = vector.load %arg1[%c0, %c0_0] : memref<64x36xbf16, #tpu.memory_space<vmem>>, vector<64x36xbf16>
    %c0_1 = arith.constant 0 : index
    %c0_2 = arith.constant 0 : index
    %1 = vector.load %arg2[%c0_1, %c0_2] : memref<36x384xbf16, #tpu.memory_space<vmem>>, vector<36x384xbf16>
    %cst = arith.constant dense<0.000000e+00> : vector<64x384xf32>
    %2 = tpu.matmul %0, %1, %cst {dimension_numbers = #tpu.dot_dimension_numbers<[1], [0], [0], [1], [0, 0, 1, 1], [], []>} : vector<64x36xbf16>, vector<36x384xbf16>, vector<64x384xf32> -> vector<64x384xf32>
    %c0_3 = arith.constant 0 : index
    %c0_4 = arith.constant 0 : index
    %3 = vector.load %arg3[%c0_3, %c0_4] : memref<1x384xf32, #tpu.memory_space<vmem>>, vector<1x384xf32>
    %4 = vector.broadcast %3 : vector<1x384xf32> to vector<64x384xf32>
    %5 = arith.addf %2, %4 : vector<64x384xf32>
    %cst_5 = arith.constant 0.000000e+00 : f32
    %6 = vector.broadcast %cst_5 : f32 to vector<64x384xf32>
    %7 = arith.maximumf %5, %6 : vector<64x384xf32>
    %c0_6 = arith.constant 0 : index
    %c0_7 = arith.constant 0 : index
    %8 = vector.load %arg4[%c0_6, %c0_7] : memref<64x384xf32, #tpu.memory_space<vmem>>, vector<64x384xf32>
    tpu.vector_store %arg4[%c0_6, %c0_7], %7 {strides = array<i32>} : memref<64x384xf32, #tpu.memory_space<vmem>>, vector<64x384xf32>,
    return
  }
  func.func @transform_0(%arg0: i32) -> (i32, i32) {
    %c0_i32 = arith.constant 0 : i32
    %c0_i32_0 = arith.constant 0 : i32
    return %arg0, %c0_i32 : i32, i32
  }
  func.func @transform_1(%arg0: i32) -> (i32, i32) {
    %c0_i32 = arith.constant 0 : i32
    %c0_i32_0 = arith.constant 0 : i32
    %c0_i32_1 = arith.constant 0 : i32
    return %c0_i32, %c0_i32_0 : i32, i32
  }
  func.func @transform_2(%arg0: i32) -> (i32, i32) {
    %c0_i32 = arith.constant 0 : i32
    %c0_i32_0 = arith.constant 0 : i32
    %c0_i32_1 = arith.constant 0 : i32
    return %c0_i32, %c0_i32_0 : i32, i32
  }
  func.func @transform_3(%arg0: i32) -> (i32, i32) {
    %c0_i32 = arith.constant 0 : i32
    %c0_i32_0 = arith.constant 0 : i32
    return %arg0, %c0_i32 : i32, i32
  }
}

</mosaic_0001>

<bundles_post_ra>
// kernel: inception_b_forward.9
= control target key start
LH: loop header
LB: loop body
LE: loop exit
PB: predicated region body
PF: predicated region fallthrough
CT: control target
= control target key end

     0   :  { %s561_s15 = smov 0   ;;  %s680_s0 = inlined_call_operand.vmem [shape: f32[2,8,8,4], index: 0, kind: input, shape index: {}]   ;;  %s681_s1 = inlined_call_operand.vmem [shape: f32[2,8,8,4], index: 1, kind: input, shape index: {}]   ;;  %s682_s2 = inlined_call_operand.vmem [shape: f32[2,8,8,4], index: 2, kind: input, shape index: {}]   ;;  %s683_s3 = inlined_call_operand.vmem [shape: f32[2,8,8,4], index: 3, kind: input, shape index: {}]   ;;  %s684_s4 = inlined_call_operand.vmem [shape: f32[2,7,7,4], index: 4, kind: output, shape index: {}]  }
   0x1 LB: > { %s478_s16 = sadd.s32 4294967295, %s534_s15   ;;  %p482_p0 = scmp.ge.s32.totalorder %s534_s15, 1  ;;  %s534_s15 = sphi %s561_s15, %s14_s15  }
   0x2   : > { %p192_p1 = scmp.lt.s32.totalorder %s534_s15, 3 }
   0x4   : > { %p193_p2 = pnand %p482_p0, %p192_p1 }
   0x5   : > { %p233_p3 = scmp.lt.s32.totalorder (!%p193_p2), %s478_s16, 1 }
   0x6   : > { %196 = sbr.rel (%p193_p2) target bundleno = 48 (0x30), region = 36 }
   0xb   : > { %s686_s16 = smov (!%p233_p3, %s478_s16), 1  ;;  %vm379_vm0 = vcmask 30720  }
   0xc   : > { %s515_s17 = sshll.u32 %s686_s16, 6  ;;  %s519_s30 = smul.u32 56, %s686_s16 }
   0xd   : > { %s575_s20 = scalar_lea.vmem %s680_s0, %s515_s17  ;;  %s583_s23 = scalar_lea.vmem %s681_s1, %s515_s17 }
   0xe   : > { %v258_v0 = vld [vmem:[%s575_s20] sm:$0x7f]  ;;  %v492_v2 = vld [vmem:[%s575_s20 + $0x8] sm:$0x7f]  ;;  %v493_v8 = vld [vmem:[%s575_s20 + $0x10] sm:$0x7f]  ;;  %s593_s26 = scalar_lea.vmem %s682_s2, %s515_s17  ;;  %s603_s29 = scalar_lea.vmem %s683_s3, %s515_s17 }
   0xf   : > { %v265_v1 = vld [vmem:[%s575_s20 + $0x1] sm:$0x7f]  ;;  %v499_v4 = vld [vmem:[%s575_s20 + $0x9] sm:$0x7f]  ;;  %v500_v13 = vld [vmem:[%s575_s20 + $0x11] sm:$0x7f]  ;;  %s630_s7 = scalar_lea.vmem %s684_s4, %s519_s30 }
  0x10   : > { %v272_v3 = vmax.f32 %v258_v0, %v265_v1  ;;  %v259_v6 = vld [vmem:[%s575_s20 + $0x8] sm:$0x7f]  ;;  %v308_v9 = vld [vmem:[%s583_s23] sm:$0x7f]  ;;  %v260_v15 = vld [vmem:[%s575_s20 + $0x10] sm:$0x7f] }
  0x11   : > { %v266_v7 = vld [vmem:[%s575_s20 + $0x9] sm:$0x7f]  ;;  %v267_v16 = vld [vmem:[%s575_s20 + $0x11] sm:$0x7f]  ;;  %v494_v17 = vld [vmem:[%s575_s20 + $0x18] sm:$0x7f] }
  0x12   : > { %v287_v5 = vmax.f32 %v272_v3, %v492_v2  ;;  %v273_v10 = vmax.f32 %v259_v6, %v266_v7  ;;  %v506_v12 = vld [vmem:[%s583_s23 + $0x8] sm:$0x7f]  ;;  %v274_v20 = vmax.f32 %v260_v15, %v267_v16  ;;  %v337_v21 = vld [vmem:[%s593_s26] sm:$0x7f]  ;;  %v507_v23 = vld [vmem:[%s583_s23 + $0x10] sm:$0x7f] }
  0x13   : > { %v309_v19 = vld [vmem:[%s583_s23 + $0x8] sm:$0x7f]  ;;  %v501_v24 = vld [vmem:[%s575_s20 + $0x19] sm:$0x7f]  ;;  %v495_v29 = vld [vmem:[%s575_s20 + $0x20] sm:$0x7f] }
  0x14   : > { %v301_v11 = vmax.f32 %v287_v5, %v499_v4  ;;  %v288_v14 = vmax.f32 %v273_v10, %v493_v8  ;;  %v289_v26 = vmax.f32 %v274_v20, %v494_v17  ;;  %v261_v27 = vld [vmem:[%s575_s20 + $0x18] sm:$0x7f]  ;;  %v351_v30 = vld [vmem:[%s593_s26 + $0x1] sm:$0x7f]  ;;  %v310_v33 = vld [vmem:[%s583_s23 + $0x10] sm:$0x7f] }
  0x15   : > { %v268_v28 = vld [vmem:[%s575_s20 + $0x19] sm:$0x7f]  ;;  %v365_v31 = vld [vmem:[%s603_s29] sm:$0x7f]  ;;  %v338_v36 = vld [vmem:[%s593_s26 + $0x8] sm:$0x7f] }
  0x16   : > { %v315_v18 = vmax.f32 %v301_v11, %v308_v9  ;;  %v302_v22 = vmax.f32 %v288_v14, %v500_v13  ;;  %v275_v34 = vmax.f32 %v261_v27, %v268_v28  ;;  %v303_v37 = vmax.f32 %v289_v26, %v501_v24  ;;  %v508_v38 = vld [vmem:[%s583_s23 + $0x18] sm:$0x7f]  ;;  %v502_v39 = vld [vmem:[%s575_s20 + $0x21] sm:$0x7f]  ;;  %v496_v44 = vld [vmem:[%s575_s20 + $0x28] sm:$0x7f] }
  0x17   : > { %v262_v42 = vld [vmem:[%s575_s20 + $0x20] sm:$0x7f]  ;;  %v352_v46 = vld [vmem:[%s593_s26 + $0x9] sm:$0x7f]  ;;  %v311_v49 = vld [vmem:[%s583_s23 + $0x18] sm:$0x7f] }
  0x18   : > { %v330_v25 = vmax.f32 %v315_v18, %v506_v12  ;;  %v316_v32 = vmax.f32 %v302_v22, %v309_v19  ;;  %v290_v41 = vmax.f32 %v275_v34, %v495_v29  ;;  %v269_v43 = vld [vmem:[%s575_s20 + $0x21] sm:$0x7f]  ;;  %v366_v47 = vld [vmem:[%s603_s29 + $0x8] sm:$0x7f]  ;;  %v317_v48 = vmax.f32 %v303_v37, %v310_v33  ;;  %v339_v52 = vld [vmem:[%s593_s26 + $0x10] sm:$0x7f] }
  0x19   : > { %v276_v50 = vmax.f32 %v262_v42, %v269_v43  ;;  %v509_v54 = vld [vmem:[%s583_s23 + $0x20] sm:$0x7f]  ;;  %v503_v55 = vld [vmem:[%s575_s20 + $0x29] sm:$0x7f]  ;;  %v497_v61 = vld [vmem:[%s575_s20 + $0x30] sm:$0x7f] }
  0x1a   : > { %v344_v35 = vmax.f32 %v330_v25, %v337_v21  ;;  %v331_v40 = vmax.f32 %v316_v32, %v507_v23  ;;  %v304_v53 = vmax.f32 %v290_v41, %v502_v39  ;;  %v332_v57 = vmax.f32 %v317_v48, %v508_v38  ;;  %v263_v59 = vld [vmem:[%s575_s20 + $0x28] sm:$0x7f]  ;;  %v353_v63 = vld [vmem:[%s593_s26 + $0x11] sm:$0x7f]  ;;  %v312_v2 = vld [vmem:[%s583_s23 + $0x20] sm:$0x7f] }
  0x1b   : > { %v291_v58 = vmax.f32 %v276_v50, %v496_v44  ;;  %v270_v60 = vld [vmem:[%s575_s20 + $0x29] sm:$0x7f]  ;;  %v367_v0 = vld [vmem:[%s603_s29 + $0x10] sm:$0x7f]  ;;  %v340_v5 = vld [vmem:[%s593_s26 + $0x18] sm:$0x7f] }
  0x1c   : > { %v358_v45 = vmax.f32 %v344_v35, %v351_v30  ;;  %v345_v51 = vmax.f32 %v331_v40, %v338_v36  ;;  %v318_v1 = vmax.f32 %v304_v53, %v311_v49  ;;  %v277_v3 = vmax.f32 %v263_v59, %v270_v60  ;;  %v504_v7 = vld [vmem:[%s575_s20 + $0x31] sm:$0x7f]  ;;  %v510_v10 = vld [vmem:[%s583_s23 + $0x28] sm:$0x7f]  ;;  %v354_v15 = vld [vmem:[%s593_s26 + $0x19] sm:$0x7f] }
  0x1d   : > { %v346_v4 = vmax.f32 %v332_v57, %v339_v52  ;;  %v305_v6 = vmax.f32 %v291_v58, %v503_v55  ;;  %v264_v12 = vld [vmem:[%s575_s20 + $0x30] sm:$0x7f]  ;;  %v313_v17 = vld [vmem:[%s583_s23 + $0x28] sm:$0x7f]  ;;  %v498_v19 = vld [vmem:[%s575_s20 + $0x38] sm:$0x7f] }
  0x1e   : > { %v372_v56 = vmax.f32 %v358_v45, %v365_v31  ;;  %v359_v62 = vmax.f32 %v345_v51, %v352_v46  ;;  %v333_v9 = vmax.f32 %v318_v1, %v509_v54  ;;  %v292_v11 = vmax.f32 %v277_v3, %v497_v61  ;;  %v271_v13 = vld [vmem:[%s575_s20 + $0x31] sm:$0x7f]  ;;  %v341_v21 = vld [vmem:[%s593_s26 + $0x20] sm:$0x7f]  ;;  %v505_v23 = vld [vmem:[%s575_s20 + $0x39] sm:$0x7f] }
  0x1f   : > { %v360_v14 = vmax.f32 %v346_v4, %v353_v63  ;;  %v319_v16 = vmax.f32 %v305_v6, %v312_v2  ;;  %v278_v18 = vmax.f32 %v264_v12, %v271_v13  ;;  %v368_v25 = vld [vmem:[%s603_s29 + $0x18] sm:$0x7f]  ;;  %v511_v27 = vld [vmem:[%s583_s23 + $0x30] sm:$0x7f]  ;;  %v355_v30 = vld [vmem:[%s593_s26 + $0x21] sm:$0x7f] }
  0x20   : > { %380 = vst.msk [vmem:[%s630_s7] sm:$0x7f] %vm379_vm0, %v372_v56  ;;  %v373_v8 = vmax.f32 %v359_v62, %v366_v47  ;;  %v347_v20 = vmax.f32 %v333_v9, %v340_v5  ;;  %v306_v22 = vmax.f32 %v292_v11, %v504_v7  ;;  %v314_v32 = vld [vmem:[%s583_s23 + $0x30] sm:$0x7f]  ;;  %v342_v34 = vld [vmem:[%s593_s26 + $0x28] sm:$0x7f] }
  0x21   : > { %v374_v24 = vmax.f32 %v360_v14, %v367_v0  ;;  %v334_v26 = vmax.f32 %v319_v16, %v510_v10  ;;  %v293_v28 = vmax.f32 %v278_v18, %v498_v19  ;;  %v369_v37 = vld [vmem:[%s603_s29 + $0x20] sm:$0x7f]  ;;  %v512_v39 = vld [vmem:[%s583_s23 + $0x38] sm:$0x7f]  ;;  %v356_v41 = vld [vmem:[%s593_s26 + $0x29] sm:$0x7f] }
  0x22   : > { %381 = vst.msk [vmem:[%s630_s7 + $0x8] sm:$0x7f] %vm379_vm0, %v373_v8  ;;  %v361_v29 = vmax.f32 %v347_v20, %v354_v15  ;;  %v320_v31 = vmax.f32 %v306_v22, %v313_v17  ;;  %v343_v44 = vld [vmem:[%s593_s26 + $0x30] sm:$0x7f]  ;;  %v370_v46 = vld [vmem:[%s603_s29 + $0x28] sm:$0x7f] }
  0x23   : > { %382 = vst.msk [vmem:[%s630_s7 + $0x10] sm:$0x7f] %vm379_vm0, %v374_v24  ;;  %v348_v33 = vmax.f32 %v334_v26, %v341_v21  ;;  %v307_v35 = vmax.f32 %v293_v28, %v505_v23  ;;  %v357_v49 = vld [vmem:[%s593_s26 + $0x31] sm:$0x7f] }
  0x24   : > { %v375_v36 = vmax.f32 %v361_v29, %v368_v25  ;;  %v335_v38 = vmax.f32 %v320_v31, %v511_v27  ;;  %v371_v52 = vld [vmem:[%s603_s29 + $0x30] sm:$0x7f] }
  0x25   : > { %v362_v40 = vmax.f32 %v348_v33, %v355_v30  ;;  %v321_v42 = vmax.f32 %v307_v35, %v314_v32 }
  0x26   : > { %383 = vst.msk [vmem:[%s630_s7 + $0x18] sm:$0x7f] %vm379_vm0, %v375_v36  ;;  %v349_v43 = vmax.f32 %v335_v38, %v342_v34 }
  0x27   : > { %v376_v45 = vmax.f32 %v362_v40, %v369_v37  ;;  %v336_v47 = vmax.f32 %v321_v42, %v512_v39 }
  0x28   : > { %v363_v48 = vmax.f32 %v349_v43, %v356_v41 }
  0x29   : > { %384 = vst.msk [vmem:[%s630_s7 + $0x20] sm:$0x7f] %vm379_vm0, %v376_v45  ;;  %v350_v50 = vmax.f32 %v336_v47, %v343_v44 }
  0x2a   : > { %v377_v51 = vmax.f32 %v363_v48, %v370_v46 }
  0x2b   : > { %v364_v53 = vmax.f32 %v350_v50, %v357_v49 }
  0x2c   : > { %385 = vst.msk [vmem:[%s630_s7 + $0x28] sm:$0x7f] %vm379_vm0, %v377_v51 }
  0x2d   : > { %v378_v54 = vmax.f32 %v364_v53, %v371_v52 }
  0x2f   : > { %386 = vst.msk [vmem:[%s630_s7 + $0x30] sm:$0x7f] %vm379_vm0, %v378_v54 }
  0x30 PF: > { %s14_s15 = sadd.s32 1, %s534_s15  }
  0x31   : > { %p11_p4 = scmp.ge.s32.totalorder %s14_s15, 4  }
  0x33   :  { %13 = sbr.rel (!%p11_p4) target bundleno = 1 (0x1), region = 77 }

// kernel: inception_b_forward.6
= control target key start
LH: loop header
LB: loop body
LE: loop exit
PB: predicated region body
PF: predicated region fallthrough
CT: control target
= control target key end

     0   :  { %s828_s12 = smov 0   ;;  %s926_s0 = inlined_call_operand.vmem [shape: bf16[512,4], index: 0, kind: input, shape index: {}]   ;;  %s927_s1 = inlined_call_operand.vmem [shape: bf16[4,128], index: 1, kind: input, shape index: {}]   ;;  %s928_s2 = inlined_call_operand.vmem [shape: f32[1,128], index: 2, kind: input, shape index: {}]   ;;  %s929_s3 = inlined_call_operand.vmem [shape: bf16[512,128], index: 3, kind: output, shape index: {}]  }
   0x1 LB: > { %s586_s13 = sadd.s32 4294967295, %s806_s12   ;;  %p590_p0 = scmp.ge.s32.totalorder %s806_s12, 1  ;;  %s806_s12 = sphi %s828_s12, %s13_s12  }
   0x2   : > { %p138_p1 = scmp.lt.s32.totalorder %s806_s12, 3 }
   0x4   : > { %p139_p2 = pnand %p590_p0, %p138_p1 }
   0x5   : > { %s591_s16 = sshll.u32 (!%p139_p2), %s586_s13, 5 }
   0x6   : > { %142 = sbr.rel (%p139_p2) target bundleno = 213 (0xd5), region = 32  ;;  %p163_p3 = scmp.lt.s32.totalorder (!%p139_p2), %s591_s16, 63 }
   0xb   : > { %v207_v0 = vld [vmem:[%s927_s1] sm:$0x3]  ;;  %vm341_vm0 = vcmask 1041408   ;;  %s931_s16 = smov (!%p163_p3, %s591_s16), 63  ;;  %vm292_vm1 = vcmask 31744  }
   0xc   : > { %v343_v1 = vsel %vm341_vm0, %v207_v0, 0  ;;  %s592_s17 = sshll.u32 %s931_s16, 2  ;;  %v866_v20 = vld [vmem:[%s928_s2] ss:$0 sm:$0xff] }
   0xd   : > { %352 = vmatpush.bf16.msra.mxu0 %v343_v1  ;;  %788 = vmatpush.bf16.msra.mxu1 %v343_v1  ;;  %s166_s20 = scalar_lea.vmem %s926_s0, %s592_s17  ;;  %s877_s25 = scalar_lea.vmem %s929_s3, %s592_s17 }
   0xe   : > { %789 = vmatpush.bf16.msra.mxu2 %v343_v1  ;;  %790 = vmatpush.bf16.msra.mxu3 %v343_v1  ;;  %v677_v2 = vld [vmem:[%s166_s20] sm:$0xff]  ;;  %v678_v6 = vld [vmem:[%s166_s20 + $0x8] sm:$0xff]  ;;  %v679_v10 = vld [vmem:[%s166_s20 + $0x10] sm:$0xff] }
   0xf   : > { %v681_v3 = vld [vmem:[%s166_s20 + $0x20] sm:$0xff]  ;;  %v682_v7 = vld [vmem:[%s166_s20 + $0x28] sm:$0xff]  ;;  %v683_v11 = vld [vmem:[%s166_s20 + $0x30] sm:$0xff] }
  0x10   : > { %v685_v4 = vld [vmem:[%s166_s20 + $0x40] sm:$0xff]  ;;  %659 = vmatmul.msk.bf16.vlgmr.msra.gmra.mxu0 %vm292_vm1, %v677_v2  ;;  %663 = vmatmul.msk.bf16.vlgmr.msra.gmra.mxu1 %vm292_vm1, %v681_v3  ;;  %v686_v8 = vld [vmem:[%s166_s20 + $0x48] sm:$0xff]  ;;  %v687_v12 = vld [vmem:[%s166_s20 + $0x50] sm:$0xff] }
  0x11   : > { %v689_v5 = vld [vmem:[%s166_s20 + $0x60] sm:$0xff]  ;;  %667 = vmatmul.msk.bf16.vlgmr.msra.gmra.mxu2 %vm292_vm1, %v685_v4  ;;  %v690_v9 = vld [vmem:[%s166_s20 + $0x68] sm:$0xff]  ;;  %v691_v13 = vld [vmem:[%s166_s20 + $0x70] sm:$0xff] }
  0x12   : > { %671 = vmatmul.msk.bf16.vlgmr.msra.gmra.mxu3 %vm292_vm1, %v689_v5  ;;  %v680_v14 = vld [vmem:[%s166_s20 + $0x18] sm:$0xff] }
  0x13   : > { %v684_v15 = vld [vmem:[%s166_s20 + $0x38] sm:$0xff] }
  0x14   : > { %v688_v16 = vld [vmem:[%s166_s20 + $0x58] sm:$0xff] }
  0x15   : > { %v692_v17 = vld [vmem:[%s166_s20 + $0x78] sm:$0xff] }
  0x20   : > { %660 = vmatmul.msk.bf16.gmra.mxu0 %vm292_vm1, %v678_v6  ;;  %664 = vmatmul.msk.bf16.gmra.mxu1 %vm292_vm1, %v682_v7 }
  0x21   : > { %668 = vmatmul.msk.bf16.gmra.mxu2 %vm292_vm1, %v686_v8 }
  0x22   : > { %672 = vmatmul.msk.bf16.gmra.mxu3 %vm292_vm1, %v690_v9 }
  0x30   : > { %661 = vmatmul.msk.bf16.gmra.mxu0 %vm292_vm1, %v679_v10  ;;  %665 = vmatmul.msk.bf16.gmra.mxu1 %vm292_vm1, %v683_v11 }
  0x31   : > { %669 = vmatmul.msk.bf16.gmra.mxu2 %vm292_vm1, %v687_v12 }
  0x32   : > { %673 = vmatmul.msk.bf16.gmra.mxu3 %vm292_vm1, %v691_v13 }
  0x40   : > { %662 = vmatmul.msk.bf16.gmra.mxu0 %vm292_vm1, %v680_v14  ;;  %666 = vmatmul.msk.bf16.gmra.mxu1 %vm292_vm1, %v684_v15 }
  0x41   : > { %670 = vmatmul.msk.bf16.gmra.mxu2 %vm292_vm1, %v688_v16 }
  0x42   : > { %674 = vmatmul.msk.bf16.gmra.mxu3 %vm292_vm1, %v692_v17 }
  0x8d   : > { %v354_v18 = vpop.f32.mrf.mxu0  ;;  %v374_v19 = vpop.f32.mrf.mxu1 }
  0x8e   : > { %v355_v21 = vadd.f32 %v866_v20, %v354_v18  ;;  %v375_v22 = vadd.f32 %v866_v20, %v374_v19 }
  0x90   : > { %v434_v29 = vmax.f32 %v355_v21, 0.0  ;;  %v442_v30 = vmax.f32 %v375_v22, 0.0 }
  0x94   : > { %v394_v23 = vpop.f32.mrf.mxu2 }
  0x95   : > { %v414_v24 = vpop.f32.mrf.mxu3  ;;  %v356_v25 = vpop.f32.mrf.mxu0  ;;  %v395_v35 = vadd.f32 %v866_v20, %v394_v23 }
  0x96   : > { %v376_v26 = vpop.f32.mrf.mxu1  ;;  %v357_v27 = vadd.f32 %v866_v20, %v356_v25  ;;  %v415_v36 = vadd.f32 %v866_v20, %v414_v24 }
  0x97   : > { %v377_v28 = vadd.f32 %v866_v20, %v376_v26  ;;  %v450_v43 = vmax.f32 %v395_v35, 0.0 }
  0x98   : > { %v435_v31 = vmax.f32 %v357_v27, 0.0  ;;  %v458_v44 = vmax.f32 %v415_v36, 0.0 }
  0x99   : > { %v443_v32 = vmax.f32 %v377_v28, 0.0 }
  0x9a   : > { %v696_v33 = vpack.c.bf16 %v435_v31, %v434_v29 }
  0x9b   : > { %v716_v34 = vpack.c.bf16 %v443_v32, %v442_v30 }
  0x9c   : > { %697 = vst [vmem:[%s877_s25] sm:$0xff] %v696_v33   ;;  %v396_v37 = vpop.f32.mrf.mxu2 }
  0x9d   : > { %v416_v38 = vpop.f32.mrf.mxu3  ;;  %776 = vst [vmem:[%s877_s25 + $0x20] sm:$0xff] %v716_v34   ;;  %v397_v39 = vadd.f32 %v866_v20, %v396_v37  ;;  %v359_v41 = vpop.f32.mrf.mxu0 }
  0x9e   : > { %v417_v40 = vadd.f32 %v866_v20, %v416_v38  ;;  %v379_v42 = vpop.f32.mrf.mxu1  ;;  %v360_v49 = vadd.f32 %v866_v20, %v359_v41 }
  0x9f   : > { %v451_v45 = vmax.f32 %v397_v39, 0.0  ;;  %v380_v50 = vadd.f32 %v866_v20, %v379_v42 }
  0xa0   : > { %v459_v46 = vmax.f32 %v417_v40, 0.0  ;;  %v436_v57 = vmax.f32 %v360_v49, 0.0 }
  0xa1   : > { %v736_v47 = vpack.c.bf16 %v451_v45, %v450_v43  ;;  %v444_v58 = vmax.f32 %v380_v50, 0.0 }
  0xa2   : > { %v756_v48 = vpack.c.bf16 %v459_v46, %v458_v44 }
  0xa3   : > { %780 = vst [vmem:[%s877_s25 + $0x40] sm:$0xff] %v736_v47  }
  0xa4   : > { %784 = vst [vmem:[%s877_s25 + $0x60] sm:$0xff] %v756_v48   ;;  %v399_v51 = vpop.f32.mrf.mxu2 }
  0xa5   : > { %v419_v52 = vpop.f32.mrf.mxu3  ;;  %v361_v53 = vpop.f32.mrf.mxu0  ;;  %v400_v63 = vadd.f32 %v866_v20, %v399_v51 }
  0xa6   : > { %v381_v54 = vpop.f32.mrf.mxu1  ;;  %v362_v55 = vadd.f32 %v866_v20, %v361_v53  ;;  %v420_v0 = vadd.f32 %v866_v20, %v419_v52 }
  0xa7   : > { %v382_v56 = vadd.f32 %v866_v20, %v381_v54  ;;  %v452_v7 = vmax.f32 %v400_v63, 0.0 }
  0xa8   : > { %v437_v59 = vmax.f32 %v362_v55, 0.0  ;;  %v460_v8 = vmax.f32 %v420_v0, 0.0 }
  0xa9   : > { %v445_v60 = vmax.f32 %v382_v56, 0.0 }
  0xaa   : > { %v701_v61 = vpack.c.bf16 %v437_v59, %v436_v57 }
  0xab   : > { %v721_v62 = vpack.c.bf16 %v445_v60, %v444_v58 }
  0xac   : > { %773 = vst [vmem:[%s877_s25 + $0x8] sm:$0xff] %v701_v61   ;;  %v401_v1 = vpop.f32.mrf.mxu2 }
  0xad   : > { %v421_v2 = vpop.f32.mrf.mxu3  ;;  %777 = vst [vmem:[%s877_s25 + $0x28] sm:$0xff] %v721_v62   ;;  %v402_v3 = vadd.f32 %v866_v20, %v401_v1  ;;  %v364_v5 = vpop.f32.mrf.mxu0 }
  0xae   : > { %v422_v4 = vadd.f32 %v866_v20, %v421_v2  ;;  %v384_v6 = vpop.f32.mrf.mxu1  ;;  %v365_v13 = vadd.f32 %v866_v20, %v364_v5 }
  0xaf   : > { %v453_v9 = vmax.f32 %v402_v3, 0.0  ;;  %v385_v14 = vadd.f32 %v866_v20, %v384_v6 }
  0xb0   : > { %v461_v10 = vmax.f32 %v422_v4, 0.0  ;;  %v438_v22 = vmax.f32 %v365_v13, 0.0 }
  0xb1   : > { %v741_v11 = vpack.c.bf16 %v453_v9, %v452_v7  ;;  %v446_v23 = vmax.f32 %v385_v14, 0.0 }
  0xb2   : > { %v761_v12 = vpack.c.bf16 %v461_v10, %v460_v8 }
  0xb3   : > { %781 = vst [vmem:[%s877_s25 + $0x48] sm:$0xff] %v741_v11  }
  0xb4   : > { %785 = vst [vmem:[%s877_s25 + $0x68] sm:$0xff] %v761_v12   ;;  %v404_v15 = vpop.f32.mrf.mxu2 }
  0xb5   : > { %v424_v16 = vpop.f32.mrf.mxu3  ;;  %v366_v17 = vpop.f32.mrf.mxu0  ;;  %v405_v28 = vadd.f32 %v866_v20, %v404_v15 }
  0xb6   : > { %v386_v18 = vpop.f32.mrf.mxu1  ;;  %v367_v19 = vadd.f32 %v866_v20, %v366_v17  ;;  %v425_v29 = vadd.f32 %v866_v20, %v424_v16 }
  0xb7   : > { %v387_v21 = vadd.f32 %v866_v20, %v386_v18  ;;  %v454_v36 = vmax.f32 %v405_v28, 0.0 }
  0xb8   : > { %v439_v24 = vmax.f32 %v367_v19, 0.0  ;;  %v462_v37 = vmax.f32 %v425_v29, 0.0 }
  0xb9   : > { %v447_v25 = vmax.f32 %v387_v21, 0.0 }
  0xba   : > { %v706_v26 = vpack.c.bf16 %v439_v24, %v438_v22 }
  0xbb   : > { %v726_v27 = vpack.c.bf16 %v447_v25, %v446_v23 }
  0xbc   : > { %774 = vst [vmem:[%s877_s25 + $0x10] sm:$0xff] %v706_v26   ;;  %v406_v30 = vpop.f32.mrf.mxu2 }
  0xbd   : > { %v426_v31 = vpop.f32.mrf.mxu3  ;;  %778 = vst [vmem:[%s877_s25 + $0x30] sm:$0xff] %v726_v27   ;;  %v407_v32 = vadd.f32 %v866_v20, %v406_v30  ;;  %v369_v34 = vpop.f32.mrf.mxu0 }
  0xbe   : > { %v427_v33 = vadd.f32 %v866_v20, %v426_v31  ;;  %v389_v35 = vpop.f32.mrf.mxu1  ;;  %v370_v42 = vadd.f32 %v866_v20, %v369_v34 }
  0xbf   : > { %v455_v38 = vmax.f32 %v407_v32, 0.0  ;;  %v390_v43 = vadd.f32 %v866_v20, %v389_v35 }
  0xc0   : > { %v463_v39 = vmax.f32 %v427_v33, 0.0  ;;  %v440_v50 = vmax.f32 %v370_v42, 0.0 }
  0xc1   : > { %v746_v40 = vpack.c.bf16 %v455_v38, %v454_v36  ;;  %v448_v51 = vmax.f32 %v390_v43, 0.0 }
  0xc2   : > { %v766_v41 = vpack.c.bf16 %v463_v39, %v462_v37 }
  0xc3   : > { %782 = vst [vmem:[%s877_s25 + $0x50] sm:$0xff] %v746_v40  }
  0xc4   : > { %786 = vst [vmem:[%s877_s25 + $0x70] sm:$0xff] %v766_v41   ;;  %v409_v44 = vpop.f32.mrf.mxu2 }
  0xc5   : > { %v429_v45 = vpop.f32.mrf.mxu3  ;;  %v371_v46 = vpop.f32.mrf.mxu0  ;;  %v410_v56 = vadd.f32 %v866_v20, %v409_v44 }
  0xc6   : > { %v391_v47 = vpop.f32.mrf.mxu1  ;;  %v372_v48 = vadd.f32 %v866_v20, %v371_v46  ;;  %v430_v57 = vadd.f32 %v866_v20, %v429_v45 }
  0xc7   : > { %v392_v49 = vadd.f32 %v866_v20, %v391_v47  ;;  %v456_v62 = vmax.f32 %v410_v56, 0.0 }
  0xc8   : > { %v441_v52 = vmax.f32 %v372_v48, 0.0  ;;  %v464_v63 = vmax.f32 %v430_v57, 0.0 }
  0xc9   : > { %v449_v53 = vmax.f32 %v392_v49, 0.0 }
  0xca   : > { %v711_v54 = vpack.c.bf16 %v441_v52, %v440_v50 }
  0xcb   : > { %v731_v55 = vpack.c.bf16 %v449_v53, %v448_v51 }
  0xcc   : > { %775 = vst [vmem:[%s877_s25 + $0x18] sm:$0xff] %v711_v54   ;;  %v411_v58 = vpop.f32.mrf.mxu2 }
  0xcd   : > { %v431_v59 = vpop.f32.mrf.mxu3  ;;  %779 = vst [vmem:[%s877_s25 + $0x38] sm:$0xff] %v731_v55   ;;  %v412_v60 = vadd.f32 %v866_v20, %v411_v58 }
  0xce   : > { %v432_v61 = vadd.f32 %v866_v20, %v431_v59 }
  0xcf   : > { %v457_v0 = vmax.f32 %v412_v60, 0.0 }
  0xd0   : > { %v465_v1 = vmax.f32 %v432_v61, 0.0 }
  0xd1   : > { %v751_v2 = vpack.c.bf16 %v457_v0, %v456_v62 }
  0xd2   : > { %v771_v3 = vpack.c.bf16 %v465_v1, %v464_v63 }
  0xd3   : > { %783 = vst [vmem:[%s877_s25 + $0x58] sm:$0xff] %v751_v2  }
  0xd4   : > { %787 = vst [vmem:[%s877_s25 + $0x78] sm:$0xff] %v771_v3  }
  0xd5 PF: > { %s13_s12 = sadd.s32 1, %s806_s12  }
  0xd6   : > { %p10_p4 = scmp.ge.s32.totalorder %s13_s12, 4  }
  0xd8   :  { %12 = sbr.rel (!%p10_p4) target bundleno = 1 (0x1), region = 62 }

// kernel: inception_b_forward.7
= control target key start
LH: loop header
LB: loop body
LE: loop exit
PB: predicated region body
PF: predicated region fallthrough
CT: control target
= control target key end

     0   :  { %s2376_s12 = smov 0   ;;  %s2834_s0 = inlined_call_operand.vmem [shape: bf16[512,576], index: 0, kind: input, shape index: {}]   ;;  %s2835_s1 = inlined_call_operand.vmem [shape: bf16[576,128], index: 1, kind: input, shape index: {}]   ;;  %s2836_s2 = inlined_call_operand.vmem [shape: f32[1,128], index: 2, kind: input, shape index: {}]   ;;  %s2837_s3 = inlined_call_operand.vmem [shape: bf16[512,128], index: 3, kind: output, shape index: {}]  }
   0x1 LB: > { %s1612_s13 = sadd.s32 4294967295, %s2354_s12   ;;  %p1616_p0 = scmp.ge.s32.totalorder %s2354_s12, 1  ;;  %s2354_s12 = sphi %s2376_s12, %s13_s12  }
   0x2   : > { %p139_p1 = scmp.lt.s32.totalorder %s2354_s12, 3 }
   0x4   : > { %p140_p2 = pnand %p1616_p0, %p139_p1 }
   0x5   : > { %s1617_s20 = sshll.u32 (!%p140_p2), %s1612_s13, 5 }
   0x6   : > { %143 = sbr.rel (%p140_p2) target bundleno = 498 (0x1f2), region = 32  ;;  %p165_p3 = scmp.lt.s32.totalorder (!%p140_p2), %s1617_s20, 63 }
   0xb   : > { %v2190_v0 = vld [vmem:[%s2835_s1 + $0x38] sm:$0xff]  ;;  %v2189_v1 = vld [vmem:[%s2835_s1 + $0x30] sm:$0xff]  ;;  %v2188_v2 = vld [vmem:[%s2835_s1 + $0x28] sm:$0xff]  ;;  %s2839_s20 = smov (!%p165_p3, %s1617_s20), 63  ;;  %vm966_vm0 = vcmask 523264  }
   0xc   : > { %2314 = vmatpush.bf16.msra.mxu1 %v2190_v0  ;;  %2315 = vmatpush.bf16.msra.mxu2 %v2190_v0  ;;  %v2187_v3 = vld [vmem:[%s2835_s1 + $0x20] sm:$0xff]  ;;  %v2186_v4 = vld [vmem:[%s2835_s1 + $0x18] sm:$0xff]  ;;  %v2185_v5 = vld [vmem:[%s2835_s1 + $0x10] sm:$0xff]  ;;  %s2338_s27 = smul.u32 20, %s2839_s20  ;;  %s1620_s19 = sshll.u32 %s2839_s20, 2 }
   0xd   : > { %2316 = vmatpush.bf16.msra.mxu3 %v2190_v0  ;;  %1015 = vmatpush.bf16.msra.mxu0 %v2190_v0  ;;  %v2184_v6 = vld [vmem:[%s2835_s1 + $0x8] sm:$0xff]  ;;  %v2183_v7 = vld [vmem:[%s2835_s1] sm:$0xff]  ;;  %v2206_v16 = vld [vmem:[%s2835_s1 + $0xb8] sm:$0xff]  ;;  %s2725_s20 = scalar_lea.vmem %s2837_s3, %s1620_s19 }
   0xe   : > { %s2411_s5 = scalar_lea.vmem %s2834_s0, %s2338_s27  ;;  %v2214_v17 = vld [vmem:[%s2835_s1 + $0xf8] sm:$0xff]  ;;  %v2205_v24 = vld [vmem:[%s2835_s1 + $0xb0] sm:$0xff]  ;;  %v2204_v28 = vld [vmem:[%s2835_s1 + $0xa8] sm:$0xff] }
   0xf   : > { %v1703_v8 = vld [vmem:[%s2411_s5 + $0xa0] sm:$0xf]  ;;  %v2125_v9 = vld [vmem:[%s2411_s5 + $0xb0] sm:$0xf0]  ;;  %v2198_v22 = vld [vmem:[%s2835_s1 + $0x78] sm:$0xff] }
  0x10   : > { %2317 = vmatpush.bf16.msra.mxu1 %v2189_v1  ;;  %2318 = vmatpush.bf16.msra.mxu2 %v2189_v1  ;;  %v1783_v10 = vld [vmem:[%s2411_s5 + $0x140] sm:$0xf]  ;;  %v2145_v11 = vld [vmem:[%s2411_s5 + $0x150] sm:$0xf0]  ;;  %v1704_v18 = vor.u32 %v2125_v9, %v1703_v8  ;;  %v2218_v23 = vld [vmem:[%s2835_s1 + $0x118] sm:$0xff] }
  0x11   : > { %2319 = vmatpush.bf16.msra.mxu3 %v2189_v1  ;;  %1016 = vmatpush.bf16.msra.mxu0 %v2189_v1  ;;  %v1863_v12 = vld [vmem:[%s2411_s5 + $0x1e0] sm:$0xf]  ;;  %v2165_v13 = vld [vmem:[%s2411_s5 + $0x1f0] sm:$0xf0]  ;;  %v1784_v19 = vor.u32 %v2145_v11, %v1783_v10  ;;  %v2212_v29 = vld [vmem:[%s2835_s1 + $0xe8] sm:$0xff] }
  0x12   : > { %v1623_v14 = vld [vmem:[%s2411_s5] sm:$0xf]  ;;  %v2105_v15 = vld [vmem:[%s2411_s5 + $0x10] sm:$0xf0]  ;;  %v1864_v20 = vor.u32 %v2165_v13, %v1863_v12  ;;  %v2196_v30 = vld [vmem:[%s2835_s1 + $0x68] sm:$0xff] }
  0x13   : > { %v1624_v21 = vor.u32 %v2105_v15, %v1623_v14  ;;  %v2213_v25 = vld [vmem:[%s2835_s1 + $0xf0] sm:$0xff]  ;;  %v2216_v31 = vld [vmem:[%s2835_s1 + $0x108] sm:$0xff]  ;;  %v2203_v32 = vld [vmem:[%s2835_s1 + $0xa0] sm:$0xff] }
  0x14   : > { %2320 = vmatpush.bf16.msra.mxu1 %v2188_v2  ;;  %2321 = vmatpush.bf16.msra.mxu2 %v2188_v2  ;;  %v2197_v26 = vld [vmem:[%s2835_s1 + $0x70] sm:$0xff]  ;;  %v2211_v33 = vld [vmem:[%s2835_s1 + $0xe0] sm:$0xff]  ;;  %v1723_v34 = vld [vmem:[%s2411_s5 + $0xc8] sm:$0xf] }
  0x15   : > { %2322 = vmatpush.bf16.msra.mxu3 %v2188_v2  ;;  %1017 = vmatpush.bf16.msra.mxu0 %v2188_v2  ;;  %v2217_v27 = vld [vmem:[%s2835_s1 + $0x110] sm:$0xff]  ;;  %v2130_v35 = vld [vmem:[%s2411_s5 + $0xd8] sm:$0xf0]  ;;  %v1803_v36 = vld [vmem:[%s2411_s5 + $0x168] sm:$0xf] }
  0x16   : > { %v2150_v37 = vld [vmem:[%s2411_s5 + $0x178] sm:$0xf0]  ;;  %v1883_v38 = vld [vmem:[%s2411_s5 + $0x208] sm:$0xf]  ;;  %v2195_v42 = vld [vmem:[%s2835_s1 + $0x60] sm:$0xff]  ;;  %v1724_v45 = vor.u32 %v2130_v35, %v1723_v34 }
  0x17   : > { %v2170_v39 = vld [vmem:[%s2411_s5 + $0x218] sm:$0xf0]  ;;  %v1643_v40 = vld [vmem:[%s2411_s5 + $0x28] sm:$0xf]  ;;  %v1804_v46 = vor.u32 %v2150_v37, %v1803_v36  ;;  %v2201_v50 = vld [vmem:[%s2835_s1 + $0x90] sm:$0xff] }
  0x18   : > { %2323 = vmatpush.bf16.msra.mxu1 %v2187_v3  ;;  %2324 = vmatpush.bf16.msra.mxu2 %v2187_v3  ;;  %v2110_v41 = vld [vmem:[%s2411_s5 + $0x38] sm:$0xf0]  ;;  %v1884_v47 = vor.u32 %v2170_v39, %v1883_v38  ;;  %v2209_v51 = vld [vmem:[%s2835_s1 + $0xd0] sm:$0xff]  ;;  %v2215_v53 = vld [vmem:[%s2835_s1 + $0x100] sm:$0xff] }
  0x19   : > { %2325 = vmatpush.bf16.msra.mxu3 %v2187_v3  ;;  %1018 = vmatpush.bf16.msra.mxu0 %v2187_v3  ;;  %v2202_v43 = vld [vmem:[%s2835_s1 + $0x98] sm:$0xff]  ;;  %v1644_v48 = vor.u32 %v2110_v41, %v1643_v40  ;;  %v2193_v52 = vld [vmem:[%s2835_s1 + $0x50] sm:$0xff]  ;;  %v2200_v54 = vld [vmem:[%s2835_s1 + $0x88] sm:$0xff] }
  0x1a   : > { %v2210_v44 = vld [vmem:[%s2835_s1 + $0xd8] sm:$0xff]  ;;  %v2208_v55 = vld [vmem:[%s2835_s1 + $0xc8] sm:$0xff]  ;;  %v2199_v57 = vld [vmem:[%s2835_s1 + $0x80] sm:$0xff] }
  0x1b   : > { %v2194_v49 = vld [vmem:[%s2835_s1 + $0x58] sm:$0xff]  ;;  %v2192_v56 = vld [vmem:[%s2835_s1 + $0x48] sm:$0xff]  ;;  %v2207_v58 = vld [vmem:[%s2835_s1 + $0xc0] sm:$0xff] }
  0x1c   : > { %2326 = vmatpush.bf16.msra.mxu1 %v2186_v4  ;;  %2327 = vmatpush.bf16.msra.mxu2 %v2186_v4  ;;  %v1743_v59 = vld [vmem:[%s2411_s5 + $0xf0] sm:$0xf]  ;;  %v2135_v60 = vld [vmem:[%s2411_s5 + $0x100] sm:$0xf0]  ;;  %v1763_v8 = vld [vmem:[%s2411_s5 + $0x118] sm:$0xf] }
  0x1d   : > { %2328 = vmatpush.bf16.msra.mxu3 %v2186_v4  ;;  %1019 = vmatpush.bf16.msra.mxu0 %v2186_v4  ;;  %v1823_v61 = vld [vmem:[%s2411_s5 + $0x190] sm:$0xf]  ;;  %v2155_v62 = vld [vmem:[%s2411_s5 + $0x1a0] sm:$0xf0]  ;;  %v1744_v4 = vor.u32 %v2135_v60, %v1743_v59  ;;  %v2140_v9 = vld [vmem:[%s2411_s5 + $0x128] sm:$0xf0] }
  0x1e   : > { %v1903_v63 = vld [vmem:[%s2411_s5 + $0x230] sm:$0xf]  ;;  %v2175_v0 = vld [vmem:[%s2411_s5 + $0x240] sm:$0xf0]  ;;  %v1843_v10 = vld [vmem:[%s2411_s5 + $0x1b8] sm:$0xf] }
  0x1f   : > { %v1663_v1 = vld [vmem:[%s2411_s5 + $0x50] sm:$0xf]  ;;  %v2115_v2 = vld [vmem:[%s2411_s5 + $0x60] sm:$0xf0]  ;;  %v2160_v11 = vld [vmem:[%s2411_s5 + $0x1c8] sm:$0xf0] }
  0x20   : > { %2329 = vmatpush.bf16.msra.mxu1 %v2185_v5  ;;  %2330 = vmatpush.bf16.msra.mxu2 %v2185_v5  ;;  %v2191_v3 = vld [vmem:[%s2835_s1 + $0x40] sm:$0xff]  ;;  %v1923_v12 = vld [vmem:[%s2411_s5 + $0x258] sm:$0xf]  ;;  %v2180_v13 = vld [vmem:[%s2411_s5 + $0x268] sm:$0xf0] }
  0x21   : > { %2331 = vmatpush.bf16.msra.mxu3 %v2185_v5  ;;  %1020 = vmatpush.bf16.msra.mxu0 %v2185_v5  ;;  %v1824_v5 = vor.u32 %v2155_v62, %v1823_v61  ;;  %v1683_v14 = vld [vmem:[%s2411_s5 + $0x78] sm:$0xf]  ;;  %v2120_v15 = vld [vmem:[%s2411_s5 + $0x88] sm:$0xf0]  ;;  %v1651_v34 = vld [vmem:[%s2411_s5 + $0x30] sm:$0xf] }
  0x22   : > { %v2111_v35 = vld [vmem:[%s2411_s5 + $0x40] sm:$0xf0]  ;;  %v2109_v36 = vld [vmem:[%s2411_s5 + $0x34] sm:$0xf]  ;;  %v1653_v37 = vld [vmem:[%s2411_s5 + $0x44] sm:$0xf0] }
  0x23   : > { %v1659_v38 = vld [vmem:[%s2411_s5 + $0x38] sm:$0xf]  ;;  %v2112_v39 = vld [vmem:[%s2411_s5 + $0x48] sm:$0xf0]  ;;  %v1652_v41 = vor.u32 %v2111_v35, %v1651_v34  ;;  %v2121_v59 = vld [vmem:[%s2411_s5 + $0x90] sm:$0xf0] }
  0x24   : > { %2332 = vmatpush.bf16.msra.mxu1 %v2184_v6  ;;  %2333 = vmatpush.bf16.msra.mxu2 %v2184_v6  ;;  %v2119_v60 = vld [vmem:[%s2411_s5 + $0x84] sm:$0xf]  ;;  %v1693_v61 = vld [vmem:[%s2411_s5 + $0x94] sm:$0xf0]  ;;  %v1699_v62 = vld [vmem:[%s2411_s5 + $0x88] sm:$0xf] }
  0x25   : > { %2334 = vmatpush.bf16.msra.mxu3 %v2184_v6  ;;  %1021 = vmatpush.bf16.msra.mxu0 %v2184_v6  ;;  %v1904_v6 = vor.u32 %v2175_v0, %v1903_v63  ;;  %v2122_v63 = vld [vmem:[%s2411_s5 + $0x98] sm:$0xf0]  ;;  %v2132_v34 = vld [vmem:[%s2411_s5 + $0xe8] sm:$0xf0] }
  0x28   : > { %2335 = vmatpush.bf16.msra.mxu1 %v2183_v7  ;;  %2336 = vmatpush.bf16.msra.mxu2 %v2183_v7 }
  0x29   : > { %2337 = vmatpush.bf16.msra.mxu3 %v2183_v7  ;;  %1022 = vmatpush.bf16.msra.mxu0 %v2183_v7  ;;  %v1664_v7 = vor.u32 %v2115_v2, %v1663_v1  ;;  %v1696_v2 = vor.u32 %v2119_v60, %v1693_v61  ;;  %v2137_v60 = vld [vmem:[%s2411_s5 + $0x110] sm:$0xf0] }
  0x2b   : > { %1043 = vmatmul.bf16.vlgmr.msra.gmra.mxu1 %v1704_v18  ;;  %1063 = vmatmul.bf16.vlgmr.msra.gmra.mxu2 %v1784_v19  ;;  %v1924_v18 = vor.u32 %v2180_v13, %v1923_v12  ;;  %v1684_v19 = vor.u32 %v2120_v15, %v1683_v14  ;;  %v2127_v12 = vld [vmem:[%s2411_s5 + $0xc0] sm:$0xf0] }
  0x2c   : > { %1193 = vmatpush.bf16.msrb.mxu2 %v2206_v16  ;;  %1083 = vmatmul.bf16.vlgmr.msra.gmra.mxu3 %v1864_v20  ;;  %v1764_v16 = vor.u32 %v2140_v9, %v1763_v8  ;;  %v2103_v20 = vld [vmem:[%s2411_s5 + $0x4] sm:$0xf]  ;;  %v2126_v8 = vld [vmem:[%s2411_s5 + $0xb8] sm:$0xf0]  ;;  %v2124_v9 = vld [vmem:[%s2411_s5 + $0xac] sm:$0xf] }
  0x2d   : > { %1282 = vmatpush.bf16.msrb.mxu3 %v2214_v17  ;;  %1023 = vmatmul.bf16.vlgmr.msra.gmra.mxu0 %v1624_v21  ;;  %v1844_v17 = vor.u32 %v2160_v11, %v1843_v10  ;;  %v1625_v21 = vld [vmem:[%s2411_s5 + $0x14] sm:$0xf0]  ;;  %v1713_v10 = vld [vmem:[%s2411_s5 + $0xbc] sm:$0xf0]  ;;  %v1719_v11 = vld [vmem:[%s2411_s5 + $0xb0] sm:$0xf] }
  0x2e   : > { %1104 = vmatpush.bf16.msrb.mxu1 %v2198_v22  ;;  %1375 = vmatpush.bf16.msrb.mxu0 %v2218_v23  ;;  %v1631_v22 = vld [vmem:[%s2411_s5 + $0x8] sm:$0xf]  ;;  %v2106_v23 = vld [vmem:[%s2411_s5 + $0x18] sm:$0xf0] }
  0x30   : > { %1194 = vmatpush.bf16.msrb.mxu2 %v2205_v24  ;;  %v2104_v24 = vld [vmem:[%s2411_s5 + $0xc] sm:$0xf] }
  0x31   : > { %1283 = vmatpush.bf16.msrb.mxu3 %v2213_v25  ;;  %v1633_v25 = vld [vmem:[%s2411_s5 + $0x1c] sm:$0xf0] }
  0x32   : > { %1105 = vmatpush.bf16.msrb.mxu1 %v2197_v26  ;;  %1376 = vmatpush.bf16.msrb.mxu0 %v2217_v27  ;;  %v1639_v26 = vld [vmem:[%s2411_s5 + $0x10] sm:$0xf]  ;;  %v2107_v27 = vld [vmem:[%s2411_s5 + $0x20] sm:$0xf0] }
  0x34   : > { %1195 = vmatpush.bf16.msrb.mxu2 %v2204_v28  ;;  %v1628_v28 = vor.u32 %v2103_v20, %v1625_v21 }
  0x35   : > { %1284 = vmatpush.bf16.msrb.mxu3 %v2212_v29  ;;  %v1632_v29 = vor.u32 %v2106_v23, %v1631_v22 }
  0x36   : > { %1106 = vmatpush.bf16.msrb.mxu1 %v2196_v30  ;;  %1377 = vmatpush.bf16.msrb.mxu0 %v2216_v31  ;;  %v1636_v30 = vor.u32 %v2104_v24, %v1633_v25  ;;  %v1640_v31 = vor.u32 %v2107_v27, %v1639_v26  ;;  %v2128_v27 = vld [vmem:[%s2411_s5 + $0xcc] sm:$0xf] }
  0x38   : > { %1196 = vmatpush.bf16.msrb.mxu2 %v2203_v32  ;;  %v2108_v32 = vld [vmem:[%s2411_s5 + $0x2c] sm:$0xf] }
  0x39   : > { %1285 = vmatpush.bf16.msrb.mxu3 %v2211_v33  ;;  %v1645_v33 = vld [vmem:[%s2411_s5 + $0x3c] sm:$0xf0] }
  0x3a   : > { %1107 = vmatpush.bf16.msrb.mxu1 %v2195_v42  ;;  %1378 = vmatpush.bf16.msrb.mxu0 %v2215_v53  ;;  %v1648_v40 = vor.u32 %v2108_v32, %v1645_v33  ;;  %v1656_v42 = vor.u32 %v2109_v36, %v1653_v37  ;;  %v1733_v32 = vld [vmem:[%s2411_s5 + $0xe4] sm:$0xf0]  ;;  %v1739_v33 = vld [vmem:[%s2411_s5 + $0xd8] sm:$0xf] }
  0x3b   : > { %1048 = vmatmul.bf16.gmra.mxu1 %v1724_v45  ;;  %1068 = vmatmul.bf16.gmra.mxu2 %v1804_v46  ;;  %v1665_v45 = vld [vmem:[%s2411_s5 + $0x64] sm:$0xf0]  ;;  %v1671_v46 = vld [vmem:[%s2411_s5 + $0x58] sm:$0xf] }
  0x3c   : > { %1197 = vmatpush.bf16.msrb.mxu2 %v2202_v43  ;;  %1088 = vmatmul.bf16.gmra.mxu3 %v1884_v47  ;;  %v1660_v43 = vor.u32 %v2112_v39, %v1659_v38  ;;  %v2116_v47 = vld [vmem:[%s2411_s5 + $0x68] sm:$0xf0] }
  0x3d   : > { %1286 = vmatpush.bf16.msrb.mxu3 %v2210_v44  ;;  %1028 = vmatmul.bf16.gmra.mxu0 %v1644_v48  ;;  %v2113_v44 = vld [vmem:[%s2411_s5 + $0x54] sm:$0xf]  ;;  %v2114_v48 = vld [vmem:[%s2411_s5 + $0x5c] sm:$0xf]  ;;  %v1672_v53 = vor.u32 %v2116_v47, %v1671_v46 }
  0x3e   : > { %1108 = vmatpush.bf16.msrb.mxu1 %v2194_v49  ;;  %v1673_v49 = vld [vmem:[%s2411_s5 + $0x6c] sm:$0xf0] }
  0x40   : > { %1198 = vmatpush.bf16.msrb.mxu2 %v2201_v50  ;;  %v1679_v50 = vld [vmem:[%s2411_s5 + $0x60] sm:$0xf] }
  0x41   : > { %1287 = vmatpush.bf16.msrb.mxu3 %v2209_v51  ;;  %v2117_v51 = vld [vmem:[%s2411_s5 + $0x70] sm:$0xf0] }
  0x42   : > { %1109 = vmatpush.bf16.msrb.mxu1 %v2193_v52  ;;  %v1668_v52 = vor.u32 %v2113_v44, %v1665_v45 }
  0x44   : > { %1199 = vmatpush.bf16.msrb.mxu2 %v2200_v54  ;;  %v1676_v54 = vor.u32 %v2114_v48, %v1673_v49 }
  0x45   : > { %1288 = vmatpush.bf16.msrb.mxu3 %v2208_v55  ;;  %v1680_v55 = vor.u32 %v2117_v51, %v1679_v50 }
  0x46   : > { %1110 = vmatpush.bf16.msrb.mxu1 %v2192_v56  ;;  %v2118_v56 = vld [vmem:[%s2411_s5 + $0x7c] sm:$0xf] }
  0x48   : > { %1200 = vmatpush.bf16.msrb.mxu2 %v2199_v57  ;;  %v1685_v57 = vld [vmem:[%s2411_s5 + $0x8c] sm:$0xf0] }
  0x49   : > { %1289 = vmatpush.bf16.msrb.mxu3 %v2207_v58  ;;  %v1691_v58 = vld [vmem:[%s2411_s5 + $0x80] sm:$0xf]  ;;  %v1688_v0 = vor.u32 %v2118_v56, %v1685_v57  ;;  %v2136_v56 = vld [vmem:[%s2411_s5 + $0x108] sm:$0xf0]  ;;  %v2134_v57 = vld [vmem:[%s2411_s5 + $0xfc] sm:$0xf] }
  0x4a   : > { %1111 = vmatpush.bf16.msrb.mxu1 %v2191_v3  ;;  %v1692_v1 = vor.u32 %v2121_v59, %v1691_v58  ;;  %v1700_v3 = vor.u32 %v2122_v63, %v1699_v62  ;;  %v1753_v58 = vld [vmem:[%s2411_s5 + $0x10c] sm:$0xf0]  ;;  %v1759_v59 = vld [vmem:[%s2411_s5 + $0x100] sm:$0xf] }
  0x4b   : > { %1053 = vmatmul.bf16.gmra.mxu1 %v1744_v4  ;;  %1073 = vmatmul.bf16.gmra.mxu2 %v1824_v5  ;;  %v2571_v4 = vld [vmem:[%s2836_s2] ss:$0 sm:$0xff]  ;;  %v2123_v5 = vld [vmem:[%s2411_s5 + $0xa4] sm:$0xf] }
  0x4c   : > { %1093 = vmatmul.bf16.gmra.mxu3 %v1904_v6  ;;  %v1705_v6 = vld [vmem:[%s2411_s5 + $0xb4] sm:$0xf0] }
  0x4d   : > { %1033 = vmatmul.bf16.gmra.mxu0 %v1664_v7  ;;  %v1711_v7 = vld [vmem:[%s2411_s5 + $0xa8] sm:$0xf]  ;;  %v1708_v13 = vor.u32 %v2123_v5, %v1705_v6  ;;  %v1756_v5 = vor.u32 %v2134_v57, %v1753_v58  ;;  %v1760_v6 = vor.u32 %v2137_v60, %v1759_v59  ;;  %v1785_v57 = vld [vmem:[%s2411_s5 + $0x154] sm:$0xf0]  ;;  %v2146_v59 = vld [vmem:[%s2411_s5 + $0x158] sm:$0xf0] }
  0x4e   : > { %v1712_v14 = vor.u32 %v2126_v8, %v1711_v7  ;;  %v1791_v58 = vld [vmem:[%s2411_s5 + $0x148] sm:$0xf]  ;;  %v2144_v60 = vld [vmem:[%s2411_s5 + $0x14c] sm:$0xf] }
  0x5b   : > { %1058 = vmatmul.bf16.gmra.mxu1 %v1764_v16  ;;  %1078 = vmatmul.bf16.gmra.mxu2 %v1844_v17  ;;  %v1716_v16 = vor.u32 %v2124_v9, %v1713_v10  ;;  %v1720_v17 = vor.u32 %v2127_v12, %v1719_v11 }
  0x5c   : > { %1098 = vmatmul.bf16.gmra.mxu3 %v1924_v18 }
  0x5d   : > { %1038 = vmatmul.bf16.gmra.mxu0 %v1684_v19 }
  0x6b   : > { %1112 = vmatmul.bf16.vlgmr.msrb.gmra.mxu1 %v1628_v28  ;;  %1201 = vmatmul.bf16.vlgmr.msrb.gmra.mxu2 %v1632_v29  ;;  %v1725_v28 = vld [vmem:[%s2411_s5 + $0xdc] sm:$0xf0]  ;;  %v1731_v29 = vld [vmem:[%s2411_s5 + $0xd0] sm:$0xf] }
  0x6c   : > { %1290 = vmatmul.bf16.vlgmr.msrb.gmra.mxu3 %v1636_v30  ;;  %v2131_v30 = vld [vmem:[%s2411_s5 + $0xe0] sm:$0xf0]  ;;  %v1728_v38 = vor.u32 %v2128_v27, %v1725_v28  ;;  %v1773_v27 = vld [vmem:[%s2411_s5 + $0x134] sm:$0xf0]  ;;  %v1779_v28 = vld [vmem:[%s2411_s5 + $0x128] sm:$0xf] }
  0x6d   : > { %2085 = vmatmul.msk.bf16.vlgmr.msrb.gmra.mxu0 %vm966_vm0, %v1640_v31  ;;  %v2129_v31 = vld [vmem:[%s2411_s5 + $0xd4] sm:$0xf]  ;;  %v1732_v39 = vor.u32 %v2131_v30, %v1731_v29  ;;  %v2142_v29 = vld [vmem:[%s2411_s5 + $0x138] sm:$0xf0] }
  0x7b   : > { %1117 = vmatmul.bf16.gmra.mxu1 %v1648_v40  ;;  %1206 = vmatmul.bf16.gmra.mxu2 %v1652_v41 }
  0x7c   : > { %1295 = vmatmul.bf16.gmra.mxu3 %v1656_v42  ;;  %v1736_v42 = vor.u32 %v2129_v31, %v1733_v32 }
  0x7d   : > { %2086 = vmatmul.msk.bf16.gmra.mxu0 %vm966_vm0, %v1660_v43  ;;  %v1740_v43 = vor.u32 %v2132_v34, %v1739_v33 }
  0x8b   : > { %1122 = vmatmul.bf16.gmra.mxu1 %v1668_v52  ;;  %1211 = vmatmul.bf16.gmra.mxu2 %v1672_v53  ;;  %v2133_v53 = vld [vmem:[%s2411_s5 + $0xf4] sm:$0xf] }
  0x8c   : > { %1300 = vmatmul.bf16.gmra.mxu3 %v1676_v54  ;;  %v1745_v54 = vld [vmem:[%s2411_s5 + $0x104] sm:$0xf0] }
  0x8d   : > { %2087 = vmatmul.msk.bf16.gmra.mxu0 %vm966_vm0, %v1680_v55  ;;  %v1751_v55 = vld [vmem:[%s2411_s5 + $0xf8] sm:$0xf] }
  0x9b   : > { %1127 = vmatmul.bf16.gmra.mxu1 %v1688_v0  ;;  %1216 = vmatmul.bf16.gmra.mxu2 %v1692_v1  ;;  %v1748_v0 = vor.u32 %v2133_v53, %v1745_v54  ;;  %v1752_v1 = vor.u32 %v2136_v56, %v1751_v55  ;;  %v2143_v56 = vld [vmem:[%s2411_s5 + $0x144] sm:$0xf] }
  0x9c   : > { %1305 = vmatmul.bf16.gmra.mxu3 %v1696_v2 }
  0x9d   : > { %2088 = vmatmul.msk.bf16.gmra.mxu0 %vm966_vm0, %v1700_v3 }
  0xa8   : > { %v1044_v15 = vpop.f32.mrf.mxu1 }
  0xa9   : > { %v2582_v18 = vadd.f32 %v2571_v4, %v1044_v15 }
  0xaa   : > { %v2584_v19 = vpop.f32.mrf.mxu0 }
  0xab   : > { %1132 = vmatmul.bf16.gmra.mxu1 %v1708_v13  ;;  %1221 = vmatmul.bf16.gmra.mxu2 %v1712_v14 }
  0xac   : > { %1310 = vmatmul.bf16.gmra.mxu3 %v1716_v16  ;;  %v2138_v16 = vld [vmem:[%s2411_s5 + $0x11c] sm:$0xf] }
  0xad   : > { %2089 = vmatmul.msk.bf16.gmra.mxu0 %vm966_vm0, %v1720_v17  ;;  %v1765_v17 = vld [vmem:[%s2411_s5 + $0x12c] sm:$0xf0] }
  0xae   : > { %v1064_v20 = vpop.f32.mrf.mxu2  ;;  %v1768_v33 = vor.u32 %v2138_v16, %v1765_v17 }
  0xaf   : > { %v2588_v21 = vadd.f32 %v2571_v4, %v1064_v20  ;;  %v1084_v22 = vpop.f32.mrf.mxu3  ;;  %v1771_v20 = vld [vmem:[%s2411_s5 + $0x120] sm:$0xf] }
  0xb0   : > { %v2591_v23 = vadd.f32 %v2571_v4, %v1084_v22  ;;  %v1046_v24 = vpop.f32.mrf.mxu1  ;;  %v2141_v22 = vld [vmem:[%s2411_s5 + $0x130] sm:$0xf0] }
  0xb1   : > { %v2594_v25 = vadd.f32 %v2571_v4, %v1046_v24  ;;  %v2139_v24 = vld [vmem:[%s2411_s5 + $0x124] sm:$0xf]  ;;  %v1772_v34 = vor.u32 %v2141_v22, %v1771_v20  ;;  %v1025_v22 = vadd.f32 %v2571_v4, %v2584_v19  ;;  %v1813_v19 = vld [vmem:[%s2411_s5 + $0x184] sm:$0xf0] }
  0xb2   : > { %v2596_v26 = vpop.f32.mrf.mxu0 }
  0xb6   : > { %v1066_v35 = vpop.f32.mrf.mxu2 }
  0xb7   : > { %v2607_v36 = vadd.f32 %v2571_v4, %v1066_v35  ;;  %v1086_v37 = vpop.f32.mrf.mxu3 }
  0xb8   : > { %v2610_v40 = vadd.f32 %v2571_v4, %v1086_v37  ;;  %v1049_v41 = vpop.f32.mrf.mxu1 }
  0xb9   : > { %v2613_v44 = vadd.f32 %v2571_v4, %v1049_v41 }
  0xba   : > { %v2615_v45 = vpop.f32.mrf.mxu0 }
  0xbb   : > { %1137 = vmatmul.bf16.gmra.mxu1 %v1728_v38  ;;  %1226 = vmatmul.bf16.gmra.mxu2 %v1732_v39  ;;  %v1776_v38 = vor.u32 %v2139_v24, %v1773_v27  ;;  %v1780_v39 = vor.u32 %v2142_v29, %v1779_v28 }
  0xbc   : > { %1315 = vmatmul.bf16.gmra.mxu3 %v1736_v42 }
  0xbd   : > { %2090 = vmatmul.msk.bf16.gmra.mxu0 %vm966_vm0, %v1740_v43 }
  0xbe   : > { %v1069_v46 = vpop.f32.mrf.mxu2 }
  0xbf   : > { %v2619_v47 = vadd.f32 %v2571_v4, %v1069_v46  ;;  %v1089_v48 = vpop.f32.mrf.mxu3 }
  0xc0   : > { %v2622_v49 = vadd.f32 %v2571_v4, %v1089_v48  ;;  %v1051_v50 = vpop.f32.mrf.mxu1 }
  0xc1   : > { %v2625_v51 = vadd.f32 %v2571_v4, %v1051_v50 }
  0xc2   : > { %v2627_v52 = vpop.f32.mrf.mxu0 }
  0xc6   : > { %v1071_v61 = vpop.f32.mrf.mxu2 }
  0xc7   : > { %v2638_v62 = vadd.f32 %v2571_v4, %v1071_v61  ;;  %v1091_v63 = vpop.f32.mrf.mxu3  ;;  %v1793_v61 = vld [vmem:[%s2411_s5 + $0x15c] sm:$0xf0] }
  0xc8   : > { %v2641_v2 = vadd.f32 %v2571_v4, %v1091_v63  ;;  %v1054_v3 = vpop.f32.mrf.mxu1  ;;  %v1799_v63 = vld [vmem:[%s2411_s5 + $0x150] sm:$0xf]  ;;  %v1796_v16 = vor.u32 %v2144_v60, %v1793_v61 }
  0xc9   : > { %v2644_v7 = vadd.f32 %v2571_v4, %v1054_v3 }
  0xca   : > { %v2646_v8 = vpop.f32.mrf.mxu0 }
  0xcb   : > { %1142 = vmatmul.bf16.gmra.mxu1 %v1748_v0  ;;  %1231 = vmatmul.bf16.gmra.mxu2 %v1752_v1  ;;  %v2147_v0 = vld [vmem:[%s2411_s5 + $0x160] sm:$0xf0] }
  0xcc   : > { %1320 = vmatmul.bf16.gmra.mxu3 %v1756_v5  ;;  %v1800_v17 = vor.u32 %v2147_v0, %v1799_v63 }
  0xcd   : > { %2091 = vmatmul.msk.bf16.gmra.mxu0 %vm966_vm0, %v1760_v6  ;;  %v1788_v6 = vor.u32 %v2143_v56, %v1785_v57  ;;  %v1819_v56 = vld [vmem:[%s2411_s5 + $0x178] sm:$0xf]  ;;  %v2152_v57 = vld [vmem:[%s2411_s5 + $0x188] sm:$0xf0] }
  0xce   : > { %v1074_v9 = vpop.f32.mrf.mxu2 }
  0xcf   : > { %v2650_v10 = vadd.f32 %v2571_v4, %v1074_v9  ;;  %v1094_v11 = vpop.f32.mrf.mxu3  ;;  %v1792_v9 = vor.u32 %v2146_v59, %v1791_v58 }
  0xd0   : > { %v2653_v12 = vadd.f32 %v2571_v4, %v1094_v11  ;;  %v1056_v13 = vpop.f32.mrf.mxu1 }
  0xd1   : > { %v2656_v14 = vadd.f32 %v2571_v4, %v1056_v13 }
  0xd2   : > { %v2658_v15 = vpop.f32.mrf.mxu0 }
  0xd6   : > { %v1076_v30 = vpop.f32.mrf.mxu2 }
  0xd7   : > { %v2669_v31 = vadd.f32 %v2571_v4, %v1076_v30  ;;  %v1096_v32 = vpop.f32.mrf.mxu3 }
  0xd8   : > { %v2672_v35 = vadd.f32 %v2571_v4, %v1096_v32  ;;  %v1059_v37 = vpop.f32.mrf.mxu1 }
  0xd9   : > { %v2675_v41 = vadd.f32 %v2571_v4, %v1059_v37  ;;  %v1805_v37 = vld [vmem:[%s2411_s5 + $0x17c] sm:$0xf0] }
  0xda   : > { %v2677_v42 = vpop.f32.mrf.mxu0 }
  0xdb   : > { %1147 = vmatmul.bf16.gmra.mxu1 %v1768_v33  ;;  %1236 = vmatmul.bf16.gmra.mxu2 %v1772_v34  ;;  %v1027_v33 = vadd.f32 %v2571_v4, %v2596_v26  ;;  %v2148_v34 = vld [vmem:[%s2411_s5 + $0x16c] sm:$0xf] }
  0xdc   : > { %1325 = vmatmul.bf16.gmra.mxu3 %v1776_v38  ;;  %v1811_v38 = vld [vmem:[%s2411_s5 + $0x170] sm:$0xf]  ;;  %v1808_v61 = vor.u32 %v2148_v34, %v1805_v37  ;;  %v1825_v34 = vld [vmem:[%s2411_s5 + $0x1a4] sm:$0xf0]  ;;  %v1831_v37 = vld [vmem:[%s2411_s5 + $0x198] sm:$0xf] }
  0xdd   : > { %2092 = vmatmul.msk.bf16.gmra.mxu0 %vm966_vm0, %v1780_v39  ;;  %v2151_v39 = vld [vmem:[%s2411_s5 + $0x180] sm:$0xf0] }
  0xde   : > { %v1079_v43 = vpop.f32.mrf.mxu2  ;;  %v1812_v63 = vor.u32 %v2151_v39, %v1811_v38  ;;  %v2156_v38 = vld [vmem:[%s2411_s5 + $0x1a8] sm:$0xf0]  ;;  %v2154_v39 = vld [vmem:[%s2411_s5 + $0x19c] sm:$0xf] }
  0xdf   : > { %v2681_v46 = vadd.f32 %v2571_v4, %v1079_v43  ;;  %v1099_v48 = vpop.f32.mrf.mxu3  ;;  %v2149_v43 = vld [vmem:[%s2411_s5 + $0x174] sm:$0xf] }
  0xe0   : > { %v2684_v50 = vadd.f32 %v2571_v4, %v1099_v48  ;;  %v1061_v53 = vpop.f32.mrf.mxu1 }
  0xe1   : > { %v2687_v54 = vadd.f32 %v2571_v4, %v1061_v53 }
  0xe2   : > { %v2689_v55 = vpop.f32.mrf.mxu0 }
  0xe6   : > { %v1081_v1 = vpop.f32.mrf.mxu2 }
  0xe7   : > { %v2700_v3 = vadd.f32 %v2571_v4, %v1081_v1  ;;  %v1101_v5 = vpop.f32.mrf.mxu3  ;;  %v1816_v1 = vor.u32 %v2149_v43, %v1813_v19  ;;  %v1839_v19 = vld [vmem:[%s2411_s5 + $0x1a0] sm:$0xf] }
  0xe8   : > { %v2703_v11 = vadd.f32 %v2571_v4, %v1101_v5  ;;  %v1113_v13 = vpop.f32.mrf.mxu1  ;;  %v1820_v5 = vor.u32 %v2152_v57, %v1819_v56  ;;  %v2157_v56 = vld [vmem:[%s2411_s5 + $0x1b0] sm:$0xf0] }
  0xe9   : > { %v1114_v27 = vadd.f32 %v1113_v13, %v1025_v22 }
  0xea   : > { %v1380_v20 = vpop.f32.mrf.mxu0 }
  0xeb   : > { %1152 = vmatmul.bf16.gmra.mxu1 %v1788_v6  ;;  %1241 = vmatmul.bf16.gmra.mxu2 %v1792_v9 }
  0xec   : > { %1330 = vmatmul.bf16.gmra.mxu3 %v1796_v16  ;;  %v1030_v16 = vadd.f32 %v2571_v4, %v2615_v45 }
  0xed   : > { %2093 = vmatmul.msk.bf16.gmra.mxu0 %vm966_vm0, %v1800_v17 }
  0xee   : > { %v1202_v24 = vpop.f32.mrf.mxu2 }
  0xef   : > { %v1291_v28 = vpop.f32.mrf.mxu3  ;;  %v1203_v30 = vadd.f32 %v1202_v24, %v1114_v27 }
  0xf0   : > { %v1115_v29 = vpop.f32.mrf.mxu1 }
  0xf1   : > { %v1292_v48 = vadd.f32 %v1291_v28, %v1203_v30  ;;  %v1116_v53 = vadd.f32 %v1115_v29, %v1027_v33  ;;  %v2153_v33 = vld [vmem:[%s2411_s5 + $0x194] sm:$0xf] }
  0xf2   : > { %v1382_v32 = vpop.f32.mrf.mxu0 }
  0xf3   : > { %v1381_v26 = vadd.f32 %v1380_v20, %v1292_v48 }
  0xf5   : > { %v1460_v17 = vmax.f32 %v1381_v26, 0.0 }
  0xf6   : > { %v1204_v58 = vpop.f32.mrf.mxu2 }
  0xf7   : > { %v1205_v59 = vadd.f32 %v1204_v58, %v1116_v53  ;;  %v1293_v60 = vpop.f32.mrf.mxu3  ;;  %v1833_v53 = vld [vmem:[%s2411_s5 + $0x1ac] sm:$0xf0] }
  0xf8   : > { %v1118_v0 = vpop.f32.mrf.mxu1 }
  0xf9   : > { %v1294_v6 = vadd.f32 %v1293_v60, %v1205_v59  ;;  %v1119_v27 = vadd.f32 %v1118_v0, %v1030_v16  ;;  %v1828_v60 = vor.u32 %v2153_v33, %v1825_v34  ;;  %v1836_v0 = vor.u32 %v2154_v39, %v1833_v53  ;;  %v2161_v33 = vld [vmem:[%s2411_s5 + $0x1d0] sm:$0xf0]  ;;  %v2159_v34 = vld [vmem:[%s2411_s5 + $0x1c4] sm:$0xf]  ;;  %v1853_v39 = vld [vmem:[%s2411_s5 + $0x1d4] sm:$0xf0] }
  0xfa   : > { %v1385_v9 = vpop.f32.mrf.mxu0 }
  0xfb   : > { %v1383_v13 = vadd.f32 %v1382_v32, %v1294_v6  ;;  %1157 = vmatmul.bf16.gmra.mxu1 %v1808_v61  ;;  %1246 = vmatmul.bf16.gmra.mxu2 %v1812_v63  ;;  %v1032_v32 = vadd.f32 %v2571_v4, %v2627_v52  ;;  %v1832_v61 = vor.u32 %v2156_v38, %v1831_v37 }
  0xfc   : > { %1335 = vmatmul.bf16.gmra.mxu3 %v1816_v1  ;;  %v1840_v1 = vor.u32 %v2157_v56, %v1839_v19 }
  0xfd   : > { %2094 = vmatmul.msk.bf16.gmra.mxu0 %vm966_vm0, %v1820_v5  ;;  %v1461_v22 = vmax.f32 %v1383_v13, 0.0  ;;  %v1035_v13 = vadd.f32 %v2571_v4, %v2646_v8  ;;  %v1851_v8 = vld [vmem:[%s2411_s5 + $0x1c0] sm:$0xf] }
  0xfe   : > { %v1207_v20 = vpop.f32.mrf.mxu2 }
  0xff   : > { %v2222_v24 = vpack.c.bf16 %v1461_v22, %v1460_v17  ;;  %v1296_v28 = vpop.f32.mrf.mxu3  ;;  %v1208_v45 = vadd.f32 %v1207_v20, %v1119_v27 }
 0x100   : > { %v1120_v29 = vpop.f32.mrf.mxu1 }
 0x101   : > { %2223 = vst [vmem:[%s2725_s20] sm:$0xff] %v2222_v24   ;;  %v1297_v43 = vadd.f32 %v1296_v28, %v1208_v45  ;;  %v1121_v48 = vadd.f32 %v1120_v29, %v1032_v32  ;;  %v1037_v45 = vadd.f32 %v2571_v4, %v2658_v15  ;;  %v1845_v32 = vld [vmem:[%s2411_s5 + $0x1cc] sm:$0xf0] }
 0x102   : > { %v1387_v30 = vpop.f32.mrf.mxu0 }
 0x103   : > { %v1386_v5 = vadd.f32 %v1385_v9, %v1297_v43  ;;  %v1859_v43 = vld [vmem:[%s2411_s5 + $0x1c8] sm:$0xf] }
 0x105   : > { %v1462_v16 = vmax.f32 %v1386_v5, 0.0  ;;  %v1040_v5 = vadd.f32 %v2571_v4, %v2677_v42  ;;  %v1871_v42 = vld [vmem:[%s2411_s5 + $0x1e8] sm:$0xf] }
 0x106   : > { %v1209_v57 = vpop.f32.mrf.mxu2 }
 0x107   : > { %v1210_v58 = vadd.f32 %v1209_v57, %v1121_v48  ;;  %v1298_v59 = vpop.f32.mrf.mxu3  ;;  %v2162_v48 = vld [vmem:[%s2411_s5 + $0x1d8] sm:$0xf0] }
 0x108   : > { %v1123_v63 = vpop.f32.mrf.mxu1 }
 0x109   : > { %v1299_v52 = vadd.f32 %v1298_v59, %v1210_v58  ;;  %v1124_v20 = vadd.f32 %v1123_v63, %v1035_v13  ;;  %v1852_v58 = vor.u32 %v2161_v33, %v1851_v8  ;;  %v1873_v8 = vld [vmem:[%s2411_s5 + $0x1fc] sm:$0xf0]  ;;  %v1879_v33 = vld [vmem:[%s2411_s5 + $0x1f0] sm:$0xf] }
 0x10a   : > { %v1390_v26 = vpop.f32.mrf.mxu0 }
 0x10b   : > { %v1388_v6 = vadd.f32 %v1387_v30, %v1299_v52  ;;  %1162 = vmatmul.bf16.gmra.mxu1 %v1828_v60  ;;  %1251 = vmatmul.bf16.gmra.mxu2 %v1832_v61  ;;  %v2158_v30 = vld [vmem:[%s2411_s5 + $0x1bc] sm:$0xf]  ;;  %v1856_v60 = vor.u32 %v2159_v34, %v1853_v39  ;;  %v1860_v61 = vor.u32 %v2162_v48, %v1859_v43  ;;  %v2167_v34 = vld [vmem:[%s2411_s5 + $0x200] sm:$0xf0] }
 0x10c   : > { %1340 = vmatmul.bf16.gmra.mxu3 %v1836_v0  ;;  %v1848_v57 = vor.u32 %v2158_v30, %v1845_v32 }
 0x10d   : > { %2095 = vmatmul.msk.bf16.gmra.mxu0 %vm966_vm0, %v1840_v1  ;;  %v1463_v17 = vmax.f32 %v1388_v6, 0.0 }
 0x10e   : > { %v1212_v9 = vpop.f32.mrf.mxu2 }
 0x10f   : > { %v2227_v22 = vpack.c.bf16 %v1463_v17, %v1462_v16  ;;  %v1301_v24 = vpop.f32.mrf.mxu3  ;;  %v1213_v28 = vadd.f32 %v1212_v9, %v1124_v20 }
 0x110   : > { %v1125_v27 = vpop.f32.mrf.mxu1 }
 0x111   : > { %2299 = vst [vmem:[%s2725_s20 + $0x8] sm:$0xff] %v2227_v22   ;;  %v1302_v37 = vadd.f32 %v1301_v24, %v1213_v28  ;;  %v1126_v38 = vadd.f32 %v1125_v27, %v1037_v45  ;;  %v1042_v24 = vadd.f32 %v2571_v4, %v2689_v55  ;;  %v2163_v27 = vld [vmem:[%s2411_s5 + $0x1e4] sm:$0xf]  ;;  %v1865_v28 = vld [vmem:[%s2411_s5 + $0x1f4] sm:$0xf0] }
 0x112   : > { %v1392_v29 = vpop.f32.mrf.mxu0  ;;  %v2164_v45 = vld [vmem:[%s2411_s5 + $0x1ec] sm:$0xf]  ;;  %v1868_v43 = vor.u32 %v2163_v27, %v1865_v28 }
 0x113   : > { %v1391_v63 = vadd.f32 %v1390_v26, %v1302_v37  ;;  %v2172_v27 = vld [vmem:[%s2411_s5 + $0x228] sm:$0xf0] }
 0x115   : > { %v1464_v52 = vmax.f32 %v1391_v63, 0.0 }
 0x116   : > { %v1214_v53 = vpop.f32.mrf.mxu2 }
 0x117   : > { %v1215_v19 = vadd.f32 %v1214_v53, %v1126_v38  ;;  %v1303_v56 = vpop.f32.mrf.mxu3 }
 0x118   : > { %v1128_v59 = vpop.f32.mrf.mxu1 }
 0x119   : > { %v1304_v15 = vadd.f32 %v1303_v56, %v1215_v19  ;;  %v1129_v16 = vadd.f32 %v1128_v59, %v1040_v5  ;;  %v1876_v19 = vor.u32 %v2164_v45, %v1873_v8  ;;  %v1880_v56 = vor.u32 %v2167_v34, %v1879_v33 }
 0x11a   : > { %v1395_v0 = vpop.f32.mrf.mxu0 }
 0x11b   : > { %v1393_v1 = vadd.f32 %v1392_v29, %v1304_v15  ;;  %1167 = vmatmul.bf16.gmra.mxu1 %v1848_v57  ;;  %1256 = vmatmul.bf16.gmra.mxu2 %v1852_v58  ;;  %v2166_v29 = vld [vmem:[%s2411_s5 + $0x1f8] sm:$0xf0] }
 0x11c   : > { %1345 = vmatmul.bf16.gmra.mxu3 %v1856_v60  ;;  %v1872_v48 = vor.u32 %v2166_v29, %v1871_v42 }
 0x11d   : > { %2096 = vmatmul.msk.bf16.gmra.mxu0 %vm966_vm0, %v1860_v61  ;;  %v1465_v6 = vmax.f32 %v1393_v1, 0.0 }
 0x11e   : > { %v1217_v26 = vpop.f32.mrf.mxu2 }
 0x11f   : > { %v2232_v13 = vpack.c.bf16 %v1465_v6, %v1464_v52  ;;  %v1306_v17 = vpop.f32.mrf.mxu3  ;;  %v1218_v22 = vadd.f32 %v1217_v26, %v1129_v16  ;;  %v2168_v6 = vld [vmem:[%s2411_s5 + $0x20c] sm:$0xf]  ;;  %v1885_v26 = vld [vmem:[%s2411_s5 + $0x21c] sm:$0xf0]  ;;  %v2171_v16 = vld [vmem:[%s2411_s5 + $0x220] sm:$0xf0] }
 0x120   : > { %v1130_v9 = vpop.f32.mrf.mxu1 }
 0x121   : > { %2300 = vst [vmem:[%s2725_s20 + $0x10] sm:$0xff] %v2232_v13   ;;  %v1307_v30 = vadd.f32 %v1306_v17, %v1218_v22  ;;  %v1131_v32 = vadd.f32 %v1130_v9, %v1042_v24  ;;  %v1891_v13 = vld [vmem:[%s2411_s5 + $0x210] sm:$0xf]  ;;  %v2169_v17 = vld [vmem:[%s2411_s5 + $0x214] sm:$0xf] }
 0x122   : > { %v1397_v20 = vpop.f32.mrf.mxu0  ;;  %v1899_v24 = vld [vmem:[%s2411_s5 + $0x218] sm:$0xf]  ;;  %v1892_v45 = vor.u32 %v2171_v16, %v1891_v13 }
 0x123   : > { %v1396_v4 = vadd.f32 %v1395_v0, %v1307_v30  ;;  %v1900_v8 = vor.u32 %v2172_v27, %v1899_v24 }
 0x125   : > { %v1466_v59 = vmax.f32 %v1396_v4, 0.0 }
 0x126   : > { %v1219_v37 = vpop.f32.mrf.mxu2 }
 0x127   : > { %v1220_v38 = vadd.f32 %v1219_v37, %v1131_v32  ;;  %v1308_v39 = vpop.f32.mrf.mxu3 }
 0x128   : > { %v1133_v53 = vpop.f32.mrf.mxu1 }
 0x129   : > { %v1309_v55 = vadd.f32 %v1308_v39, %v1220_v38  ;;  %v1134_v15 = vadd.f32 %v1133_v53, %v2582_v18  ;;  %v1888_v18 = vor.u32 %v2168_v6, %v1885_v26 }
 0x12a   : > { %v1400_v57 = vpop.f32.mrf.mxu0 }
 0x12b   : > { %v1398_v58 = vadd.f32 %v1397_v20, %v1309_v55  ;;  %1172 = vmatmul.bf16.gmra.mxu1 %v1868_v43  ;;  %1261 = vmatmul.bf16.gmra.mxu2 %v1872_v48  ;;  %v1893_v20 = vld [vmem:[%s2411_s5 + $0x224] sm:$0xf0] }
 0x12c   : > { %1350 = vmatmul.bf16.gmra.mxu3 %v1876_v19  ;;  %v1896_v32 = vor.u32 %v2169_v17, %v1893_v20 }
 0x12d   : > { %2097 = vmatmul.msk.bf16.gmra.mxu0 %vm966_vm0, %v1880_v56  ;;  %v1467_v60 = vmax.f32 %v1398_v58, 0.0  ;;  %v1905_v58 = vld [vmem:[%s2411_s5 + $0x244] sm:$0xf0] }
 0x12e   : > { %v1222_v61 = vpop.f32.mrf.mxu2 }
 0x12f   : > { %v2237_v63 = vpack.c.bf16 %v1467_v60, %v1466_v59  ;;  %v1311_v0 = vpop.f32.mrf.mxu3  ;;  %v1223_v5 = vadd.f32 %v1222_v61, %v1134_v15  ;;  %v1911_v59 = vld [vmem:[%s2411_s5 + $0x238] sm:$0xf]  ;;  %v2176_v60 = vld [vmem:[%s2411_s5 + $0x248] sm:$0xf0]  ;;  %v2174_v61 = vld [vmem:[%s2411_s5 + $0x23c] sm:$0xf] }
 0x130   : > { %v1135_v1 = vpop.f32.mrf.mxu1  ;;  %v1912_v13 = vor.u32 %v2176_v60, %v1911_v59 }
 0x131   : > { %2301 = vst [vmem:[%s2725_s20 + $0x18] sm:$0xff] %v2237_v63   ;;  %v1312_v9 = vadd.f32 %v1311_v0, %v1223_v5  ;;  %v1136_v22 = vadd.f32 %v1135_v1, %v2594_v25  ;;  %v1913_v0 = vld [vmem:[%s2411_s5 + $0x24c] sm:$0xf0]  ;;  %v1919_v1 = vld [vmem:[%s2411_s5 + $0x240] sm:$0xf] }
 0x132   : > { %v1402_v52 = vpop.f32.mrf.mxu0  ;;  %v2177_v5 = vld [vmem:[%s2411_s5 + $0x250] sm:$0xf0]  ;;  %v1916_v17 = vor.u32 %v2174_v61, %v1913_v0 }
 0x133   : > { %v1401_v33 = vadd.f32 %v1400_v57, %v1312_v9  ;;  %v2173_v57 = vld [vmem:[%s2411_s5 + $0x234] sm:$0xf]  ;;  %v1920_v9 = vor.u32 %v2177_v5, %v1919_v1 }
 0x135   : > { %v1468_v25 = vmax.f32 %v1401_v33, 0.0  ;;  %v2178_v33 = vld [vmem:[%s2411_s5 + $0x25c] sm:$0xf] }
 0x136   : > { %v1224_v28 = vpop.f32.mrf.mxu2 }
 0x137   : > { %v1225_v42 = vadd.f32 %v1224_v28, %v1136_v22  ;;  %v1313_v29 = vpop.f32.mrf.mxu3 }
 0x138   : > { %v1138_v30 = vpop.f32.mrf.mxu1 }
 0x139   : > { %v1314_v34 = vadd.f32 %v1313_v29, %v1225_v42  ;;  %v1139_v53 = vadd.f32 %v1138_v30, %v2613_v44  ;;  %v1908_v44 = vor.u32 %v2173_v57, %v1905_v58 }
 0x13a   : > { %v1405_v37 = vpop.f32.mrf.mxu0 }
 0x13b   : > { %v1403_v38 = vadd.f32 %v1402_v52, %v1314_v34  ;;  %1177 = vmatmul.bf16.gmra.mxu1 %v1888_v18  ;;  %1266 = vmatmul.bf16.gmra.mxu2 %v1892_v45  ;;  %v1925_v34 = vld [vmem:[%s2411_s5 + $0x26c] sm:$0xf0] }
 0x13c   : > { %1355 = vmatmul.bf16.gmra.mxu3 %v1896_v32 }
 0x13d   : > { %2098 = vmatmul.msk.bf16.gmra.mxu0 %vm966_vm0, %v1900_v8  ;;  %v1469_v39 = vmax.f32 %v1403_v38, 0.0  ;;  %v2181_v38 = vld [vmem:[%s2411_s5 + $0x270] sm:$0xf0] }
 0x13e   : > { %v1227_v43 = vpop.f32.mrf.mxu2 }
 0x13f   : > { %v2242_v48 = vpack.c.bf16 %v1469_v39, %v1468_v25  ;;  %v1316_v19 = vpop.f32.mrf.mxu3  ;;  %v1228_v4 = vadd.f32 %v1227_v43, %v1139_v53  ;;  %v2179_v25 = vld [vmem:[%s2411_s5 + $0x264] sm:$0xf]  ;;  %v1939_v53 = vld [vmem:[%s2411_s5 + $0x268] sm:$0xf] }
 0x140   : > { %v1140_v56 = vpop.f32.mrf.mxu1 }
 0x141   : > { %2302 = vst [vmem:[%s2725_s20 + $0x20] sm:$0xff] %v2242_v48   ;;  %v1317_v63 = vadd.f32 %v1316_v19, %v1228_v4  ;;  %v1141_v15 = vadd.f32 %v1140_v56, %v2625_v51  ;;  %v1933_v48 = vld [vmem:[%s2411_s5 + $0x274] sm:$0xf0]  ;;  %v2182_v19 = vld [vmem:[%s2411_s5 + $0x278] sm:$0xf0] }
 0x142   : > { %v1407_v55 = vpop.f32.mrf.mxu0  ;;  %v1936_v59 = vor.u32 %v2179_v25, %v1933_v48  ;;  %v1940_v60 = vor.u32 %v2182_v19, %v1939_v53 }
 0x143   : > { %v1406_v22 = vadd.f32 %v1405_v37, %v1317_v63  ;;  %v1931_v37 = vld [vmem:[%s2411_s5 + $0x260] sm:$0xf] }
 0x144   : > { %v1932_v57 = vor.u32 %v2181_v38, %v1931_v37 }
 0x145   : > { %v1470_v51 = vmax.f32 %v1406_v22, 0.0 }
 0x146   : > { %v1229_v52 = vpop.f32.mrf.mxu2 }
 0x147   : > { %v1230_v6 = vadd.f32 %v1229_v52, %v1141_v15  ;;  %v1318_v26 = vpop.f32.mrf.mxu3 }
 0x148   : > { %v1143_v16 = vpop.f32.mrf.mxu1 }
 0x149   : > { %v1319_v20 = vadd.f32 %v1318_v26, %v1230_v6  ;;  %v1144_v18 = vadd.f32 %v1143_v16, %v2644_v7  ;;  %v1928_v7 = vor.u32 %v2178_v33, %v1925_v34 }
 0x14a   : > { %v1410_v24 = vpop.f32.mrf.mxu0 }
 0x14b   : > { %v1408_v27 = vadd.f32 %v1407_v55, %v1319_v20  ;;  %1182 = vmatmul.bf16.gmra.mxu1 %v1908_v44  ;;  %1271 = vmatmul.bf16.gmra.mxu2 %v1912_v13 }
 0x14c   : > { %1360 = vmatmul.bf16.gmra.mxu3 %v1916_v17 }
 0x14d   : > { %2099 = vmatmul.msk.bf16.gmra.mxu0 %vm966_vm0, %v1920_v9  ;;  %v1471_v28 = vmax.f32 %v1408_v27, 0.0 }
 0x14e   : > { %v1232_v42 = vpop.f32.mrf.mxu2 }
 0x14f   : > { %v2247_v29 = vpack.c.bf16 %v1471_v28, %v1470_v51  ;;  %v1321_v45 = vpop.f32.mrf.mxu3  ;;  %v1233_v32 = vadd.f32 %v1232_v42, %v1144_v18 }
 0x150   : > { %v1145_v30 = vpop.f32.mrf.mxu1 }
 0x151   : > { %2303 = vst [vmem:[%s2725_s20 + $0x28] sm:$0xff] %v2247_v29   ;;  %v1322_v39 = vadd.f32 %v1321_v45, %v1233_v32  ;;  %v1146_v43 = vadd.f32 %v1145_v30, %v2656_v14 }
 0x152   : > { %v1412_v8 = vpop.f32.mrf.mxu0 }
 0x153   : > { %v1411_v61 = vadd.f32 %v1410_v24, %v1322_v39 }
 0x155   : > { %v1472_v14 = vmax.f32 %v1411_v61, 0.0 }
 0x156   : > { %v1234_v56 = vpop.f32.mrf.mxu2 }
 0x157   : > { %v1235_v4 = vadd.f32 %v1234_v56, %v1146_v43  ;;  %v1323_v55 = vpop.f32.mrf.mxu3 }
 0x158   : > { %v1148_v58 = vpop.f32.mrf.mxu1 }
 0x159   : > { %v1324_v63 = vadd.f32 %v1323_v55, %v1235_v4  ;;  %v1149_v6 = vadd.f32 %v1148_v58, %v2675_v41 }
 0x15a   : > { %v1415_v15 = vpop.f32.mrf.mxu0 }
 0x15b   : > { %v1413_v0 = vadd.f32 %v1412_v8, %v1324_v63  ;;  %1187 = vmatmul.bf16.gmra.mxu1 %v1928_v7  ;;  %1276 = vmatmul.bf16.gmra.mxu2 %v1932_v57 }
 0x15c   : > { %1365 = vmatmul.bf16.gmra.mxu3 %v1936_v59 }
 0x15d   : > { %2100 = vmatmul.msk.bf16.gmra.mxu0 %vm966_vm0, %v1940_v60  ;;  %v1473_v1 = vmax.f32 %v1413_v0, 0.0 }
 0x15e   : > { %v1237_v5 = vpop.f32.mrf.mxu2 }
 0x15f   : > { %v2252_v52 = vpack.c.bf16 %v1473_v1, %v1472_v14  ;;  %v1326_v26 = vpop.f32.mrf.mxu3  ;;  %v1238_v13 = vadd.f32 %v1237_v5, %v1149_v6 }
 0x160   : > { %v1150_v44 = vpop.f32.mrf.mxu1 }
 0x161   : > { %2304 = vst [vmem:[%s2725_s20 + $0x30] sm:$0xff] %v2252_v52   ;;  %v1327_v17 = vadd.f32 %v1326_v26, %v1238_v13  ;;  %v1151_v9 = vadd.f32 %v1150_v44, %v2687_v54 }
 0x162   : > { %v1417_v16 = vpop.f32.mrf.mxu0 }
 0x163   : > { %v1416_v51 = vadd.f32 %v1415_v15, %v1327_v17 }
 0x165   : > { %v1474_v18 = vmax.f32 %v1416_v51, 0.0 }
 0x166   : > { %v1239_v22 = vpop.f32.mrf.mxu2 }
 0x167   : > { %v1240_v20 = vadd.f32 %v1239_v22, %v1151_v9  ;;  %v1328_v24 = vpop.f32.mrf.mxu3 }
 0x168   : > { %v1153_v27 = vpop.f32.mrf.mxu1 }
 0x169   : > { %v1329_v28 = vadd.f32 %v1328_v24, %v1240_v20  ;;  %v1154_v32 = vadd.f32 %v1153_v27, %v2588_v21 }
 0x16a   : > { %v1420_v42 = vpop.f32.mrf.mxu0 }
 0x16b   : > { %v1418_v29 = vadd.f32 %v1417_v16, %v1329_v28 }
 0x16d   : > { %v1475_v45 = vmax.f32 %v1418_v29, 0.0 }
 0x16e   : > { %v1242_v41 = vpop.f32.mrf.mxu2 }
 0x16f   : > { %v2257_v30 = vpack.c.bf16 %v1475_v45, %v1474_v18  ;;  %v1331_v8 = vpop.f32.mrf.mxu3  ;;  %v1243_v34 = vadd.f32 %v1242_v41, %v1154_v32 }
 0x170   : > { %v1155_v33 = vpop.f32.mrf.mxu1 }
 0x171   : > { %2305 = vst [vmem:[%s2725_s20 + $0x38] sm:$0xff] %v2257_v30   ;;  %v1332_v37 = vadd.f32 %v1331_v8, %v1243_v34  ;;  %v1156_v38 = vadd.f32 %v1155_v33, %v2607_v36 }
 0x172   : > { %v1422_v54 = vpop.f32.mrf.mxu0 }
 0x173   : > { %v1421_v53 = vadd.f32 %v1420_v42, %v1332_v37 }
 0x175   : > { %v1476_v55 = vmax.f32 %v1421_v53, 0.0 }
 0x176   : > { %v1244_v25 = vpop.f32.mrf.mxu2 }
 0x177   : > { %v1245_v39 = vadd.f32 %v1244_v25, %v1156_v38  ;;  %v1333_v43 = vpop.f32.mrf.mxu3 }
 0x178   : > { %v1158_v48 = vpop.f32.mrf.mxu1 }
 0x179   : > { %v1334_v19 = vadd.f32 %v1333_v43, %v1245_v39  ;;  %v1159_v58 = vadd.f32 %v1158_v48, %v2619_v47 }
 0x17a   : > { %v1425_v56 = vpop.f32.mrf.mxu0 }
 0x17b   : > { %v1423_v4 = vadd.f32 %v1422_v54, %v1334_v19 }
 0x17d   : > { %v1477_v7 = vmax.f32 %v1423_v4, 0.0 }
 0x17e   : > { %v1247_v21 = vpop.f32.mrf.mxu2 }
 0x17f   : > { %v2262_v57 = vpack.c.bf16 %v1477_v7, %v1476_v55  ;;  %v1336_v59 = vpop.f32.mrf.mxu3  ;;  %v1248_v61 = vadd.f32 %v1247_v21, %v1159_v58 }
 0x180   : > { %v1160_v60 = vpop.f32.mrf.mxu1 }
 0x181   : > { %2306 = vst [vmem:[%s2725_s20 + $0x40] sm:$0xff] %v2262_v57   ;;  %v1337_v63 = vadd.f32 %v1336_v59, %v1248_v61  ;;  %v1161_v15 = vadd.f32 %v1160_v60, %v2638_v62 }
 0x182   : > { %v1427_v36 = vpop.f32.mrf.mxu0 }
 0x183   : > { %v1426_v52 = vadd.f32 %v1425_v56, %v1337_v63 }
 0x185   : > { %v1478_v13 = vmax.f32 %v1426_v52, 0.0 }
 0x186   : > { %v1249_v0 = vpop.f32.mrf.mxu2 }
 0x187   : > { %v1250_v14 = vadd.f32 %v1249_v0, %v1161_v15  ;;  %v1338_v1 = vpop.f32.mrf.mxu3 }
 0x188   : > { %v1163_v5 = vpop.f32.mrf.mxu1 }
 0x189   : > { %v1339_v6 = vadd.f32 %v1338_v1, %v1250_v14  ;;  %v1164_v9 = vadd.f32 %v1163_v5, %v2650_v10 }
 0x18a   : > { %v1430_v26 = vpop.f32.mrf.mxu0 }
 0x18b   : > { %v1428_v44 = vadd.f32 %v1427_v36, %v1339_v6 }
 0x18d   : > { %v1479_v16 = vmax.f32 %v1428_v44, 0.0 }
 0x18e   : > { %v1252_v47 = vpop.f32.mrf.mxu2 }
 0x18f   : > { %v2267_v17 = vpack.c.bf16 %v1479_v16, %v1478_v13  ;;  %v1341_v22 = vpop.f32.mrf.mxu3  ;;  %v1253_v24 = vadd.f32 %v1252_v47, %v1164_v9 }
 0x190   : > { %v1165_v20 = vpop.f32.mrf.mxu1 }
 0x191   : > { %2307 = vst [vmem:[%s2725_s20 + $0x48] sm:$0xff] %v2267_v17   ;;  %v1342_v27 = vadd.f32 %v1341_v22, %v1253_v24  ;;  %v1166_v51 = vadd.f32 %v1165_v20, %v2669_v31 }
 0x192   : > { %v1432_v62 = vpop.f32.mrf.mxu0 }
 0x193   : > { %v1431_v45 = vadd.f32 %v1430_v26, %v1342_v27 }
 0x195   : > { %v1480_v8 = vmax.f32 %v1431_v45, 0.0 }
 0x196   : > { %v1254_v28 = vpop.f32.mrf.mxu2 }
 0x197   : > { %v1255_v42 = vadd.f32 %v1254_v28, %v1166_v51  ;;  %v1343_v29 = vpop.f32.mrf.mxu3 }
 0x198   : > { %v1168_v18 = vpop.f32.mrf.mxu1 }
 0x199   : > { %v1344_v41 = vadd.f32 %v1343_v29, %v1255_v42  ;;  %v1169_v54 = vadd.f32 %v1168_v18, %v2681_v46 }
 0x19a   : > { %v1435_v30 = vpop.f32.mrf.mxu0 }
 0x19b   : > { %v1433_v32 = vadd.f32 %v1432_v62, %v1344_v41 }
 0x19d   : > { %v1481_v33 = vmax.f32 %v1433_v32, 0.0 }
 0x19e   : > { %v1257_v10 = vpop.f32.mrf.mxu2 }
 0x19f   : > { %v2272_v34 = vpack.c.bf16 %v1481_v33, %v1480_v8  ;;  %v1346_v37 = vpop.f32.mrf.mxu3  ;;  %v1258_v25 = vadd.f32 %v1257_v10, %v1169_v54 }
 0x1a0   : > { %v1170_v38 = vpop.f32.mrf.mxu1 }
 0x1a1   : > { %2308 = vst [vmem:[%s2725_s20 + $0x50] sm:$0xff] %v2272_v34   ;;  %v1347_v39 = vadd.f32 %v1346_v37, %v1258_v25  ;;  %v1171_v43 = vadd.f32 %v1170_v38, %v2700_v3 }
 0x1a2   : > { %v1437_v31 = vpop.f32.mrf.mxu0 }
 0x1a3   : > { %v1436_v4 = vadd.f32 %v1435_v30, %v1347_v39 }
 0x1a5   : > { %v1482_v57 = vmax.f32 %v1436_v4, 0.0 }
 0x1a6   : > { %v1259_v48 = vpop.f32.mrf.mxu2 }
 0x1a7   : > { %v1260_v53 = vadd.f32 %v1259_v48, %v1171_v43  ;;  %v1348_v19 = vpop.f32.mrf.mxu3 }
 0x1a8   : > { %v1173_v56 = vpop.f32.mrf.mxu1 }
 0x1a9   : > { %v1349_v55 = vadd.f32 %v1348_v19, %v1260_v53  ;;  %v1174_v60 = vadd.f32 %v1173_v56, %v2591_v23 }
 0x1aa   : > { %v1440_v7 = vpop.f32.mrf.mxu0 }
 0x1ab   : > { %v1438_v21 = vadd.f32 %v1437_v31, %v1349_v55 }
 0x1ad   : > { %v1483_v58 = vmax.f32 %v1438_v21, 0.0 }
 0x1ae   : > { %v1262_v46 = vpop.f32.mrf.mxu2 }
 0x1af   : > { %v2277_v59 = vpack.c.bf16 %v1483_v58, %v1482_v57  ;;  %v1351_v61 = vpop.f32.mrf.mxu3  ;;  %v1263_v63 = vadd.f32 %v1262_v46, %v1174_v60 }
 0x1b0   : > { %v1175_v36 = vpop.f32.mrf.mxu1 }
 0x1b1   : > { %2309 = vst [vmem:[%s2725_s20 + $0x58] sm:$0xff] %v2277_v59   ;;  %v1352_v15 = vadd.f32 %v1351_v61, %v1263_v63  ;;  %v1176_v0 = vadd.f32 %v1175_v36, %v2610_v40 }
 0x1b2   : > { %v1442_v3 = vpop.f32.mrf.mxu0 }
 0x1b3   : > { %v1441_v6 = vadd.f32 %v1440_v7, %v1352_v15 }
 0x1b5   : > { %v1484_v16 = vmax.f32 %v1441_v6, 0.0 }
 0x1b6   : > { %v1264_v14 = vpop.f32.mrf.mxu2 }
 0x1b7   : > { %v1265_v1 = vadd.f32 %v1264_v14, %v1176_v0  ;;  %v1353_v5 = vpop.f32.mrf.mxu3 }
 0x1b8   : > { %v1178_v52 = vpop.f32.mrf.mxu1 }
 0x1b9   : > { %v1354_v26 = vadd.f32 %v1353_v5, %v1265_v1  ;;  %v1179_v9 = vadd.f32 %v1178_v52, %v2622_v49 }
 0x1ba   : > { %v1445_v44 = vpop.f32.mrf.mxu0 }
 0x1bb   : > { %v1443_v13 = vadd.f32 %v1442_v3, %v1354_v26 }
 0x1bd   : > { %v1485_v47 = vmax.f32 %v1443_v13, 0.0 }
 0x1be   : > { %v1267_v23 = vpop.f32.mrf.mxu2 }
 0x1bf   : > { %v2282_v17 = vpack.c.bf16 %v1485_v47, %v1484_v16  ;;  %v1356_v22 = vpop.f32.mrf.mxu3  ;;  %v1268_v24 = vadd.f32 %v1267_v23, %v1179_v9 }
 0x1c0   : > { %v1180_v20 = vpop.f32.mrf.mxu1 }
 0x1c1   : > { %2310 = vst [vmem:[%s2725_s20 + $0x60] sm:$0xff] %v2282_v17   ;;  %v1357_v62 = vadd.f32 %v1356_v22, %v1268_v24  ;;  %v1181_v27 = vadd.f32 %v1180_v20, %v2641_v2 }
 0x1c2   : > { %v1447_v40 = vpop.f32.mrf.mxu0 }
 0x1c3   : > { %v1446_v18 = vadd.f32 %v1445_v44, %v1357_v62 }
 0x1c5   : > { %v1486_v32 = vmax.f32 %v1446_v18, 0.0 }
 0x1c6   : > { %v1269_v51 = vpop.f32.mrf.mxu2 }
 0x1c7   : > { %v1270_v28 = vadd.f32 %v1269_v51, %v1181_v27  ;;  %v1358_v42 = vpop.f32.mrf.mxu3 }
 0x1c8   : > { %v1183_v29 = vpop.f32.mrf.mxu1 }
 0x1c9   : > { %v1359_v45 = vadd.f32 %v1358_v42, %v1270_v28  ;;  %v1184_v10 = vadd.f32 %v1183_v29, %v2653_v12 }
 0x1ca   : > { %v1450_v30 = vpop.f32.mrf.mxu0 }
 0x1cb   : > { %v1448_v41 = vadd.f32 %v1447_v40, %v1359_v45 }
 0x1cd   : > { %v1487_v8 = vmax.f32 %v1448_v41, 0.0 }
 0x1ce   : > { %v1272_v49 = vpop.f32.mrf.mxu2 }
 0x1cf   : > { %v2287_v33 = vpack.c.bf16 %v1487_v8, %v1486_v32  ;;  %v1361_v34 = vpop.f32.mrf.mxu3  ;;  %v1273_v37 = vadd.f32 %v1272_v49, %v1184_v10 }
 0x1d0   : > { %v1185_v54 = vpop.f32.mrf.mxu1 }
 0x1d1   : > { %2311 = vst [vmem:[%s2725_s20 + $0x68] sm:$0xff] %v2287_v33   ;;  %v1362_v2 = vadd.f32 %v1361_v34, %v1273_v37  ;;  %v1186_v38 = vadd.f32 %v1185_v54, %v2672_v35 }
 0x1d2   : > { %v1452_v25 = vpop.f32.mrf.mxu0 }
 0x1d3   : > { %v1451_v53 = vadd.f32 %v1450_v30, %v1362_v2 }
 0x1d5   : > { %v1488_v4 = vmax.f32 %v1451_v53, 0.0 }
 0x1d6   : > { %v1274_v31 = vpop.f32.mrf.mxu2 }
 0x1d7   : > { %v1275_v39 = vadd.f32 %v1274_v31, %v1186_v38  ;;  %v1363_v43 = vpop.f32.mrf.mxu3 }
 0x1d8   : > { %v1188_v48 = vpop.f32.mrf.mxu1 }
 0x1d9   : > { %v1364_v19 = vadd.f32 %v1363_v43, %v1275_v39  ;;  %v1189_v21 = vadd.f32 %v1188_v48, %v2684_v50 }
 0x1da   : > { %v1455_v58 = vpop.f32.mrf.mxu0 }
 0x1db   : > { %v1453_v56 = vadd.f32 %v1452_v25, %v1364_v19 }
 0x1dd   : > { %v1489_v55 = vmax.f32 %v1453_v56, 0.0 }
 0x1de   : > { %v1277_v7 = vpop.f32.mrf.mxu2 }
 0x1df   : > { %v2292_v12 = vpack.c.bf16 %v1489_v55, %v1488_v4  ;;  %v1366_v57 = vpop.f32.mrf.mxu3  ;;  %v1278_v35 = vadd.f32 %v1277_v7, %v1189_v21 }
 0x1e0   : > { %v1190_v46 = vpop.f32.mrf.mxu1 }
 0x1e1   : > { %2312 = vst [vmem:[%s2725_s20 + $0x70] sm:$0xff] %v2292_v12   ;;  %v1367_v59 = vadd.f32 %v1366_v57, %v1278_v35  ;;  %v1191_v60 = vadd.f32 %v1190_v46, %v2703_v11 }
 0x1e2   : > { %v1457_v0 = vpop.f32.mrf.mxu0 }
 0x1e3   : > { %v1456_v3 = vadd.f32 %v1455_v58, %v1367_v59 }
 0x1e5   : > { %v1490_v1 = vmax.f32 %v1456_v3, 0.0 }
 0x1e6   : > { %v1279_v61 = vpop.f32.mrf.mxu2 }
 0x1e7   : > { %v1280_v36 = vadd.f32 %v1279_v61, %v1191_v60  ;;  %v1368_v63 = vpop.f32.mrf.mxu3 }
 0x1e9   : > { %v1369_v15 = vadd.f32 %v1368_v63, %v1280_v36 }
 0x1eb   : > { %v1458_v14 = vadd.f32 %v1457_v0, %v1369_v15 }
 0x1ed   : > { %v1491_v5 = vmax.f32 %v1458_v14, 0.0 }
 0x1ef   : > { %v2297_v52 = vpack.c.bf16 %v1491_v5, %v1490_v1 }
 0x1f1   : > { %2313 = vst [vmem:[%s2725_s20 + $0x78] sm:$0xff] %v2297_v52  }
 0x1f2 PF: > { %s13_s12 = sadd.s32 1, %s2354_s12  }
 0x1f3   : > { %p10_p4 = scmp.ge.s32.totalorder %s13_s12, 4  }
 0x1f5   :  { %12 = sbr.rel (!%p10_p4) target bundleno = 1 (0x1), region = 62 }

// kernel: inception_b_forward.8
= control target key start
LH: loop header
LB: loop body
LE: loop exit
PB: predicated region body
PF: predicated region fallthrough
CT: control target
= control target key end

     0   :  { %s1559_s12 = smov 0   ;;  %s1894_s0 = inlined_call_operand.vmem [shape: bf16[128,864], index: 0, kind: input, shape index: {}]   ;;  %s1895_s1 = inlined_call_operand.vmem [shape: bf16[864,128], index: 1, kind: input, shape index: {}]   ;;  %s1896_s2 = inlined_call_operand.vmem [shape: f32[1,128], index: 2, kind: input, shape index: {}]   ;;  %s1897_s3 = inlined_call_operand.vmem [shape: f32[128,128], index: 3, kind: output, shape index: {}]  }
   0x1 LB: > { %s1074_s13 = sadd.s32 4294967295, %s1537_s12   ;;  %p1078_p0 = scmp.ge.s32.totalorder %s1537_s12, 1  ;;  %s1537_s12 = sphi %s1559_s12, %s13_s12  }
   0x2   : > { %p139_p1 = scmp.lt.s32.totalorder %s1537_s12, 3 }
   0x4   : > { %p140_p2 = pnand %p1078_p0, %p139_p1 }
   0x5   : > { %s1079_s5 = sshll.u32 (!%p140_p2), %s1074_s13, 3 }
   0x6   : > { %143 = sbr.rel (%p140_p2) target bundleno = 286 (0x11e), region = 32  ;;  %p165_p3 = scmp.lt.s32.totalorder (!%p140_p2), %s1079_s5, 15 }
   0xb   : > { %v1452_v0 = vld [vmem:[%s1895_s1 + $0x38] sm:$0xff]  ;;  %v1451_v3 = vld [vmem:[%s1895_s1 + $0x30] sm:$0xff]  ;;  %v1450_v6 = vld [vmem:[%s1895_s1 + $0x28] sm:$0xff]  ;;  %s1899_s5 = smov (!%p165_p3, %s1079_s5), 15  ;;  %vm786_vm0 = vcmask 785408  }
   0xc   : > { %v1460_v1 = vld [vmem:[%s1895_s1 + $0x78] sm:$0xff]  ;;  %799 = vmatpush.bf16.msra.mxu0 %v1452_v0  ;;  %1499 = vmatpush.bf16.msra.mxu3 %v1452_v0  ;;  %v1459_v4 = vld [vmem:[%s1895_s1 + $0x70] sm:$0xff]  ;;  %v1458_v7 = vld [vmem:[%s1895_s1 + $0x68] sm:$0xff]  ;;  %s1521_s21 = smul.u32 28, %s1899_s5 }
   0xd   : > { %v1468_v2 = vld [vmem:[%s1895_s1 + $0xb8] sm:$0xff]  ;;  %828 = vmatpush.bf16.msra.mxu1 %v1460_v1  ;;  %v1467_v5 = vld [vmem:[%s1895_s1 + $0xb0] sm:$0xff]  ;;  %v1466_v8 = vld [vmem:[%s1895_s1 + $0xa8] sm:$0xff] }
   0xe   : > { %857 = vmatpush.bf16.msra.mxu2 %v1468_v2  ;;  %v1449_v9 = vld [vmem:[%s1895_s1 + $0x20] sm:$0xff]  ;;  %v1448_v12 = vld [vmem:[%s1895_s1 + $0x18] sm:$0xff]  ;;  %v1447_v15 = vld [vmem:[%s1895_s1 + $0x10] sm:$0xff]  ;;  %s1630_s30 = scalar_lea.vmem %s1894_s0, %s1521_s21 }
   0xf   : > { %v1457_v10 = vld [vmem:[%s1895_s1 + $0x60] sm:$0xff]  ;;  %v1456_v13 = vld [vmem:[%s1895_s1 + $0x58] sm:$0xff]  ;;  %v1455_v16 = vld [vmem:[%s1895_s1 + $0x50] sm:$0xff] }
  0x10   : > { %800 = vmatpush.bf16.msra.mxu0 %v1451_v3  ;;  %1500 = vmatpush.bf16.msra.mxu3 %v1451_v3  ;;  %v1465_v11 = vld [vmem:[%s1895_s1 + $0xa0] sm:$0xff]  ;;  %v1464_v14 = vld [vmem:[%s1895_s1 + $0x98] sm:$0xff]  ;;  %v1463_v17 = vld [vmem:[%s1895_s1 + $0x90] sm:$0xff] }
  0x11   : > { %829 = vmatpush.bf16.msra.mxu1 %v1459_v4  ;;  %v1446_v18 = vld [vmem:[%s1895_s1 + $0x8] sm:$0xff]  ;;  %v1445_v21 = vld [vmem:[%s1895_s1] sm:$0xff]  ;;  %v1420_v25 = vld [vmem:[%s1630_s30 + $0x18] sm:$0xf0] }
  0x12   : > { %858 = vmatpush.bf16.msra.mxu2 %v1467_v5  ;;  %v1454_v19 = vld [vmem:[%s1895_s1 + $0x48] sm:$0xff]  ;;  %v1453_v22 = vld [vmem:[%s1895_s1 + $0x40] sm:$0xff]  ;;  %v1141_v26 = vld [vmem:[%s1630_s30 + $0x70] sm:$0xf] }
  0x13   : > { %v1462_v20 = vld [vmem:[%s1895_s1 + $0x88] sm:$0xff]  ;;  %v1461_v23 = vld [vmem:[%s1895_s1 + $0x80] sm:$0xff]  ;;  %v1476_v32 = vld [vmem:[%s1895_s1 + $0xf8] sm:$0xff] }
  0x14   : > { %801 = vmatpush.bf16.msra.mxu0 %v1450_v6  ;;  %1501 = vmatpush.bf16.msra.mxu3 %v1450_v6  ;;  %v1085_v24 = vld [vmem:[%s1630_s30] sm:$0xf]  ;;  %v1434_v27 = vld [vmem:[%s1630_s30 + $0x88] sm:$0xf0]  ;;  %v1417_v28 = vld [vmem:[%s1630_s30 + $0x4] sm:$0xf] }
  0x15   : > { %830 = vmatpush.bf16.msra.mxu1 %v1458_v7  ;;  %v1087_v29 = vld [vmem:[%s1630_s30 + $0x1c] sm:$0xf0]  ;;  %v1093_v30 = vld [vmem:[%s1630_s30 + $0x8] sm:$0xf]  ;;  %v1421_v31 = vld [vmem:[%s1630_s30 + $0x20] sm:$0xf0]  ;;  %v1086_v34 = vor.u32 %v1420_v25, %v1085_v24  ;;  %v1142_v35 = vor.u32 %v1434_v27, %v1141_v26 }
  0x16   : > { %859 = vmatpush.bf16.msra.mxu2 %v1466_v8  ;;  %v1661_v33 = vld [vmem:[%s1895_s1 + $0x1a8] sm:$0xff]  ;;  %v1090_v36 = vor.u32 %v1417_v28, %v1087_v29  ;;  %v1094_v37 = vor.u32 %v1421_v31, %v1093_v30  ;;  %v1484_v38 = vld [vmem:[%s1895_s1 + $0x138] sm:$0xff]  ;;  %v1475_v40 = vld [vmem:[%s1895_s1 + $0xf0] sm:$0xff] }
  0x17   : > { %v1669_v39 = vld [vmem:[%s1895_s1 + $0x178] sm:$0xff]  ;;  %v1678_v41 = vld [vmem:[%s1895_s1 + $0x1a0] sm:$0xff]  ;;  %v1483_v42 = vld [vmem:[%s1895_s1 + $0x130] sm:$0xff] }
  0x18   : > { %802 = vmatpush.bf16.msra.mxu0 %v1449_v9  ;;  %1502 = vmatpush.bf16.msra.mxu3 %v1449_v9  ;;  %v1687_v43 = vld [vmem:[%s1895_s1 + $0x170] sm:$0xff]  ;;  %v1474_v44 = vld [vmem:[%s1895_s1 + $0xe8] sm:$0xff]  ;;  %v1696_v45 = vld [vmem:[%s1895_s1 + $0x198] sm:$0xff] }
  0x19   : > { %831 = vmatpush.bf16.msra.mxu1 %v1457_v10  ;;  %v1482_v46 = vld [vmem:[%s1895_s1 + $0x128] sm:$0xff]  ;;  %v1473_v48 = vld [vmem:[%s1895_s1 + $0xe0] sm:$0xff]  ;;  %v1714_v49 = vld [vmem:[%s1895_s1 + $0x190] sm:$0xff] }
  0x1a   : > { %860 = vmatpush.bf16.msra.mxu2 %v1465_v11  ;;  %v1705_v47 = vld [vmem:[%s1895_s1 + $0x168] sm:$0xff]  ;;  %v1481_v50 = vld [vmem:[%s1895_s1 + $0x120] sm:$0xff]  ;;  %v1113_v51 = vld [vmem:[%s1630_s30 + $0x38] sm:$0xf] }
  0x1b   : > { %v1427_v52 = vld [vmem:[%s1630_s30 + $0x50] sm:$0xf0]  ;;  %v1169_v53 = vld [vmem:[%s1630_s30 + $0xa8] sm:$0xf]  ;;  %v1441_v54 = vld [vmem:[%s1630_s30 + $0xc0] sm:$0xf0] }
  0x1c   : > { %803 = vmatpush.bf16.msra.mxu0 %v1448_v12  ;;  %1503 = vmatpush.bf16.msra.mxu3 %v1448_v12  ;;  %v1424_v55 = vld [vmem:[%s1630_s30 + $0x3c] sm:$0xf]  ;;  %v1115_v56 = vld [vmem:[%s1630_s30 + $0x54] sm:$0xf0]  ;;  %v1121_v57 = vld [vmem:[%s1630_s30 + $0x40] sm:$0xf]  ;;  %v1114_v62 = vor.u32 %v1427_v52, %v1113_v51  ;;  %v1170_v63 = vor.u32 %v1441_v54, %v1169_v53 }
  0x1d   : > { %832 = vmatpush.bf16.msra.mxu1 %v1456_v13  ;;  %v1428_v58 = vld [vmem:[%s1630_s30 + $0x58] sm:$0xf0]  ;;  %v1731_v59 = vld [vmem:[%s1895_s1 + $0x160] sm:$0xff]  ;;  %v1740_v61 = vld [vmem:[%s1895_s1 + $0x188] sm:$0xff]  ;;  %v1118_v0 = vor.u32 %v1424_v55, %v1115_v56 }
  0x1e   : > { %861 = vmatpush.bf16.msra.mxu2 %v1464_v14  ;;  %v1472_v60 = vld [vmem:[%s1895_s1 + $0xd8] sm:$0xff]  ;;  %v1122_v1 = vor.u32 %v1428_v58, %v1121_v57  ;;  %v1471_v4 = vld [vmem:[%s1895_s1 + $0xd0] sm:$0xff]  ;;  %v1493_v7 = vld [vmem:[%s1895_s1 + $0x180] sm:$0xff] }
  0x1f   : > { %v1480_v2 = vld [vmem:[%s1895_s1 + $0x118] sm:$0xff]  ;;  %v1479_v5 = vld [vmem:[%s1895_s1 + $0x110] sm:$0xff]  ;;  %v1470_v8 = vld [vmem:[%s1895_s1 + $0xc8] sm:$0xff] }
  0x20   : > { %804 = vmatpush.bf16.msra.mxu0 %v1447_v15  ;;  %1504 = vmatpush.bf16.msra.mxu3 %v1447_v15  ;;  %v1749_v3 = vld [vmem:[%s1895_s1 + $0x158] sm:$0xff]  ;;  %v1487_v6 = vld [vmem:[%s1895_s1 + $0x150] sm:$0xff]  ;;  %v1478_v9 = vld [vmem:[%s1895_s1 + $0x108] sm:$0xff] }
  0x21   : > { %833 = vmatpush.bf16.msra.mxu1 %v1455_v16  ;;  %v1486_v10 = vld [vmem:[%s1895_s1 + $0x148] sm:$0xff]  ;;  %v1469_v11 = vld [vmem:[%s1895_s1 + $0xc0] sm:$0xff]  ;;  %v1431_v13 = vld [vmem:[%s1630_s30 + $0x74] sm:$0xf] }
  0x22   : > { %862 = vmatpush.bf16.msra.mxu2 %v1463_v17  ;;  %v1477_v12 = vld [vmem:[%s1895_s1 + $0x100] sm:$0xff]  ;;  %v1143_v14 = vld [vmem:[%s1630_s30 + $0x8c] sm:$0xf0]  ;;  %v1418_v15 = vld [vmem:[%s1630_s30 + $0xc] sm:$0xf] }
  0x23   : > { %v1095_v16 = vld [vmem:[%s1630_s30 + $0x24] sm:$0xf0]  ;;  %v1149_v17 = vld [vmem:[%s1630_s30 + $0x78] sm:$0xf]  ;;  %v1438_v26 = vld [vmem:[%s1630_s30 + $0xac] sm:$0xf] }
  0x24   : > { %805 = vmatpush.bf16.msra.mxu0 %v1446_v18  ;;  %1505 = vmatpush.bf16.msra.mxu3 %v1446_v18  ;;  %v1435_v18 = vld [vmem:[%s1630_s30 + $0x90] sm:$0xf0]  ;;  %v1425_v27 = vld [vmem:[%s1630_s30 + $0x44] sm:$0xf]  ;;  %v1123_v28 = vld [vmem:[%s1630_s30 + $0x5c] sm:$0xf0] }
  0x25   : > { %834 = vmatpush.bf16.msra.mxu1 %v1454_v19  ;;  %v1485_v19 = vld [vmem:[%s1895_s1 + $0x140] sm:$0xff]  ;;  %v1150_v24 = vor.u32 %v1435_v18, %v1149_v17  ;;  %v1171_v29 = vld [vmem:[%s1630_s30 + $0xc4] sm:$0xf0]  ;;  %v1177_v30 = vld [vmem:[%s1630_s30 + $0xb0] sm:$0xf] }
  0x26   : > { %863 = vmatpush.bf16.msra.mxu2 %v1462_v20  ;;  %v1101_v20 = vld [vmem:[%s1630_s30 + $0x10] sm:$0xf]  ;;  %v1442_v31 = vld [vmem:[%s1630_s30 + $0xc8] sm:$0xf0]  ;;  %v1433_v52 = vld [vmem:[%s1630_s30 + $0x84] sm:$0xf] }
  0x27   : > { %v1179_v51 = vld [vmem:[%s1630_s30 + $0xcc] sm:$0xf0]  ;;  %v1159_v53 = vld [vmem:[%s1630_s30 + $0x9c] sm:$0xf0]  ;;  %v1430_v55 = vld [vmem:[%s1630_s30 + $0x68] sm:$0xf0] }
  0x28   : > { %806 = vmatpush.bf16.msra.mxu0 %v1445_v21  ;;  %1506 = vmatpush.bf16.msra.mxu3 %v1445_v21  ;;  %v1422_v21 = vld [vmem:[%s1630_s30 + $0x28] sm:$0xf0]  ;;  %v1137_v54 = vld [vmem:[%s1630_s30 + $0x50] sm:$0xf]  ;;  %v1185_v56 = vld [vmem:[%s1630_s30 + $0xb8] sm:$0xf] }
  0x29   : > { %835 = vmatpush.bf16.msra.mxu1 %v1453_v22  ;;  %v1098_v22 = vor.u32 %v1418_v15, %v1095_v16  ;;  %v1102_v25 = vor.u32 %v1422_v21, %v1101_v20  ;;  %v1443_v57 = vld [vmem:[%s1630_s30 + $0xd0] sm:$0xf0] }
  0x2a   : > { %864 = vmatpush.bf16.msra.mxu2 %v1461_v23  ;;  %v1146_v23 = vor.u32 %v1431_v13, %v1143_v14 }
  0x2b   : > { %807 = vmatmul.bf16.vlgmr.msra.gmra.mxu0 %v1086_v34  ;;  %817 = vmatmul.bf16.vlgmr.msra.gmra.mxu3 %v1142_v35  ;;  %v1126_v34 = vor.u32 %v1425_v27, %v1123_v28  ;;  %v1174_v35 = vor.u32 %v1438_v26, %v1171_v29 }
  0x2c   : > { %886 = vmatpush.bf16.msrb.mxu3 %v1476_v32  ;;  %836 = vmatmul.bf16.vlgmr.msra.gmra.mxu1 %v1090_v36  ;;  %v1129_v32 = vld [vmem:[%s1630_s30 + $0x48] sm:$0xf]  ;;  %v1178_v36 = vor.u32 %v1442_v31, %v1177_v30 }
  0x2d   : > { %865 = vmatmul.bf16.vlgmr.msra.gmra.mxu2 %v1094_v37  ;;  %915 = vmatpush.bf16.msrb.mxu0 %v1484_v38  ;;  %v1432_v38 = vld [vmem:[%s1630_s30 + $0x7c] sm:$0xf] }
  0x2e   : > { %975 = vmatpush.bf16.msrb.mxu2 %v1661_v33  ;;  %1507 = vmatpush.bf16.msrb.mxu1 %v1669_v39 }
  0x30   : > { %887 = vmatpush.bf16.msrb.mxu3 %v1475_v40  ;;  %v1426_v40 = vld [vmem:[%s1630_s30 + $0x4c] sm:$0xf] }
  0x31   : > { %916 = vmatpush.bf16.msrb.mxu0 %v1483_v42  ;;  %v1109_v42 = vld [vmem:[%s1630_s30 + $0x18] sm:$0xf] }
  0x32   : > { %976 = vmatpush.bf16.msrb.mxu2 %v1678_v41  ;;  %1508 = vmatpush.bf16.msrb.mxu1 %v1687_v43 }
  0x34   : > { %888 = vmatpush.bf16.msrb.mxu3 %v1474_v44  ;;  %v1157_v44 = vld [vmem:[%s1630_s30 + $0x80] sm:$0xf] }
  0x35   : > { %917 = vmatpush.bf16.msrb.mxu0 %v1482_v46 }
  0x36   : > { %977 = vmatpush.bf16.msrb.mxu2 %v1696_v45  ;;  %1509 = vmatpush.bf16.msrb.mxu1 %v1705_v47 }
  0x38   : > { %889 = vmatpush.bf16.msrb.mxu3 %v1473_v48 }
  0x39   : > { %918 = vmatpush.bf16.msrb.mxu0 %v1481_v50  ;;  %v1439_v50 = vld [vmem:[%s1630_s30 + $0xb4] sm:$0xf] }
  0x3a   : > { %978 = vmatpush.bf16.msrb.mxu2 %v1714_v49  ;;  %1510 = vmatpush.bf16.msrb.mxu1 %v1731_v59  ;;  %v1182_v58 = vor.u32 %v1439_v50, %v1179_v51 }
  0x3b   : > { %812 = vmatmul.bf16.gmra.mxu0 %v1114_v62  ;;  %822 = vmatmul.bf16.gmra.mxu3 %v1170_v63  ;;  %v1440_v62 = vld [vmem:[%s1630_s30 + $0xbc] sm:$0xf]  ;;  %v1193_v63 = vld [vmem:[%s1630_s30 + $0xc0] sm:$0xf] }
  0x3c   : > { %890 = vmatpush.bf16.msrb.mxu3 %v1472_v60  ;;  %841 = vmatmul.bf16.gmra.mxu1 %v1118_v0  ;;  %v1138_v60 = vor.u32 %v1430_v55, %v1137_v54  ;;  %v1444_v0 = vld [vmem:[%s1630_s30 + $0xd8] sm:$0xf0] }
  0x3d   : > { %870 = vmatmul.bf16.gmra.mxu2 %v1122_v1  ;;  %919 = vmatpush.bf16.msrb.mxu0 %v1480_v2  ;;  %v1187_v1 = vld [vmem:[%s1630_s30 + $0xd4] sm:$0xf0]  ;;  %v1165_v2 = vld [vmem:[%s1630_s30 + $0x88] sm:$0xf] }
  0x3e   : > { %979 = vmatpush.bf16.msrb.mxu2 %v1740_v61  ;;  %1511 = vmatpush.bf16.msrb.mxu1 %v1749_v3 }
  0x40   : > { %891 = vmatpush.bf16.msrb.mxu3 %v1471_v4  ;;  %v1419_v4 = vld [vmem:[%s1630_s30 + $0x14] sm:$0xf] }
  0x41   : > { %920 = vmatpush.bf16.msrb.mxu0 %v1479_v5  ;;  %v1103_v5 = vld [vmem:[%s1630_s30 + $0x2c] sm:$0xf0] }
  0x42   : > { %980 = vmatpush.bf16.msrb.mxu2 %v1493_v7  ;;  %1512 = vmatpush.bf16.msrb.mxu1 %v1487_v6 }
  0x44   : > { %892 = vmatpush.bf16.msrb.mxu3 %v1470_v8 }
  0x45   : > { %921 = vmatpush.bf16.msrb.mxu0 %v1478_v9  ;;  %v1106_v9 = vor.u32 %v1419_v4, %v1103_v5 }
  0x46   : > { %1513 = vmatpush.bf16.msrb.mxu1 %v1486_v10 }
  0x48   : > { %893 = vmatpush.bf16.msrb.mxu3 %v1469_v11 }
  0x49   : > { %922 = vmatpush.bf16.msrb.mxu0 %v1477_v12 }
  0x4a   : > { %1514 = vmatpush.bf16.msrb.mxu1 %v1485_v19 }
  0x4b   : > { %894 = vmatmul.bf16.vlgmr.msrb.gmra.mxu3 %v1098_v22 }
  0x4c   : > { %1515 = vmatpush.bf16.msra.mxu3 %v1661_v33  ;;  %846 = vmatmul.bf16.gmra.mxu1 %v1146_v23  ;;  %v1429_v33 = vld [vmem:[%s1630_s30 + $0x60] sm:$0xf0] }
  0x4d   : > { %944 = vmatpush.bf16.msra.mxu0 %v1669_v39  ;;  %875 = vmatmul.bf16.gmra.mxu2 %v1150_v24  ;;  %v1130_v37 = vor.u32 %v1429_v33, %v1129_v32  ;;  %v1151_v39 = vld [vmem:[%s1630_s30 + $0x94] sm:$0xf0] }
  0x4e   : > { %923 = vmatmul.bf16.vlgmr.msrb.gmra.mxu0 %v1102_v25  ;;  %v1154_v46 = vor.u32 %v1432_v38, %v1151_v39 }
  0x50   : > { %1516 = vmatpush.bf16.msra.mxu3 %v1678_v41  ;;  %v1131_v41 = vld [vmem:[%s1630_s30 + $0x64] sm:$0xf0] }
  0x51   : > { %945 = vmatpush.bf16.msra.mxu0 %v1687_v43  ;;  %v1423_v43 = vld [vmem:[%s1630_s30 + $0x30] sm:$0xf0] }
  0x52   : > { %v1110_v48 = vor.u32 %v1423_v43, %v1109_v42 }
  0x54   : > { %1517 = vmatpush.bf16.msra.mxu3 %v1696_v45  ;;  %v1436_v45 = vld [vmem:[%s1630_s30 + $0x98] sm:$0xf0] }
  0x55   : > { %946 = vmatpush.bf16.msra.mxu0 %v1705_v47  ;;  %v1134_v47 = vor.u32 %v1426_v40, %v1131_v41 }
  0x58   : > { %1518 = vmatpush.bf16.msra.mxu3 %v1714_v49  ;;  %v1158_v49 = vor.u32 %v1436_v45, %v1157_v44 }
  0x59   : > { %947 = vmatpush.bf16.msra.mxu0 %v1731_v59  ;;  %v1162_v59 = vor.u32 %v1433_v52, %v1159_v53 }
  0x5b   : > { %899 = vmatmul.bf16.gmra.mxu3 %v1126_v34 }
  0x5c   : > { %1519 = vmatpush.bf16.msra.mxu3 %v1740_v61  ;;  %851 = vmatmul.bf16.gmra.mxu1 %v1174_v35  ;;  %v1186_v61 = vor.u32 %v1443_v57, %v1185_v56 }
  0x5d   : > { %948 = vmatpush.bf16.msra.mxu0 %v1749_v3  ;;  %880 = vmatmul.bf16.gmra.mxu2 %v1178_v36  ;;  %v1437_v3 = vld [vmem:[%s1630_s30 + $0xa0] sm:$0xf0]  ;;  %s1082_s30 = sshll.u32 %s1899_s5, 3 }
  0x5e   : > { %928 = vmatmul.bf16.gmra.mxu0 %v1130_v37  ;;  %v1166_v8 = vor.u32 %v1437_v3, %v1165_v2  ;;  %s1869_s7 = scalar_lea.vmem %s1897_s3, %s1082_s30 }
  0x60   : > { %1520 = vmatpush.bf16.msra.mxu3 %v1493_v7  ;;  %v1190_v7 = vor.u32 %v1440_v62, %v1187_v1 }
  0x61   : > { %949 = vmatpush.bf16.msra.mxu0 %v1487_v6  ;;  %v1194_v6 = vor.u32 %v1444_v0, %v1193_v63 }
  0x65   : > { %950 = vmatpush.bf16.msra.mxu0 %v1486_v10  ;;  %v1840_v10 = vld [vmem:[%s1896_s2] ss:$0 sm:$0xff] }
  0x69   : > { %951 = vmatpush.bf16.msra.mxu0 %v1485_v19 }
  0x6b   : > { %904 = vmatmul.bf16.gmra.mxu3 %v1154_v46 }
  0x6c   : > { %957 = vmatmul.bf16.vlgmr.msrb.gmra.mxu1 %v1134_v47 }
  0x6d   : > { %1411 = vmatmul.msk.bf16.vlgmr.msrb.gmra.mxu2 %vm786_vm0, %v1110_v48 }
  0x6e   : > { %933 = vmatmul.bf16.gmra.mxu0 %v1158_v49 }
  0x7b   : > { %909 = vmatmul.bf16.gmra.mxu3 %v1182_v58 }
  0x7c   : > { %962 = vmatmul.bf16.gmra.mxu1 %v1162_v59 }
  0x7d   : > { %1412 = vmatmul.msk.bf16.gmra.mxu2 %vm786_vm0, %v1138_v60 }
  0x7e   : > { %938 = vmatmul.bf16.gmra.mxu0 %v1186_v61 }
  0x8b   : > { %1414 = vmatmul.msk.bf16.vlgmr.msra.gmra.mxu3 %vm786_vm0, %v1194_v6 }
  0x8c   : > { %967 = vmatmul.bf16.gmra.mxu1 %v1190_v7 }
  0x8d   : > { %1413 = vmatmul.msk.bf16.gmra.mxu2 %vm786_vm0, %v1166_v8 }
  0x8e   : > { %952 = vmatmul.bf16.vlgmr.msra.gmra.mxu0 %v1106_v9 }
  0xa8   : > { %v808_v11 = vpop.f32.mrf.mxu0 }
  0xa9   : > { %v809_v12 = vadd.f32 %v1840_v10, %v808_v11  ;;  %v837_v13 = vpop.f32.mrf.mxu1 }
  0xab   : > { %v838_v14 = vadd.f32 %v837_v13, %v809_v12 }
  0xae   : > { %v818_v15 = vpop.f32.mrf.mxu3 }
  0xaf   : > { %v819_v11 = vadd.f32 %v1840_v10, %v818_v15 }
  0xb0   : > { %v866_v16 = vpop.f32.mrf.mxu2  ;;  %v810_v18 = vpop.f32.mrf.mxu0 }
  0xb1   : > { %v1843_v17 = vadd.f32 %v866_v16, %v838_v14  ;;  %v811_v19 = vadd.f32 %v1840_v10, %v810_v18  ;;  %v839_v20 = vpop.f32.mrf.mxu1 }
  0xb3   : > { %v840_v21 = vadd.f32 %v839_v20, %v811_v19 }
  0xb6   : > { %v1846_v22 = vpop.f32.mrf.mxu3 }
  0xb8   : > { %v868_v23 = vpop.f32.mrf.mxu2  ;;  %v813_v25 = vpop.f32.mrf.mxu0 }
  0xb9   : > { %v1848_v24 = vadd.f32 %v868_v23, %v840_v21  ;;  %v842_v26 = vpop.f32.mrf.mxu1  ;;  %v814_v51 = vadd.f32 %v1840_v10, %v813_v25 }
  0xbb   : > { %v843_v55 = vadd.f32 %v842_v26, %v814_v51 }
  0xbe   : > { %v823_v27 = vpop.f32.mrf.mxu3 }
  0xbf   : > { %v824_v8 = vadd.f32 %v1840_v10, %v823_v27 }
  0xc0   : > { %v871_v28 = vpop.f32.mrf.mxu2  ;;  %v815_v29 = vpop.f32.mrf.mxu0 }
  0xc1   : > { %v844_v30 = vpop.f32.mrf.mxu1  ;;  %v872_v57 = vadd.f32 %v871_v28, %v843_v55  ;;  %v816_v60 = vadd.f32 %v1840_v10, %v815_v29 }
  0xc3   : > { %v845_v0 = vadd.f32 %v844_v30, %v816_v60 }
  0xc6   : > { %v825_v31 = vpop.f32.mrf.mxu3 }
  0xc7   : > { %v826_v30 = vadd.f32 %v1840_v10, %v825_v31 }
  0xc8   : > { %v873_v32 = vpop.f32.mrf.mxu2 }
  0xc9   : > { %v847_v33 = vpop.f32.mrf.mxu1  ;;  %v874_v2 = vadd.f32 %v873_v32, %v845_v0 }
  0xca   : > { %v848_v16 = vadd.f32 %v847_v33, %v819_v11  ;;  %v821_v33 = vadd.f32 %v1840_v10, %v1846_v22 }
  0xcb   : > { %v924_v34 = vpop.f32.mrf.mxu0 }
  0xce   : > { %v895_v35 = vpop.f32.mrf.mxu3 }
  0xcf   : > { %v896_v19 = vadd.f32 %v895_v35, %v1843_v17 }
  0xd0   : > { %v876_v36 = vpop.f32.mrf.mxu2 }
  0xd1   : > { %v1850_v37 = vpop.f32.mrf.mxu1  ;;  %v877_v21 = vadd.f32 %v876_v36, %v848_v16  ;;  %v925_v15 = vadd.f32 %v924_v34, %v896_v19 }
  0xd2   : > { %v850_v36 = vadd.f32 %v1850_v37, %v821_v33 }
  0xd3   : > { %v1852_v38 = vpop.f32.mrf.mxu0 }
  0xd6   : > { %v1854_v39 = vpop.f32.mrf.mxu3 }
  0xd8   : > { %v1856_v40 = vpop.f32.mrf.mxu2 }
  0xd9   : > { %v852_v41 = vpop.f32.mrf.mxu1 }
  0xda   : > { %v853_v14 = vadd.f32 %v852_v41, %v824_v8 }
  0xdb   : > { %v929_v42 = vpop.f32.mrf.mxu0 }
  0xde   : > { %v900_v43 = vpop.f32.mrf.mxu3 }
  0xdf   : > { %v901_v61 = vadd.f32 %v900_v43, %v872_v57 }
  0xe0   : > { %v881_v44 = vpop.f32.mrf.mxu2 }
  0xe1   : > { %v854_v45 = vpop.f32.mrf.mxu1  ;;  %v930_v1 = vadd.f32 %v929_v42, %v901_v61  ;;  %v882_v20 = vadd.f32 %v881_v44, %v853_v14 }
  0xe2   : > { %v855_v43 = vadd.f32 %v854_v45, %v826_v30 }
  0xe3   : > { %v931_v46 = vpop.f32.mrf.mxu0 }
  0xe6   : > { %v902_v47 = vpop.f32.mrf.mxu3 }
  0xe7   : > { %v903_v6 = vadd.f32 %v902_v47, %v874_v2 }
  0xe8   : > { %v883_v48 = vpop.f32.mrf.mxu2 }
  0xe9   : > { %v958_v49 = vpop.f32.mrf.mxu1  ;;  %v932_v18 = vadd.f32 %v931_v46, %v903_v6  ;;  %v898_v46 = vadd.f32 %v1854_v39, %v1848_v24  ;;  %v884_v47 = vadd.f32 %v883_v48, %v855_v43 }
  0xea   : > { %v959_v3 = vadd.f32 %v958_v49, %v930_v1  ;;  %v879_v49 = vadd.f32 %v1856_v40, %v850_v36 }
  0xeb   : > { %v934_v50 = vpop.f32.mrf.mxu0  ;;  %v927_v57 = vadd.f32 %v1852_v38, %v898_v46 }
  0xee   : > { %v905_v52 = vpop.f32.mrf.mxu3 }
  0xef   : > { %v906_v28 = vadd.f32 %v905_v52, %v877_v21 }
  0xf0   : > { %v982_v53 = vpop.f32.mrf.mxu2 }
  0xf1   : > { %v960_v54 = vpop.f32.mrf.mxu1  ;;  %v935_v44 = vadd.f32 %v934_v50, %v906_v28 }
  0xf2   : > { %v961_v23 = vadd.f32 %v960_v54, %v932_v18 }
  0xf3   : > { %v1859_v56 = vpop.f32.mrf.mxu0 }
  0xf6   : > { %v907_v58 = vpop.f32.mrf.mxu3 }
  0xf7   : > { %v908_v37 = vadd.f32 %v907_v58, %v879_v49 }
  0xf8   : > { %v1861_v59 = vpop.f32.mrf.mxu2 }
  0xf9   : > { %v963_v62 = vpop.f32.mrf.mxu1  ;;  %v937_v60 = vadd.f32 %v1859_v56, %v908_v37 }
  0xfa   : > { %v964_v10 = vadd.f32 %v963_v62, %v935_v44 }
  0xfb   : > { %v939_v63 = vpop.f32.mrf.mxu0 }
  0xfe   : > { %v910_v4 = vpop.f32.mrf.mxu3 }
  0xff   : > { %v911_v26 = vadd.f32 %v910_v4, %v882_v20 }
 0x100   : > { %v987_v5 = vpop.f32.mrf.mxu2 }
 0x101   : > { %v988_v7 = vadd.f32 %v987_v5, %v959_v3  ;;  %v965_v9 = vpop.f32.mrf.mxu1  ;;  %v940_v35 = vadd.f32 %v939_v63, %v911_v26 }
 0x102   : > { %v966_v62 = vadd.f32 %v965_v9, %v937_v60 }
 0x103   : > { %v1004_v12 = vmax.f32 %v988_v7, 0.0  ;;  %v941_v13 = vpop.f32.mrf.mxu0 }
 0x105   : > { %1012 = vst [vmem:[%s1869_s7 + $0x10] sm:$0xff] %v1004_v12 }
 0x106   : > { %v912_v25 = vpop.f32.mrf.mxu3 }
 0x107   : > { %v913_v51 = vadd.f32 %v912_v25, %v884_v47 }
 0x108   : > { %v989_v27 = vpop.f32.mrf.mxu2 }
 0x109   : > { %v990_v29 = vadd.f32 %v989_v27, %v961_v23  ;;  %v968_v32 = vpop.f32.mrf.mxu1 }
 0x10a   : > { %v969_v34 = vadd.f32 %v968_v32, %v940_v35 }
 0x10b   : > { %v1005_v41 = vmax.f32 %v990_v29, 0.0  ;;  %v953_v42 = vpop.f32.mrf.mxu0 }
 0x10c   : > { %v954_v17 = vadd.f32 %v953_v42, %v925_v15 }
 0x10d   : > { %1013 = vst [vmem:[%s1869_s7 + $0x18] sm:$0xff] %v1005_v41 }
 0x10e   : > { %v983_v31 = vadd.f32 %v982_v53, %v954_v17  ;;  %v997_v22 = vpop.f32.mrf.mxu3  ;;  %v942_v53 = vadd.f32 %v941_v13, %v913_v51 }
 0x10f   : > { %v998_v54 = vadd.f32 %v997_v22, %v969_v34 }
 0x110   : > { %v1002_v45 = vmax.f32 %v983_v31, 0.0  ;;  %v992_v52 = vpop.f32.mrf.mxu2 }
 0x111   : > { %v993_v55 = vadd.f32 %v992_v52, %v964_v10  ;;  %v1008_v50 = vmax.f32 %v998_v54, 0.0  ;;  %v970_v48 = vpop.f32.mrf.mxu1 }
 0x112   : > { %1010 = vst [vmem:[%s1869_s7] sm:$0xff] %v1002_v45  ;;  %v971_v58 = vadd.f32 %v970_v48, %v942_v53 }
 0x113   : > { %v1006_v24 = vmax.f32 %v993_v55, 0.0  ;;  %v955_v39 = vpop.f32.mrf.mxu0  ;;  %1016 = vst [vmem:[%s1869_s7 + $0x30] sm:$0xff] %v1008_v50 }
 0x114   : > { %v956_v40 = vadd.f32 %v955_v39, %v927_v57 }
 0x115   : > { %1014 = vst [vmem:[%s1869_s7 + $0x20] sm:$0xff] %v1006_v24 }
 0x116   : > { %v985_v61 = vadd.f32 %v1861_v59, %v956_v40  ;;  %v999_v63 = vpop.f32.mrf.mxu3 }
 0x117   : > { %v1000_v38 = vadd.f32 %v999_v63, %v971_v58 }
 0x118   : > { %v1003_v0 = vmax.f32 %v985_v61, 0.0  ;;  %v994_v1 = vpop.f32.mrf.mxu2 }
 0x119   : > { %v995_v2 = vadd.f32 %v994_v1, %v966_v62  ;;  %v1009_v3 = vmax.f32 %v1000_v38, 0.0 }
 0x11a   : > { %1011 = vst [vmem:[%s1869_s7 + $0x8] sm:$0xff] %v1003_v0 }
 0x11b   : > { %v1007_v4 = vmax.f32 %v995_v2, 0.0  ;;  %1017 = vst [vmem:[%s1869_s7 + $0x38] sm:$0xff] %v1009_v3 }
 0x11d   : > { %1015 = vst [vmem:[%s1869_s7 + $0x28] sm:$0xff] %v1007_v4 }
 0x11e PF: > { %s13_s12 = sadd.s32 1, %s1537_s12  }
 0x11f   : > { %p10_p4 = scmp.ge.s32.totalorder %s13_s12, 4  }
 0x121   :  { %12 = sbr.rel (!%p10_p4) target bundleno = 1 (0x1), region = 62 }

// kernel: inception_b_forward.5
= control target key start
LH: loop header
LB: loop body
LE: loop exit
PB: predicated region body
PF: predicated region fallthrough
CT: control target
= control target key end

     0   :  { %s598_s12 = smov 0   ;;  %s732_s0 = inlined_call_operand.vmem [shape: bf16[128,36], index: 0, kind: input, shape index: {}]   ;;  %s733_s1 = inlined_call_operand.vmem [shape: bf16[36,384], index: 1, kind: input, shape index: {}]   ;;  %s734_s2 = inlined_call_operand.vmem [shape: f32[1,384], index: 2, kind: input, shape index: {}]   ;;  %s735_s3 = inlined_call_operand.vmem [shape: f32[128,384], index: 3, kind: output, shape index: {}]  }
   0x1 LB: > { %s479_s13 = sadd.s32 4294967295, %s576_s12   ;;  %p483_p0 = scmp.ge.s32.totalorder %s576_s12, 1  ;;  %s576_s12 = sphi %s598_s12, %s13_s12  }
   0x2   : > { %p138_p1 = scmp.lt.s32.totalorder %s576_s12, 3 }
   0x4   : > { %p139_p2 = pnand %p483_p0, %p138_p1 }
   0x5   : > { %s484_s18 = sshll.u32 (!%p139_p2), %s479_s13, 3 }
   0x6   : > { %142 = sbr.rel (%p139_p2) target bundleno = 207 (0xcf), region = 32  ;;  %p164_p3 = scmp.lt.s32.totalorder (!%p139_p2), %s484_s18, 15 }
   0xb   : > { %v193_v0 = vld [vmem:[%s733_s1 + $0x30] sm:$0x33]  ;;  %v194_v1 = vld [vmem:[%s733_s1 + $0x38] sm:$0x3]  ;;  %vm276_vm0 = vcmask 1041408   ;;  %s737_s18 = smov (!%p164_p3, %s484_s18), 15 }
   0xc   : > { %v245_v2 = vunpack.c.l.b16 %v193_v0  ;;  %v246_v3 = vunpack.c.h.b16 %v193_v0  ;;  %v247_v4 = vunpack.c.l.b16 %v194_v1  ;;  %v518_v8 = vld [vmem:[%s733_s1 + $0x18] sm:$0xf]  ;;  %v550_v9 = vld [vmem:[%s733_s1 + $0x20] sm:$0xf0]  ;;  %v549_v10 = vld [vmem:[%s733_s1 + $0x1c] sm:$0xf] }
   0xd   : > { %v520_v11 = vld [vmem:[%s733_s1 + $0x24] sm:$0xf0]  ;;  %v526_v12 = vld [vmem:[%s733_s1 + $0x20] sm:$0xf]  ;;  %v551_v13 = vld [vmem:[%s733_s1 + $0x28] sm:$0xf0]  ;;  %v519_v17 = vor.u32 %v550_v9, %v518_v8 }
   0xe   : > { %v254_v5 = vpack.c.b16 %v245_v2, %v245_v2  ;;  %v255_v6 = vpack.c.b16 %v246_v3, %v246_v3  ;;  %v256_v7 = vpack.c.b16 %v247_v4, %v247_v4  ;;  %v506_v18 = vld [vmem:[%s733_s1] sm:$0xf]  ;;  %v523_v19 = vor.u32 %v549_v10, %v520_v11  ;;  %v547_v21 = vld [vmem:[%s733_s1 + $0x8] sm:$0xf0]  ;;  %v546_v22 = vld [vmem:[%s733_s1 + $0x4] sm:$0xf] }
   0xf   : > { %v527_v20 = vor.u32 %v551_v13, %v526_v12  ;;  %v508_v23 = vld [vmem:[%s733_s1 + $0xc] sm:$0xf0]  ;;  %v514_v24 = vld [vmem:[%s733_s1 + $0x8] sm:$0xf]  ;;  %v548_v25 = vld [vmem:[%s733_s1 + $0x10] sm:$0xf0]  ;;  %v507_v26 = vor.u32 %v547_v21, %v506_v18 }
  0x10   : > { %v278_v14 = vsel %vm276_vm0, %v254_v5, 0  ;;  %v281_v15 = vsel %vm276_vm0, %v255_v6, 0  ;;  %v284_v16 = vsel %vm276_vm0, %v256_v7, 0  ;;  %s485_s17 = sshll.u32 %s737_s18, 2  ;;  %v511_v27 = vor.u32 %v546_v22, %v508_v23  ;;  %v195_v33 = vld [vmem:[%s734_s2] sm:$0x7] }
  0x11   : > { %291 = vmatpush.bf16.msra.mxu0 %v278_v14  ;;  %552 = vmatpush.bf16.msra.mxu3 %v278_v14  ;;  %s167_s21 = scalar_lea.vmem %s732_s0, %s485_s17  ;;  %v515_v28 = vor.u32 %v548_v25, %v514_v24  ;;  %vm263_vm1 = vcmask 293888   ;;  %v669_v34 = vperm.slane %v195_v33, 0  ;;  %s561_s24 = smul.u32 24, %s737_s18  ;;  %v672_v35 = vperm.slane %v195_v33, 1 }
  0x12   : > { %555 = vmatpush.bf16.msra.mxu1 %v281_v15  ;;  %558 = vmatpush.bf16.msra.mxu2 %v284_v16  ;;  %v542_v29 = vld [vmem:[%s167_s21] sm:$0xff]  ;;  %v543_v30 = vld [vmem:[%s167_s21 + $0x8] sm:$0xff]  ;;  %v544_v31 = vld [vmem:[%s167_s21 + $0x10] sm:$0xff]  ;;  %v681_v42 = vperm.slane %v195_v33, 2 }
  0x13   : > { %v545_v32 = vld [vmem:[%s167_s21 + $0x18] sm:$0xff]  ;;  %s678_s27 = scalar_lea.vmem %s735_s3, %s561_s24 }
  0x15   : > { %292 = vmatpush.bf16.msra.mxu0 %v519_v17  ;;  %553 = vmatpush.bf16.msra.mxu3 %v519_v17 }
  0x16   : > { %556 = vmatpush.bf16.msra.mxu1 %v523_v19  ;;  %559 = vmatpush.bf16.msra.mxu2 %v527_v20 }
  0x19   : > { %293 = vmatpush.bf16.msra.mxu0 %v507_v26  ;;  %554 = vmatpush.bf16.msra.mxu3 %v507_v26 }
  0x1a   : > { %557 = vmatpush.bf16.msra.mxu1 %v511_v27  ;;  %560 = vmatpush.bf16.msra.mxu2 %v515_v28 }
  0x1c   : > { %528 = vmatmul.msk.bf16.vlgmr.msra.gmra.mxu0 %vm263_vm1, %v542_v29  ;;  %529 = vmatmul.msk.bf16.vlgmr.msra.gmra.mxu3 %vm263_vm1, %v543_v30 }
  0x1d   : > { %320 = vmatpush.bf16.msrb.mxu0 %v281_v15  ;;  %533 = vmatmul.msk.bf16.vlgmr.msra.gmra.mxu1 %vm263_vm1, %v543_v30 }
  0x1e   : > { %537 = vmatmul.msk.bf16.vlgmr.msra.gmra.mxu2 %vm263_vm1, %v543_v30 }
  0x21   : > { %321 = vmatpush.bf16.msrb.mxu0 %v523_v19 }
  0x25   : > { %322 = vmatpush.bf16.msrb.mxu0 %v511_v27 }
  0x29   : > { %349 = vmatpush.bf16.msra.mxu0 %v284_v16 }
  0x2c   : > { %530 = vmatmul.msk.bf16.gmra.mxu3 %vm263_vm1, %v544_v31  ;;  %532 = vmatmul.msk.bf16.vlgmr.msrb.gmra.mxu0 %vm263_vm1, %v542_v29 }
  0x2d   : > { %350 = vmatpush.bf16.msra.mxu0 %v527_v20  ;;  %534 = vmatmul.msk.bf16.gmra.mxu1 %vm263_vm1, %v544_v31 }
  0x2e   : > { %538 = vmatmul.msk.bf16.gmra.mxu2 %vm263_vm1, %v544_v31 }
  0x31   : > { %351 = vmatpush.bf16.msra.mxu0 %v515_v28 }
  0x3c   : > { %531 = vmatmul.msk.bf16.gmra.mxu3 %vm263_vm1, %v545_v32  ;;  %536 = vmatmul.msk.bf16.vlgmr.msra.gmra.mxu0 %vm263_vm1, %v542_v29 }
  0x3d   : > { %535 = vmatmul.msk.bf16.gmra.mxu1 %vm263_vm1, %v545_v32 }
  0x3e   : > { %539 = vmatmul.msk.bf16.gmra.mxu2 %vm263_vm1, %v545_v32 }
  0x99   : > { %v295_v36 = vpop.f32.mrf.mxu0 }
  0x9a   : > { %v296_v37 = vadd.f32 %v295_v36, %v669_v34  ;;  %v329_v38 = vpop.f32.mrf.mxu1 }
  0x9b   : > { %v330_v39 = vadd.f32 %v329_v38, %v672_v35 }
  0x9c   : > { %v373_v40 = vmax.f32 %v296_v37, 0.0 }
  0x9d   : > { %v380_v41 = vmax.f32 %v330_v39, 0.0 }
  0x9e   : > { %397 = vst [vmem:[%s678_s27] sm:$0xff] %v373_v40 }
  0x9f   : > { %404 = vst [vmem:[%s678_s27 + $0x38] sm:$0xff] %v380_v41  ;;  %v300_v43 = vpop.f32.mrf.mxu3 }
  0xa0   : > { %v301_v44 = vadd.f32 %v300_v43, %v669_v34 }
  0xa1   : > { %v358_v45 = vpop.f32.mrf.mxu2  ;;  %v297_v47 = vpop.f32.mrf.mxu0 }
  0xa2   : > { %v359_v46 = vadd.f32 %v358_v45, %v681_v42  ;;  %v379_v48 = vmax.f32 %v301_v44, 0.0  ;;  %v298_v49 = vadd.f32 %v297_v47, %v669_v34  ;;  %v331_v50 = vpop.f32.mrf.mxu1 }
  0xa3   : > { %v332_v52 = vadd.f32 %v331_v50, %v672_v35 }
  0xa4   : > { %v381_v51 = vmax.f32 %v359_v46, 0.0  ;;  %403 = vst [vmem:[%s678_s27 + $0x30] sm:$0xff] %v379_v48  ;;  %v376_v53 = vmax.f32 %v298_v49, 0.0 }
  0xa5   : > { %v383_v54 = vmax.f32 %v332_v52, 0.0 }
  0xa6   : > { %405 = vst [vmem:[%s678_s27 + $0x40] sm:$0xff] %v381_v51 }
  0xa7   : > { %400 = vst [vmem:[%s678_s27 + $0x18] sm:$0xff] %v376_v53  ;;  %v302_v55 = vpop.f32.mrf.mxu3 }
  0xa8   : > { %407 = vst [vmem:[%s678_s27 + $0x50] sm:$0xff] %v383_v54  ;;  %v303_v56 = vadd.f32 %v302_v55, %v669_v34 }
  0xa9   : > { %v360_v57 = vpop.f32.mrf.mxu2  ;;  %v324_v59 = vpop.f32.mrf.mxu0 }
  0xaa   : > { %v361_v58 = vadd.f32 %v360_v57, %v681_v42  ;;  %v382_v60 = vmax.f32 %v303_v56, 0.0  ;;  %v325_v61 = vadd.f32 %v324_v59, %v672_v35  ;;  %v334_v62 = vpop.f32.mrf.mxu1 }
  0xab   : > { %v335_v0 = vadd.f32 %v334_v62, %v672_v35 }
  0xac   : > { %v384_v63 = vmax.f32 %v361_v58, 0.0  ;;  %406 = vst [vmem:[%s678_s27 + $0x48] sm:$0xff] %v382_v60  ;;  %v374_v1 = vmax.f32 %v325_v61, 0.0 }
  0xad   : > { %v386_v2 = vmax.f32 %v335_v0, 0.0 }
  0xae   : > { %408 = vst [vmem:[%s678_s27 + $0x58] sm:$0xff] %v384_v63 }
  0xaf   : > { %398 = vst [vmem:[%s678_s27 + $0x8] sm:$0xff] %v374_v1  ;;  %v305_v3 = vpop.f32.mrf.mxu3 }
  0xb0   : > { %410 = vst [vmem:[%s678_s27 + $0x68] sm:$0xff] %v386_v2  ;;  %v306_v4 = vadd.f32 %v305_v3, %v669_v34 }
  0xb1   : > { %v363_v5 = vpop.f32.mrf.mxu2  ;;  %v326_v7 = vpop.f32.mrf.mxu0 }
  0xb2   : > { %v364_v6 = vadd.f32 %v363_v5, %v681_v42  ;;  %v385_v8 = vmax.f32 %v306_v4, 0.0  ;;  %v327_v9 = vadd.f32 %v326_v7, %v672_v35  ;;  %v336_v10 = vpop.f32.mrf.mxu1 }
  0xb3   : > { %v337_v12 = vadd.f32 %v336_v10, %v672_v35 }
  0xb4   : > { %v387_v11 = vmax.f32 %v364_v6, 0.0  ;;  %409 = vst [vmem:[%s678_s27 + $0x60] sm:$0xff] %v385_v8  ;;  %v377_v13 = vmax.f32 %v327_v9, 0.0 }
  0xb5   : > { %v389_v14 = vmax.f32 %v337_v12, 0.0 }
  0xb6   : > { %411 = vst [vmem:[%s678_s27 + $0x70] sm:$0xff] %v387_v11 }
  0xb7   : > { %401 = vst [vmem:[%s678_s27 + $0x20] sm:$0xff] %v377_v13  ;;  %v307_v15 = vpop.f32.mrf.mxu3 }
  0xb8   : > { %413 = vst [vmem:[%s678_s27 + $0x80] sm:$0xff] %v389_v14  ;;  %v308_v16 = vadd.f32 %v307_v15, %v669_v34 }
  0xb9   : > { %v365_v17 = vpop.f32.mrf.mxu2  ;;  %v353_v19 = vpop.f32.mrf.mxu0 }
  0xba   : > { %v366_v18 = vadd.f32 %v365_v17, %v681_v42  ;;  %v388_v20 = vmax.f32 %v308_v16, 0.0  ;;  %v339_v21 = vpop.f32.mrf.mxu1  ;;  %v354_v22 = vadd.f32 %v353_v19, %v681_v42 }
  0xbb   : > { %v340_v24 = vadd.f32 %v339_v21, %v672_v35 }
  0xbc   : > { %v390_v23 = vmax.f32 %v366_v18, 0.0  ;;  %412 = vst [vmem:[%s678_s27 + $0x78] sm:$0xff] %v388_v20  ;;  %v375_v25 = vmax.f32 %v354_v22, 0.0 }
  0xbd   : > { %v392_v26 = vmax.f32 %v340_v24, 0.0 }
  0xbe   : > { %414 = vst [vmem:[%s678_s27 + $0x88] sm:$0xff] %v390_v23 }
  0xbf   : > { %399 = vst [vmem:[%s678_s27 + $0x10] sm:$0xff] %v375_v25  ;;  %v310_v27 = vpop.f32.mrf.mxu3 }
  0xc0   : > { %416 = vst [vmem:[%s678_s27 + $0x98] sm:$0xff] %v392_v26  ;;  %v311_v28 = vadd.f32 %v310_v27, %v669_v34 }
  0xc1   : > { %v368_v29 = vpop.f32.mrf.mxu2  ;;  %v355_v31 = vpop.f32.mrf.mxu0 }
  0xc2   : > { %v369_v30 = vadd.f32 %v368_v29, %v681_v42  ;;  %v391_v32 = vmax.f32 %v311_v28, 0.0  ;;  %v341_v33 = vpop.f32.mrf.mxu1  ;;  %v356_v36 = vadd.f32 %v355_v31, %v681_v42 }
  0xc3   : > { %v342_v38 = vadd.f32 %v341_v33, %v672_v35 }
  0xc4   : > { %v393_v37 = vmax.f32 %v369_v30, 0.0  ;;  %415 = vst [vmem:[%s678_s27 + $0x90] sm:$0xff] %v391_v32  ;;  %v378_v39 = vmax.f32 %v356_v36, 0.0 }
  0xc5   : > { %v395_v40 = vmax.f32 %v342_v38, 0.0 }
  0xc6   : > { %417 = vst [vmem:[%s678_s27 + $0xa0] sm:$0xff] %v393_v37 }
  0xc7   : > { %402 = vst [vmem:[%s678_s27 + $0x28] sm:$0xff] %v378_v39  ;;  %v312_v41 = vpop.f32.mrf.mxu3 }
  0xc8   : > { %419 = vst [vmem:[%s678_s27 + $0xb0] sm:$0xff] %v395_v40  ;;  %v313_v43 = vadd.f32 %v312_v41, %v669_v34 }
  0xc9   : > { %v370_v44 = vpop.f32.mrf.mxu2 }
  0xca   : > { %v371_v45 = vadd.f32 %v370_v44, %v681_v42  ;;  %v394_v46 = vmax.f32 %v313_v43, 0.0 }
  0xcc   : > { %v396_v47 = vmax.f32 %v371_v45, 0.0  ;;  %418 = vst [vmem:[%s678_s27 + $0xa8] sm:$0xff] %v394_v46 }
  0xce   : > { %420 = vst [vmem:[%s678_s27 + $0xb8] sm:$0xff] %v396_v47 }
  0xcf PF: > { %s13_s12 = sadd.s32 1, %s576_s12  }
  0xd0   : > { %p10_p4 = scmp.ge.s32.totalorder %s13_s12, 4  }
  0xd2   :  { %12 = sbr.rel (!%p10_p4) target bundleno = 1 (0x1), region = 62 }

</bundles_post_ra>
